<compile_context>
chip_gen: v7x
topology: tpu7x:2x2x1
jax: 0.10.0
libtpu: 0.0.40
codegen_flags: <defaults>
</compile_context>

<pallas_src>
import jax
import jax.numpy as jnp
import numpy as np
from jax import lax
from jax.experimental import pallas as pl
from jax.experimental.pallas import tpu as pltpu

EPS = 1e-07


def _sigmoid(z):
    # sigmoid(z) = 0.5 * tanh(0.5 z) + 0.5: one EUP tanh + fused mul-add,
    # no exp / full-precision divide, no overflow edge cases.
    return 0.5 * jnp.tanh(0.5 * z) + 0.5


def _pad(v, m):
    return -(-v // m) * m


def _vmem_budget_bytes():
    """Generation-aware VMEM budget (~75% of per-core capacity, >= 32 MiB)."""
    cap = 64 << 20  # conservative default = v7x per-core VMEM
    try:
        info = pltpu.get_tpu_info()
        for name in ("vmem_capacity_bytes", "vmem_bytes", "vmem_size_bytes"):
            val = getattr(info, name, None)
            if val:
                cap = int(val)
                break
    except Exception:
        pass
    return max(min(cap * 3 // 4, cap - (8 << 20)), 32 << 20)


def _pick_tile(n, fits, prefers):
    """Largest divisor of n (multiple of 8, or n itself) satisfying the VMEM budget."""
    cands = sorted({t for t in range(1, n + 1)
                    if n % t == 0 and (t == n or t % 8 == 0)}, reverse=True)
    for mult in prefers:
        for t in cands:
            if (t == n or t % mult == 0) and fits(t):
                return t
    return cands[-1]  # last resort: smallest legal tile; let the compiler try


def _make_node_kernel(n_nodes, tile_n, d):
    num_tiles = n_nodes // tile_n
    inv_n = 1.0 / float(n_nodes)
    nf = float(n_nodes)

    def kernel(x_ref, gum_ref, unif_ref, w1_ref, b1_ref, w2_ref, b2_ref,
               assign_ref, gf_ref, ngf_ref, sub_ref, scal_ref,
               feat_acc, sacc):
        t = pl.program_id(0)
        lane = lax.broadcasted_iota(jnp.int32, (1, 128), 1)

        @pl.when(t == 0)
        def _init():
            feat_acc[...] = jnp.zeros_like(feat_acc)
            sacc[...] = jnp.zeros_like(sacc)

        xs = x_ref[...]                                          # (tn, D)
        us = unif_ref[...]                                       # (tn, D)

        # abstract_features_1 = tanh(Linear1(x)); logits = Linear2(.)
        h1 = jnp.tanh(jnp.dot(xs, w1_ref[...],
                              preferred_element_type=jnp.float32) + b1_ref[...])
        logits = jnp.dot(h1, w2_ref[...],
                         preferred_element_type=jnp.float32) + b2_ref[...]
        # 2-class softmax == sigmoid of the logit difference (exact rewrite).
        a0 = _sigmoid(logits[:, 0:1] - logits[:, 1:2])           # assignment[:, 0]
        a1 = 1.0 - a0                                            # assignment[:, 1]
        # F.gumbel_softmax(assignment, tau=1): softmax(assignment + g) over 2 classes.
        gd = gum_ref[:, 0:1] - gum_ref[:, 1:2]
        lp = _sigmoid((a0 - a1) + gd)                            # lambda_pos
        ln_ = 1.0 - lp                                           # lambda_neg

        # Hand the assignment to the adjacency kernel as an exact bf16 hi/lo split
        # (a = hi + lo, both columns bf16-representable); the adjacency kernel can
        # then run a native bf16 MXU matmul with ~2^-17 relative error.
        a0h = a0.astype(jnp.bfloat16).astype(jnp.float32)
        a1h = a1.astype(jnp.bfloat16).astype(jnp.float32)
        assign_ref[:, 0:1] = a0h
        assign_ref[:, 1:2] = a1h
        assign_ref[:, 2:3] = a0 - a0h
        assign_ref[:, 3:4] = a1 - a1h

        # Per-feature accumulators (rows of feat_acc, (1, D) each).
        xsq = xs * xs
        lpx = lp * xs
        lp2x = lp * lpx
        feat_acc[0:1, :] += jnp.sum(xs, axis=0, keepdims=True)        # sum x
        feat_acc[1:2, :] += jnp.sum(xsq, axis=0, keepdims=True)       # sum x^2
        feat_acc[2:3, :] += jnp.sum(lpx, axis=0, keepdims=True)       # sum lp*x
        feat_acc[3:4, :] += jnp.sum(us * ln_, axis=0, keepdims=True)  # sum u*ln
        feat_acc[4:5, :] += jnp.sum(lp2x, axis=0, keepdims=True)      # sum lp^2*x
        feat_acc[5:6, :] += jnp.sum(lp2x * xs, axis=0, keepdims=True) # sum lp^2*x^2

        # Scalar accumulators, lane-packed into one (1, 128) vreg.
        s_ln = jnp.sum(ln_, axis=0, keepdims=True)
        s_ln2 = jnp.sum(ln_ * ln_, axis=0, keepdims=True)
        s_lp2 = jnp.sum(lp * lp, axis=0, keepdims=True)
        s_pres = jnp.sum((a0 > 0.5).astype(jnp.float32), axis=0, keepdims=True)
        sacc[...] += (jnp.where(lane == 0, s_ln, 0.0)
                      + jnp.where(lane == 1, s_ln2, 0.0)
                      + jnp.where(lane == 2, s_lp2, 0.0)
                      + jnp.where(lane == 3, s_pres, 0.0))

        # NOTE: the scalar/feature outputs below use constant-index output blocks and
        # are written exactly once, on the final grid step.  Do not make their output
        # index_map vary per step.
        @pl.when(t == num_tiles - 1)
        def _finalize():
            sum_x = feat_acc[0:1, :]
            sumsq_x = feat_acc[1:2, :]
            sum_lpx = feat_acc[2:3, :]
            sum_uln = feat_acc[3:4, :]
            sum_lp2x = feat_acc[4:5, :]
            sum_lp2x2 = feat_acc[5:6, :]
            t_ln = sacc[0:1, 0:1]
            t_ln2 = sacc[0:1, 1:2]
            t_lp2 = sacc[0:1, 2:3]
            t_pres = sacc[0:1, 3:4]

            # torch.std_mean(x, dim=0): unbiased std (N-1 denominator).
            mean = sum_x * inv_n
            # TODO(synk): sum-of-squares expansion can cancel for very large N with
            # |mean| >> std; switch to per-tile (Chan) centering if that regime matters.
            var = jnp.maximum((sumsq_x - nf * mean * mean) / (nf - 1.0), 0.0)
            std = jnp.sqrt(var)

            # Readouts (global mean pooling, single graph).
            gf_ref[...] = mean.astype(gf_ref.dtype)
            sub_ref[...] = (sum_lpx * inv_n).astype(sub_ref.dtype)
            ngf_ref[...] = ((sum_lpx + mean * t_ln + std * sum_uln) * inv_n
                            ).astype(ngf_ref.dtype)

            # KL[i,d] = 0.5*ln_i^2*std_d^2/(std_d+eps)^2
            #           + sum_j (lp_j*(x_jd - mean_d)/(std_d+eps))^2 ; KL_Loss = mean.
            denom = std + EPS
            inv2 = 1.0 / (denom * denom)
            term1 = 0.5 * t_ln2 * jnp.sum(std * std * inv2, axis=1, keepdims=True)
            c_feat = sum_lp2x2 - 2.0 * mean * sum_lp2x + mean * mean * t_lp2
            term2 = nf * jnp.sum(c_feat * inv2, axis=1, keepdims=True)
            kl = (term1 + term2) / (nf * float(d))

            pr = t_pres * inv_n
            scal_ref[...] = jnp.where(lane == 0, kl, 0.0) + jnp.where(lane == 1, pr, 0.0)

    return kernel


def _make_adj_kernel(n_nodes, tile_n):
    num_tiles = n_nodes // tile_n

    def kernel(assign_ref, adj_ref, pos_ref, cacc):
        t = pl.program_id(0)
        lane = lax.broadcasted_iota(jnp.int32, (1, 128), 1)

        @pl.when(t == 0)
        def _init():
            cacc[...] = jnp.zeros_like(cacc)

        # RHS: bf16 [a0_hi, a1_hi, a0_lo, a1_lo]; the columns are bf16-exact so the
        # cast is lossless and the MXU runs a single native bf16 matmul.
        rhs = assign_ref[...].astype(jnp.bfloat16)                     # (N, 4)
        # int8 0/1 adjacency -> bf16 exactly, right at the MXU (no f32 copy).
        adj_bf = adj_ref[...].astype(jnp.bfloat16)                     # (tn, N)
        t4 = jnp.dot(adj_bf, rhs, preferred_element_type=jnp.float32)  # (tn, 4)
        r = t4[:, 0:2] + t4[:, 2:4]                                    # Adj_tile @ [a0, a1]

        row0 = pl.multiple_of(t * tile_n, tile_n)
        a_blk = assign_ref[pl.ds(row0, tile_n), :]                     # (tn, 4) f32
        a_t = a_blk[:, 0:2] + a_blk[:, 2:4]                            # exact [a0, a1]
        m0 = a_t * r[:, 0:1]                                           # [a0*r0, a1*r0]
        m1 = a_t * r[:, 1:2]                                           # [a0*r1, a1*r1]
        p0 = jnp.sum(m0, axis=0, keepdims=True)                        # (1, 2)
        p1 = jnp.sum(m1, axis=0, keepdims=True)                        # (1, 2)
        cacc[...] += (jnp.where(lane == 0, p0[:, 0:1], 0.0)            # c00
                      + jnp.where(lane == 1, p1[:, 0:1], 0.0)          # c01
                      + jnp.where(lane == 2, p0[:, 1:2], 0.0)          # c10
                      + jnp.where(lane == 3, p1[:, 1:2], 0.0))         # c11

        @pl.when(t == num_tiles - 1)
        def _finalize():
            c00 = cacc[0:1, 0:1]
            c01 = cacc[0:1, 1:2]
            c10 = cacc[0:1, 2:3]
            c11 = cacc[0:1, 3:4]
            # pos_penalty: diag of L1-row-normalized new_adj, MSE vs ones(2).
            d0 = c00 / jnp.maximum(jnp.abs(c00) + jnp.abs(c01), 1e-12)
            d1 = c11 / jnp.maximum(jnp.abs(c10) + jnp.abs(c11), 1e-12)
            pos = 0.5 * ((d0 - 1.0) ** 2 + (d1 - 1.0) ** 2)
            pos_ref[...] = jnp.where(lane == 0, pos, 0.0)

    return kernel


def sage_forward(x, adj, w1, b1, w2, b2, gumbel, unif, *, node_tile=None, adj_tile=None):
    x = jnp.asarray(x, jnp.float32)
    n, d = x.shape
    f1 = w1.shape[1]
    assert adj.shape == (n, n)
    assert w2.shape == (f1, 2)
    w1 = jnp.asarray(w1, jnp.float32)
    w2 = jnp.asarray(w2, jnp.float32)
    b1 = jnp.asarray(b1, jnp.float32).reshape(1, f1)
    b2 = jnp.asarray(b2, jnp.float32).reshape(1, 2)
    gumbel = jnp.asarray(gumbel, jnp.float32)
    unif = jnp.asarray(unif, jnp.float32)
    # Adjacency streamed as int8 (0/1 exact): 4x less HBM traffic than f32, 2x less
    # than bf16, in the HBM-bound adjacency pass.  Callers should pass int8 directly
    # to avoid the one-time cast.
    adj_i8 = adj if adj.dtype == jnp.int8 else adj.astype(jnp.int8)

    budget = _vmem_budget_bytes()
    lane_d = _pad(d, 128)

    # --- node pass tile picker (x, unif, gumbel, assignment-out double buffers) ---
    fixed_a = (2 * 4 * (_pad(d, 8) * _pad(f1, 128) + 8 * _pad(f1, 128)
                        + _pad(f1, 8) * 128 + 8 * 128)          # weight buffers
               + 4 * (8 * lane_d + 128)                          # feat_acc + sacc
               + 2 * 4 * (3 * 8 * lane_d + 8 * 128)              # output buffers
               + (4 << 20))                                      # temporaries headroom

    def fits_a(t):
        per_tile = 2 * 4 * t * (2 * lane_d + 128 + 128)          # x, unif, gumbel, assign
        return fixed_a + per_tile <= budget

    # --- adjacency pass tile picker (int8 adj double buffer + bf16 cast temp) ---
    lane_n = _pad(n, 128)
    fixed_b = (2 * 4 * _pad(n, 8) * 128                          # resident assignment
               + 2 * _pad(n, 16) * 128                           # bf16 RHS temp
               + 4 * 128 * 3 * 8                                 # cacc + pos buffers
               + (4 << 20))

    def fits_b(t):
        per_tile = 2 * _pad(t, 32) * lane_n + 2 * _pad(t, 16) * lane_n
        return fixed_b + per_tile <= budget

    tile_a = node_tile if node_tile is not None else _pick_tile(n, fits_a, (8,))
    tile_b = adj_tile if adj_tile is not None else _pick_tile(n, fits_b, (32, 8))
    assert n % tile_a == 0 and (tile_a == n or tile_a % 8 == 0)
    assert n % tile_b == 0 and (tile_b == n or tile_b % 8 == 0)

    # ---------------- Kernel A: node-statistics pass ----------------
    node_kernel = _make_node_kernel(n, tile_a, d)
    assign4, gf, ngf, sub, scal = pl.pallas_call(
        node_kernel,
        out_shape=(
            jax.ShapeDtypeStruct((n, 4), jnp.float32),   # assignment hi/lo handover
            jax.ShapeDtypeStruct((1, d), jnp.float32),   # graph_feature
            jax.ShapeDtypeStruct((1, d), jnp.float32),   # noisy_graph_feature
            jax.ShapeDtypeStruct((1, d), jnp.float32),   # subgraph_representation
            jax.ShapeDtypeStruct((1, 128), jnp.float32), # packed scalars (kl, preserve)
        ),
        grid_spec=pltpu.PrefetchScalarGridSpec(
            num_scalar_prefetch=0,
            grid=(n // tile_a,),
            in_specs=[
                pl.BlockSpec((tile_a, d), lambda t: (t, 0)),     # x
                pl.BlockSpec((tile_a, 2), lambda t: (t, 0)),     # gumbel noise
                pl.BlockSpec((tile_a, d), lambda t: (t, 0)),     # uniform noise
                pl.BlockSpec((d, f1), lambda t: (0, 0)),         # w1
                pl.BlockSpec((1, f1), lambda t: (0, 0)),         # b1
                pl.BlockSpec((f1, 2), lambda t: (0, 0)),         # w2
                pl.BlockSpec((1, 2), lambda t: (0, 0)),          # b2
            ],
            out_specs=[
                pl.BlockSpec((tile_a, 4), lambda t: (t, 0)),
                pl.BlockSpec((1, d), lambda t: (0, 0)),
                pl.BlockSpec((1, d), lambda t: (0, 0)),
                pl.BlockSpec((1, d), lambda t: (0, 0)),
                pl.BlockSpec((1, 128), lambda t: (0, 0)),
            ],
            scratch_shapes=[
                pltpu.VMEM((8, d), jnp.float32),     # per-feature accumulators (6 used)
                pltpu.VMEM((1, 128), jnp.float32),   # lane-packed scalar accumulators
            ]),
        compiler_params=pltpu.CompilerParams(
            dimension_semantics=("arbitrary",),
            vmem_limit_bytes=int(budget)),
    )(x, gumbel, unif, w1, b1, w2, b2)

    # ---------------- Kernel B: adjacency pass ----------------
    adj_kernel = _make_adj_kernel(n, tile_b)
    posvec = pl.pallas_call(
        adj_kernel,
        out_shape=jax.ShapeDtypeStruct((1, 128), jnp.float32),
        grid_spec=pltpu.PrefetchScalarGridSpec(
            num_scalar_prefetch=0,
            grid=(n // tile_b,),
            in_specs=[
                pl.BlockSpec((n, 4), lambda t: (0, 0)),          # assignment (resident)
                pl.BlockSpec((tile_b, n), lambda t: (t, 0)),     # adjacency rows (int8)
            ],
            out_specs=pl.BlockSpec((1, 128), lambda t: (0, 0)),
            scratch_shapes=[pltpu.VMEM((1, 128), jnp.float32)]),
        compiler_params=pltpu.CompilerParams(
            dimension_semantics=("arbitrary",),
            vmem_limit_bytes=int(budget)),
    )(assign4, adj_i8)

    # TODO(synk): on v7x the node-tile axis could be split across the two TensorCores
    # (core_parallel / pl.core_map) with per-core partial accumulators; single-core here.
    return gf, ngf, sub, posvec[0, 0], scal[0, 0], scal[0, 1]


def sage_reference(x, adj, w1, b1, w2, b2, gumbel, unif):
    """Pure-JAX reference mirroring the torch forward (for correctness check)."""
    n = x.shape[0]
    mean = jnp.mean(x, axis=0, keepdims=True)
    std = jnp.std(x, axis=0, ddof=1, keepdims=True)
    h1 = jnp.tanh(x @ w1 + b1.reshape(1, -1))
    assignment = jax.nn.softmax(h1 @ w2 + b2.reshape(1, -1), axis=1)
    gassign = jax.nn.softmax(assignment + gumbel, axis=-1)
    lp, ln = gassign[:, 0:1], gassign[:, 1:2]
    gf = jnp.mean(x, axis=0, keepdims=True)
    sub = jnp.mean(lp * x, axis=0, keepdims=True)
    nmean = lp * x + ln * mean
    nstd = ln * std
    noisy = nmean + unif * nstd
    ngf = jnp.mean(noisy, axis=0, keepdims=True)
    kl = 0.5 * nstd ** 2 / (std + EPS) ** 2 + jnp.sum(
        ((nmean - mean) / (std + EPS)) ** 2, axis=0, keepdims=True)
    kl_loss = jnp.mean(kl)
    new_adj = assignment.T @ adj @ assignment
    norm_adj = new_adj / jnp.maximum(
        jnp.sum(jnp.abs(new_adj), axis=1, keepdims=True), 1e-12)
    diag = jnp.diag(norm_adj)
    pos = jnp.mean((diag - 1.0) ** 2)
    pr = jnp.sum(assignment[:, 0] > 0.5) / n
    return gf, ngf, sub, pos, kl_loss, pr


if __name__ == "__main__":
    # Small, forward-consistent shapes: N=128 nodes, dim_hidden=32, MLP 32->16->2.
    N, D, F1, F2 = 128, 32, 16, 2
    key = jax.random.PRNGKey(0)
    k_x, k_w1, k_b1, k_w2, k_b2, k_g, k_u = jax.random.split(key, 7)

    x = jax.random.normal(k_x, (N, D), dtype=jnp.float32)

    # Dense 0/1 adjacency (what to_dense_adj builds from edge_index, batch=zeros):
    # a ring plus symmetric chords.  Built directly as int8 so no host-side cast.
    idx = np.arange(N)
    adj_np = np.zeros((N, N), dtype=np.int8)
    adj_np[idx, (idx + 1) % N] = 1
    adj_np[idx, (idx - 1) % N] = 1
    adj_np[idx, (idx + 7) % N] = 1
    adj_np[(idx + 7) % N, idx] = 1
    adj = jnp.asarray(adj_np)

    # Deterministic Linear parameters (torch-style uniform(-1/sqrt(fan_in), ..)).
    b1_bound = 1.0 / np.sqrt(D)
    b2_bound = 1.0 / np.sqrt(F1)
    w1 = jax.random.uniform(k_w1, (D, F1), jnp.float32, -b1_bound, b1_bound)
    b1 = jax.random.uniform(k_b1, (1, F1), jnp.float32, -b1_bound, b1_bound)
    w2 = jax.random.uniform(k_w2, (F1, F2), jnp.float32, -b2_bound, b2_bound)
    b2 = jax.random.uniform(k_b2, (1, F2), jnp.float32, -b2_bound, b2_bound)

    # Pre-sampled randomness: standard Gumbel noise (F.gumbel_softmax) and U[0,1)
    # (torch.rand_like) -- passed as kernel inputs so the kernel is deterministic.
    gumbel = jax.random.gumbel(k_g, (N, F2), dtype=jnp.float32)
    unif = jax.random.uniform(k_u, (N, D), dtype=jnp.float32)

    ref = sage_reference(x, adj.astype(jnp.float32), w1, b1, w2, b2, gumbel, unif)

    # Exercise both the budget-driven small-graph fast path (single tile per pass)
    # and the multi-tile streaming/accumulation path.
    for node_tile, adj_tile in ((None, None), (32, 32)):
        outs = sage_forward(x, adj, w1, b1, w2, b2, gumbel, unif,
                            node_tile=node_tile, adj_tile=adj_tile)
        outs = jax.block_until_ready(outs)
        for got, want in zip(outs, ref):
            np.testing.assert_allclose(np.asarray(got), np.asarray(want),
                                       rtol=1e-3, atol=1e-3)

    # TODO(synk): the GNN backbone (model.get_emb) and model.readout are external to
    # this module; readout is assumed to be global mean pooling over a single graph.
    print("KERNEL_OK")
</pallas_src>

<mosaic_0001>
module attributes {stable_mosaic.version = 11 : i64} {
  func.func @kernel(%arg0: i32, %arg1: memref<128x32xf32, #tpu.memory_space<vmem>>, %arg2: memref<128x2xf32, #tpu.memory_space<vmem>>, %arg3: memref<128x32xf32, #tpu.memory_space<vmem>>, %arg4: memref<32x16xf32, #tpu.memory_space<vmem>>, %arg5: memref<1x16xf32, #tpu.memory_space<vmem>>, %arg6: memref<16x2xf32, #tpu.memory_space<vmem>>, %arg7: memref<1x2xf32, #tpu.memory_space<vmem>>, %arg8: memref<128x4xf32, #tpu.memory_space<vmem>>, %arg9: memref<1x32xf32, #tpu.memory_space<vmem>>, %arg10: memref<1x32xf32, #tpu.memory_space<vmem>>, %arg11: memref<1x32xf32, #tpu.memory_space<vmem>>, %arg12: memref<1x128xf32, #tpu.memory_space<vmem>>, %arg13: memref<8x32xf32, #tpu.memory_space<vmem>>, %arg14: memref<1x128xf32, #tpu.memory_space<vmem>>) attributes {dimension_semantics = [#tpu.dimension_semantics<arbitrary>], iteration_bounds = array<i64: 1>, scalar_prefetch = 0 : i64, scratch_operands = 2 : i64, tpu.core_type = #tpu.core_type<tc>, window_params = [{transform_indices = @transform_0, window_bounds = array<i64: 128, 32>}, {transform_indices = @transform_1, window_bounds = array<i64: 128, 2>}, {transform_indices = @transform_2, window_bounds = array<i64: 128, 32>}, {pipeline_mode = #tpu.pipeline_mode<synchronous>, transform_indices = @transform_3, window_bounds = array<i64: 32, 16>}, {pipeline_mode = #tpu.pipeline_mode<synchronous>, transform_indices = @transform_4, window_bounds = array<i64: 1, 16>}, {pipeline_mode = #tpu.pipeline_mode<synchronous>, transform_indices = @transform_5, window_bounds = array<i64: 16, 2>}, {pipeline_mode = #tpu.pipeline_mode<synchronous>, transform_indices = @transform_6, window_bounds = array<i64: 1, 2>}, {transform_indices = @transform_7, window_bounds = array<i64: 128, 4>}, {pipeline_mode = #tpu.pipeline_mode<synchronous>, transform_indices = @transform_8, window_bounds = array<i64: 1, 32>}, {pipeline_mode = #tpu.pipeline_mode<synchronous>, transform_indices = @transform_9, window_bounds = array<i64: 1, 32>}, {pipeline_mode = #tpu.pipeline_mode<synchronous>, transform_indices = @transform_10, window_bounds = array<i64: 1, 32>}, {pipeline_mode = #tpu.pipeline_mode<synchronous>, transform_indices = @transform_11, window_bounds = array<i64: 1, 128>}]} {
    %0 = tpu.iota {dimensions = array<i32: 1>} : vector<1x128xi32>
    %c0_i32 = arith.constant 0 : i32
    %1 = arith.cmpi eq, %arg0, %c0_i32 : i32
    %2 = arith.extui %1 : i1 to i32
    %c0_i32_0 = arith.constant 0 : i32
    %3 = arith.cmpi ne, %2, %c0_i32_0 : i32
    scf.if %3 {
      %cst_74 = arith.constant 0.000000e+00 : f32
      %138 = vector.broadcast %cst_74 : f32 to vector<8x32xf32>
      %c0_75 = arith.constant 0 : index
      %c0_76 = arith.constant 0 : index
      %139 = vector.load %arg13[%c0_75, %c0_76] : memref<8x32xf32, #tpu.memory_space<vmem>>, vector<8x32xf32>
      tpu.vector_store %arg13[%c0_75, %c0_76], %138 {strides = array<i32>} : memref<8x32xf32, #tpu.memory_space<vmem>>, vector<8x32xf32>,
      %cst_77 = arith.constant 0.000000e+00 : f32
      %140 = vector.broadcast %cst_77 : f32 to vector<1x128xf32>
      %c0_78 = arith.constant 0 : index
      %c0_79 = arith.constant 0 : index
      %141 = vector.load %arg14[%c0_78, %c0_79] : memref<1x128xf32, #tpu.memory_space<vmem>>, vector<1x128xf32>
      tpu.vector_store %arg14[%c0_78, %c0_79], %140 {strides = array<i32>} : memref<1x128xf32, #tpu.memory_space<vmem>>, vector<1x128xf32>,
    } else {
    }
    %c0 = arith.constant 0 : index
    %c0_1 = arith.constant 0 : index
    %4 = vector.load %arg1[%c0, %c0_1] : memref<128x32xf32, #tpu.memory_space<vmem>>, vector<128x32xf32>
    %c0_2 = arith.constant 0 : index
    %c0_3 = arith.constant 0 : index
    %5 = vector.load %arg3[%c0_2, %c0_3] : memref<128x32xf32, #tpu.memory_space<vmem>>, vector<128x32xf32>
    %c0_4 = arith.constant 0 : index
    %c0_5 = arith.constant 0 : index
    %6 = vector.load %arg4[%c0_4, %c0_5] : memref<32x16xf32, #tpu.memory_space<vmem>>, vector<32x16xf32>
    %cst = arith.constant dense<0.000000e+00> : vector<128x16xf32>
    %7 = tpu.matmul %4, %6, %cst {dimension_numbers = #tpu.dot_dimension_numbers<[1], [0], [0], [1], [0, 0, 1, 1], [], []>} : vector<128x32xf32>, vector<32x16xf32>, vector<128x16xf32> -> vector<128x16xf32>
    %c0_6 = arith.constant 0 : index
    %c0_7 = arith.constant 0 : index
    %8 = vector.load %arg5[%c0_6, %c0_7] : memref<1x16xf32, #tpu.memory_space<vmem>>, vector<1x16xf32>
    %9 = vector.broadcast %8 : vector<1x16xf32> to vector<128x16xf32>
    %10 = arith.addf %7, %9 : vector<128x16xf32>
    %11 = math.tanh %10 : vector<128x16xf32>
    %c0_8 = arith.constant 0 : index
    %c0_9 = arith.constant 0 : index
    %12 = vector.load %arg6[%c0_8, %c0_9] : memref<16x2xf32, #tpu.memory_space<vmem>>, vector<16x2xf32>
    %cst_10 = arith.constant dense<0.000000e+00> : vector<128x2xf32>
    %13 = tpu.matmul %11, %12, %cst_10 {dimension_numbers = #tpu.dot_dimension_numbers<[1], [0], [0], [1], [0, 0, 1, 1], [], []>} : vector<128x16xf32>, vector<16x2xf32>, vector<128x2xf32> -> vector<128x2xf32>
    %c0_11 = arith.constant 0 : index
    %c0_12 = arith.constant 0 : index
    %14 = vector.load %arg7[%c0_11, %c0_12] : memref<1x2xf32, #tpu.memory_space<vmem>>, vector<1x2xf32>
    %15 = vector.broadcast %14 : vector<1x2xf32> to vector<128x2xf32>
    %16 = arith.addf %13, %15 : vector<128x2xf32>
    %17 = vector.extract_strided_slice %16 {offsets = [0, 0], sizes = [128, 1], strides = [1, 1]} : vector<128x2xf32> to vector<128x1xf32>
    %18 = vector.extract_strided_slice %16 {offsets = [0, 1], sizes = [128, 1], strides = [1, 1]} : vector<128x2xf32> to vector<128x1xf32>
    %19 = arith.subf %17, %18 : vector<128x1xf32>
    %cst_13 = arith.constant 5.000000e-01 : f32
    %20 = vector.broadcast %cst_13 : f32 to vector<128x1xf32>
    %21 = arith.mulf %20, %19 : vector<128x1xf32>
    %22 = math.tanh %21 : vector<128x1xf32>
    %cst_14 = arith.constant 5.000000e-01 : f32
    %23 = vector.broadcast %cst_14 : f32 to vector<128x1xf32>
    %24 = arith.mulf %23, %22 : vector<128x1xf32>
    %cst_15 = arith.constant 5.000000e-01 : f32
    %25 = vector.broadcast %cst_15 : f32 to vector<128x1xf32>
    %26 = arith.addf %24, %25 : vector<128x1xf32>
    %cst_16 = arith.constant 1.000000e+00 : f32
    %27 = vector.broadcast %cst_16 : f32 to vector<128x1xf32>
    %28 = arith.subf %27, %26 : vector<128x1xf32>
    %c0_17 = arith.constant 0 : index
    %c0_18 = arith.constant 0 : index
    %29 = vector.load %arg2[%c0_17, %c0_18] : memref<128x2xf32, #tpu.memory_space<vmem>>, vector<128x1xf32>
    %c0_19 = arith.constant 0 : index
    %c1 = arith.constant 1 : index
    %30 = vector.load %arg2[%c0_19, %c1] : memref<128x2xf32, #tpu.memory_space<vmem>>, vector<128x1xf32>
    %31 = arith.subf %29, %30 : vector<128x1xf32>
    %32 = arith.subf %26, %28 : vector<128x1xf32>
    %33 = arith.addf %32, %31 : vector<128x1xf32>
    %cst_20 = arith.constant 5.000000e-01 : f32
    %34 = vector.broadcast %cst_20 : f32 to vector<128x1xf32>
    %35 = arith.mulf %34, %33 : vector<128x1xf32>
    %36 = math.tanh %35 : vector<128x1xf32>
    %cst_21 = arith.constant 5.000000e-01 : f32
    %37 = vector.broadcast %cst_21 : f32 to vector<128x1xf32>
    %38 = arith.mulf %37, %36 : vector<128x1xf32>
    %cst_22 = arith.constant 5.000000e-01 : f32
    %39 = vector.broadcast %cst_22 : f32 to vector<128x1xf32>
    %40 = arith.addf %38, %39 : vector<128x1xf32>
    %cst_23 = arith.constant 1.000000e+00 : f32
    %41 = vector.broadcast %cst_23 : f32 to vector<128x1xf32>
    %42 = arith.subf %41, %40 : vector<128x1xf32>
    %43 = arith.truncf %26 : vector<128x1xf32> to vector<128x1xbf16>
    %44 = arith.extf %43 : vector<128x1xbf16> to vector<128x1xf32>
    %45 = arith.truncf %28 : vector<128x1xf32> to vector<128x1xbf16>
    %46 = arith.extf %45 : vector<128x1xbf16> to vector<128x1xf32>
    %c0_24 = arith.constant 0 : index
    %c0_25 = arith.constant 0 : index
    %47 = vector.load %arg8[%c0_24, %c0_25] : memref<128x4xf32, #tpu.memory_space<vmem>>, vector<128x1xf32>
    tpu.vector_store %arg8[%c0_24, %c0_25], %44 {strides = array<i32>} : memref<128x4xf32, #tpu.memory_space<vmem>>, vector<128x1xf32>,
    %c0_26 = arith.constant 0 : index
    %c1_27 = arith.constant 1 : index
    %48 = vector.load %arg8[%c0_26, %c1_27] : memref<128x4xf32, #tpu.memory_space<vmem>>, vector<128x1xf32>
    tpu.vector_store %arg8[%c0_26, %c1_27], %46 {strides = array<i32>} : memref<128x4xf32, #tpu.memory_space<vmem>>, vector<128x1xf32>,
    %49 = arith.subf %26, %44 : vector<128x1xf32>
    %c0_28 = arith.constant 0 : index
    %c2 = arith.constant 2 : index
    %50 = vector.load %arg8[%c0_28, %c2] : memref<128x4xf32, #tpu.memory_space<vmem>>, vector<128x1xf32>
    tpu.vector_store %arg8[%c0_28, %c2], %49 {strides = array<i32>} : memref<128x4xf32, #tpu.memory_space<vmem>>, vector<128x1xf32>,
    %51 = arith.subf %28, %46 : vector<128x1xf32>
    %c0_29 = arith.constant 0 : index
    %c3 = arith.constant 3 : index
    %52 = vector.load %arg8[%c0_29, %c3] : memref<128x4xf32, #tpu.memory_space<vmem>>, vector<128x1xf32>
    tpu.vector_store %arg8[%c0_29, %c3], %51 {strides = array<i32>} : memref<128x4xf32, #tpu.memory_space<vmem>>, vector<128x1xf32>,
    %53 = arith.mulf %4, %4 : vector<128x32xf32>
    %54 = vector.broadcast %40 : vector<128x1xf32> to vector<128x32xf32>
    %55 = arith.mulf %54, %4 : vector<128x32xf32>
    %56 = vector.broadcast %40 : vector<128x1xf32> to vector<128x32xf32>
    %57 = arith.mulf %56, %55 : vector<128x32xf32>
    %c0_30 = arith.constant 0 : index
    %c0_31 = arith.constant 0 : index
    %58 = vector.load %arg13[%c0_30, %c0_31] : memref<8x32xf32, #tpu.memory_space<vmem>>, vector<1x32xf32>
    %cst_32 = arith.constant dense<0.000000e+00> : vector<32xf32>
    %59 = vector.multi_reduction <add>, %4, %cst_32 [0] : vector<128x32xf32> to vector<32xf32>
    %60 = vector.shape_cast %59 : vector<32xf32> to vector<1x32xf32>
    %61 = arith.addf %58, %60 : vector<1x32xf32>
    %c0_33 = arith.constant 0 : index
    %c0_34 = arith.constant 0 : index
    %62 = vector.load %arg13[%c0_33, %c0_34] : memref<8x32xf32, #tpu.memory_space<vmem>>, vector<1x32xf32>
    tpu.vector_store %arg13[%c0_33, %c0_34], %61 {strides = array<i32>} : memref<8x32xf32, #tpu.memory_space<vmem>>, vector<1x32xf32>,
    %c1_35 = arith.constant 1 : index
    %c0_36 = arith.constant 0 : index
    %63 = vector.load %arg13[%c1_35, %c0_36] : memref<8x32xf32, #tpu.memory_space<vmem>>, vector<1x32xf32>
    %cst_37 = arith.constant dense<0.000000e+00> : vector<32xf32>
    %64 = vector.multi_reduction <add>, %53, %cst_37 [0] : vector<128x32xf32> to vector<32xf32>
    %65 = vector.shape_cast %64 : vector<32xf32> to vector<1x32xf32>
    %66 = arith.addf %63, %65 : vector<1x32xf32>
    %c1_38 = arith.constant 1 : index
    %c0_39 = arith.constant 0 : index
    %67 = vector.load %arg13[%c1_38, %c0_39] : memref<8x32xf32, #tpu.memory_space<vmem>>, vector<1x32xf32>
    tpu.vector_store %arg13[%c1_38, %c0_39], %66 {strides = array<i32>} : memref<8x32xf32, #tpu.memory_space<vmem>>, vector<1x32xf32>,
    %c2_40 = arith.constant 2 : index
    %c0_41 = arith.constant 0 : index
    %68 = vector.load %arg13[%c2_40, %c0_41] : memref<8x32xf32, #tpu.memory_space<vmem>>, vector<1x32xf32>
    %cst_42 = arith.constant dense<0.000000e+00> : vector<32xf32>
    %69 = vector.multi_reduction <add>, %55, %cst_42 [0] : vector<128x32xf32> to vector<32xf32>
    %70 = vector.shape_cast %69 : vector<32xf32> to vector<1x32xf32>
    %71 = arith.addf %68, %70 : vector<1x32xf32>
    %c2_43 = arith.constant 2 : index
    %c0_44 = arith.constant 0 : index
    %72 = vector.load %arg13[%c2_43, %c0_44] : memref<8x32xf32, #tpu.memory_space<vmem>>, vector<1x32xf32>
    tpu.vector_store %arg13[%c2_43, %c0_44], %71 {strides = array<i32>} : memref<8x32xf32, #tpu.memory_space<vmem>>, vector<1x32xf32>,
    %c3_45 = arith.constant 3 : index
    %c0_46 = arith.constant 0 : index
    %73 = vector.load %arg13[%c3_45, %c0_46] : memref<8x32xf32, #tpu.memory_space<vmem>>, vector<1x32xf32>
    %74 = vector.broadcast %42 : vector<128x1xf32> to vector<128x32xf32>
    %75 = arith.mulf %5, %74 : vector<128x32xf32>
    %cst_47 = arith.constant dense<0.000000e+00> : vector<32xf32>
    %76 = vector.multi_reduction <add>, %75, %cst_47 [0] : vector<128x32xf32> to vector<32xf32>
    %77 = vector.shape_cast %76 : vector<32xf32> to vector<1x32xf32>
    %78 = arith.addf %73, %77 : vector<1x32xf32>
    %c3_48 = arith.constant 3 : index
    %c0_49 = arith.constant 0 : index
    %79 = vector.load %arg13[%c3_48, %c0_49] : memref<8x32xf32, #tpu.memory_space<vmem>>, vector<1x32xf32>
    tpu.vector_store %arg13[%c3_48, %c0_49], %78 {strides = array<i32>} : memref<8x32xf32, #tpu.memory_space<vmem>>, vector<1x32xf32>,
    %c4 = arith.constant 4 : index
    %c0_50 = arith.constant 0 : index
    %80 = vector.load %arg13[%c4, %c0_50] : memref<8x32xf32, #tpu.memory_space<vmem>>, vector<1x32xf32>
    %cst_51 = arith.constant dense<0.000000e+00> : vector<32xf32>
    %81 = vector.multi_reduction <add>, %57, %cst_51 [0] : vector<128x32xf32> to vector<32xf32>
    %82 = vector.shape_cast %81 : vector<32xf32> to vector<1x32xf32>
    %83 = arith.addf %80, %82 : vector<1x32xf32>
    %c4_52 = arith.constant 4 : index
    %c0_53 = arith.constant 0 : index
    %84 = vector.load %arg13[%c4_52, %c0_53] : memref<8x32xf32, #tpu.memory_space<vmem>>, vector<1x32xf32>
    tpu.vector_store %arg13[%c4_52, %c0_53], %83 {strides = array<i32>} : memref<8x32xf32, #tpu.memory_space<vmem>>, vector<1x32xf32>,
    %c5 = arith.constant 5 : index
    %c0_54 = arith.constant 0 : index
    %85 = vector.load %arg13[%c5, %c0_54] : memref<8x32xf32, #tpu.memory_space<vmem>>, vector<1x32xf32>
    %86 = arith.mulf %57, %4 : vector<128x32xf32>
    %cst_55 = arith.constant dense<0.000000e+00> : vector<32xf32>
    %87 = vector.multi_reduction <add>, %86, %cst_55 [0] : vector<128x32xf32> to vector<32xf32>
    %88 = vector.shape_cast %87 : vector<32xf32> to vector<1x32xf32>
    %89 = arith.addf %85, %88 : vector<1x32xf32>
    %c5_56 = arith.constant 5 : index
    %c0_57 = arith.constant 0 : index
    %90 = vector.load %arg13[%c5_56, %c0_57] : memref<8x32xf32, #tpu.memory_space<vmem>>, vector<1x32xf32>
    tpu.vector_store %arg13[%c5_56, %c0_57], %89 {strides = array<i32>} : memref<8x32xf32, #tpu.memory_space<vmem>>, vector<1x32xf32>,
    %cst_58 = arith.constant dense<0.000000e+00> : vector<1xf32>
    %91 = vector.multi_reduction <add>, %42, %cst_58 [0] : vector<128x1xf32> to vector<1xf32>
    %92 = vector.shape_cast %91 : vector<1xf32> to vector<1x1xf32>
    %93 = arith.mulf %42, %42 : vector<128x1xf32>
    %cst_59 = arith.constant dense<0.000000e+00> : vector<1xf32>
    %94 = vector.multi_reduction <add>, %93, %cst_59 [0] : vector<128x1xf32> to vector<1xf32>
    %95 = vector.shape_cast %94 : vector<1xf32> to vector<1x1xf32>
    %96 = arith.mulf %40, %40 : vector<128x1xf32>
    %cst_60 = arith.constant dense<0.000000e+00> : vector<1xf32>
    %97 = vector.multi_reduction <add>, %96, %cst_60 [0] : vector<128x1xf32> to vector<1xf32>
    %98 = vector.shape_cast %97 : vector<1xf32> to vector<1x1xf32>
    %cst_61 = arith.constant 5.000000e-01 : f32
    %99 = vector.broadcast %cst_61 : f32 to vector<128x1xf32>
    %100 = arith.cmpf ogt, %26, %99 : vector<128x1xf32>
    %101 = arith.extui %100 : vector<128x1xi1> to vector<128x1xi32>
    %102 = arith.sitofp %101 : vector<128x1xi32> to vector<128x1xf32>
    %cst_62 = arith.constant dense<0.000000e+00> : vector<1xf32>
    %103 = vector.multi_reduction <add>, %102, %cst_62 [0] : vector<128x1xf32> to vector<1xf32>
    %104 = vector.shape_cast %103 : vector<1xf32> to vector<1x1xf32>
    %c0_63 = arith.constant 0 : index
    %c0_64 = arith.constant 0 : index
    %105 = vector.load %arg14[%c0_63, %c0_64] : memref<1x128xf32, #tpu.memory_space<vmem>>, vector<1x128xf32>
    %c0_i32_65 = arith.constant 0 : i32
    %106 = vector.broadcast %c0_i32_65 : i32 to vector<1x128xi32>
    %107 = arith.cmpi eq, %0, %106 : vector<1x128xi32>
    %cst_66 = arith.constant 0.000000e+00 : f32
    %108 = vector.shape_cast %92 : vector<1x1xf32> to vector<1x1xf32>
    %109 = vector.broadcast %108 : vector<1x1xf32> to vector<1x128xf32>
    %110 = vector.broadcast %cst_66 : f32 to vector<1x128xf32>
    %111 = arith.select %107, %109, %110 : vector<1x128xi1>, vector<1x128xf32>
    %c1_i32 = arith.constant 1 : i32
    %112 = vector.broadcast %c1_i32 : i32 to vector<1x128xi32>
    %113 = arith.cmpi eq, %0, %112 : vector<1x128xi32>
    %cst_67 = arith.constant 0.000000e+00 : f32
    %114 = vector.shape_cast %95 : vector<1x1xf32> to vector<1x1xf32>
    %115 = vector.broadcast %114 : vector<1x1xf32> to vector<1x128xf32>
    %116 = vector.broadcast %cst_67 : f32 to vector<1x128xf32>
    %117 = arith.select %113, %115, %116 : vector<1x128xi1>, vector<1x128xf32>
    %118 = arith.addf %111, %117 : vector<1x128xf32>
    %c2_i32 = arith.constant 2 : i32
    %119 = vector.broadcast %c2_i32 : i32 to vector<1x128xi32>
    %120 = arith.cmpi eq, %0, %119 : vector<1x128xi32>
    %cst_68 = arith.constant 0.000000e+00 : f32
    %121 = vector.shape_cast %98 : vector<1x1xf32> to vector<1x1xf32>
    %122 = vector.broadcast %121 : vector<1x1xf32> to vector<1x128xf32>
    %123 = vector.broadcast %cst_68 : f32 to vector<1x128xf32>
    %124 = arith.select %120, %122, %123 : vector<1x128xi1>, vector<1x128xf32>
    %125 = arith.addf %118, %124 : vector<1x128xf32>
    %c3_i32 = arith.constant 3 : i32
    %126 = vector.broadcast %c3_i32 : i32 to vector<1x128xi32>
    %127 = arith.cmpi eq, %0, %126 : vector<1x128xi32>
    %cst_69 = arith.constant 0.000000e+00 : f32
    %128 = vector.shape_cast %104 : vector<1x1xf32> to vector<1x1xf32>
    %129 = vector.broadcast %128 : vector<1x1xf32> to vector<1x128xf32>
    %130 = vector.broadcast %cst_69 : f32 to vector<1x128xf32>
    %131 = arith.select %127, %129, %130 : vector<1x128xi1>, vector<1x128xf32>
    %132 = arith.addf %125, %131 : vector<1x128xf32>
    %133 = arith.addf %105, %132 : vector<1x128xf32>
    %c0_70 = arith.constant 0 : index
    %c0_71 = arith.constant 0 : index
    %134 = vector.load %arg14[%c0_70, %c0_71] : memref<1x128xf32, #tpu.memory_space<vmem>>, vector<1x128xf32>
    tpu.vector_store %arg14[%c0_70, %c0_71], %133 {strides = array<i32>} : memref<1x128xf32, #tpu.memory_space<vmem>>, vector<1x128xf32>,
    %c0_i32_72 = arith.constant 0 : i32
    %135 = arith.cmpi eq, %arg0, %c0_i32_72 : i32
    %136 = arith.extui %135 : i1 to i32
    %c0_i32_73 = arith.constant 0 : i32
    %137 = arith.cmpi ne, %136, %c0_i32_73 : i32
    scf.if %137 {
      %c0_74 = arith.constant 0 : index
      %c0_75 = arith.constant 0 : index
      %138 = vector.load %arg13[%c0_74, %c0_75] : memref<8x32xf32, #tpu.memory_space<vmem>>, vector<1x32xf32>
      %c1_76 = arith.constant 1 : index
      %c0_77 = arith.constant 0 : index
      %139 = vector.load %arg13[%c1_76, %c0_77] : memref<8x32xf32, #tpu.memory_space<vmem>>, vector<1x32xf32>
      %c2_78 = arith.constant 2 : index
      %c0_79 = arith.constant 0 : index
      %140 = vector.load %arg13[%c2_78, %c0_79] : memref<8x32xf32, #tpu.memory_space<vmem>>, vector<1x32xf32>
      %c3_80 = arith.constant 3 : index
      %c0_81 = arith.constant 0 : index
      %141 = vector.load %arg13[%c3_80, %c0_81] : memref<8x32xf32, #tpu.memory_space<vmem>>, vector<1x32xf32>
      %c4_82 = arith.constant 4 : index
      %c0_83 = arith.constant 0 : index
      %142 = vector.load %arg13[%c4_82, %c0_83] : memref<8x32xf32, #tpu.memory_space<vmem>>, vector<1x32xf32>
      %c5_84 = arith.constant 5 : index
      %c0_85 = arith.constant 0 : index
      %143 = vector.load %arg13[%c5_84, %c0_85] : memref<8x32xf32, #tpu.memory_space<vmem>>, vector<1x32xf32>
      %c0_86 = arith.constant 0 : index
      %c0_87 = arith.constant 0 : index
      %144 = vector.load %arg14[%c0_86, %c0_87] : memref<1x128xf32, #tpu.memory_space<vmem>>, vector<1x1xf32>
      %c0_88 = arith.constant 0 : index
      %c1_89 = arith.constant 1 : index
      %145 = vector.load %arg14[%c0_88, %c1_89] : memref<1x128xf32, #tpu.memory_space<vmem>>, vector<1x1xf32>
      %c0_90 = arith.constant 0 : index
      %c2_91 = arith.constant 2 : index
      %146 = vector.load %arg14[%c0_90, %c2_91] : memref<1x128xf32, #tpu.memory_space<vmem>>, vector<1x1xf32>
      %c0_92 = arith.constant 0 : index
      %c3_93 = arith.constant 3 : index
      %147 = vector.load %arg14[%c0_92, %c3_93] : memref<1x128xf32, #tpu.memory_space<vmem>>, vector<1x1xf32>
      %cst_94 = arith.constant 7.812500e-03 : f32
      %148 = vector.broadcast %cst_94 : f32 to vector<1x32xf32>
      %149 = arith.mulf %138, %148 : vector<1x32xf32>
      %cst_95 = arith.constant 1.280000e+02 : f32
      %150 = vector.broadcast %cst_95 : f32 to vector<1x32xf32>
      %151 = arith.mulf %150, %149 : vector<1x32xf32>
      %152 = arith.mulf %151, %149 : vector<1x32xf32>
      %153 = arith.subf %139, %152 : vector<1x32xf32>
      %cst_96 = arith.constant 1.270000e+02 : f32
      %154 = vector.broadcast %cst_96 : f32 to vector<1x32xf32>
      %155 = arith.divf %153, %154 : vector<1x32xf32>
      %cst_97 = arith.constant 0.000000e+00 : f32
      %156 = vector.broadcast %cst_97 : f32 to vector<1x32xf32>
      %157 = arith.maximumf %155, %156 : vector<1x32xf32>
      %158 = math.sqrt %157 : vector<1x32xf32>
      %c0_98 = arith.constant 0 : index
      %c0_99 = arith.constant 0 : index
      %159 = vector.load %arg9[%c0_98, %c0_99] : memref<1x32xf32, #tpu.memory_space<vmem>>, vector<1x32xf32>
      tpu.vector_store %arg9[%c0_98, %c0_99], %149 {strides = array<i32>} : memref<1x32xf32, #tpu.memory_space<vmem>>, vector<1x32xf32>,
      %cst_100 = arith.constant 7.812500e-03 : f32
      %160 = vector.broadcast %cst_100 : f32 to vector<1x32xf32>
      %161 = arith.mulf %140, %160 : vector<1x32xf32>
      %c0_101 = arith.constant 0 : index
      %c0_102 = arith.constant 0 : index
      %162 = vector.load %arg11[%c0_101, %c0_102] : memref<1x32xf32, #tpu.memory_space<vmem>>, vector<1x32xf32>
      tpu.vector_store %arg11[%c0_101, %c0_102], %161 {strides = array<i32>} : memref<1x32xf32, #tpu.memory_space<vmem>>, vector<1x32xf32>,
      %163 = vector.broadcast %144 : vector<1x1xf32> to vector<1x32xf32>
      %164 = arith.mulf %149, %163 : vector<1x32xf32>
      %165 = arith.addf %140, %164 : vector<1x32xf32>
      %166 = arith.mulf %158, %141 : vector<1x32xf32>
      %167 = arith.addf %165, %166 : vector<1x32xf32>
      %cst_103 = arith.constant 7.812500e-03 : f32
      %168 = vector.broadcast %cst_103 : f32 to vector<1x32xf32>
      %169 = arith.mulf %167, %168 : vector<1x32xf32>
      %c0_104 = arith.constant 0 : index
      %c0_105 = arith.constant 0 : index
      %170 = vector.load %arg10[%c0_104, %c0_105] : memref<1x32xf32, #tpu.memory_space<vmem>>, vector<1x32xf32>
      tpu.vector_store %arg10[%c0_104, %c0_105], %169 {strides = array<i32>} : memref<1x32xf32, #tpu.memory_space<vmem>>, vector<1x32xf32>,
      %cst_106 = arith.constant 1.000000e-07 : f32
      %171 = vector.broadcast %cst_106 : f32 to vector<1x32xf32>
      %172 = arith.addf %158, %171 : vector<1x32xf32>
      %173 = arith.mulf %172, %172 : vector<1x32xf32>
      %cst_107 = arith.constant 1.000000e+00 : f32
      %174 = vector.broadcast %cst_107 : f32 to vector<1x32xf32>
      %175 = arith.divf %174, %173 : vector<1x32xf32>
      %cst_108 = arith.constant 5.000000e-01 : f32
      %176 = vector.broadcast %cst_108 : f32 to vector<1x1xf32>
      %177 = arith.mulf %176, %145 : vector<1x1xf32>
      %178 = arith.mulf %158, %158 : vector<1x32xf32>
      %179 = arith.mulf %178, %175 : vector<1x32xf32>
      %cst_109 = arith.constant dense<0.000000e+00> : vector<1xf32>
      %180 = vector.multi_reduction <add>, %179, %cst_109 [1] : vector<1x32xf32> to vector<1xf32>
      %181 = vector.shape_cast %180 : vector<1xf32> to vector<1x1xf32>
      %182 = arith.mulf %177, %181 : vector<1x1xf32>
      %cst_110 = arith.constant 2.000000e+00 : f32
      %183 = vector.broadcast %cst_110 : f32 to vector<1x32xf32>
      %184 = arith.mulf %183, %149 : vector<1x32xf32>
      %185 = arith.mulf %184, %142 : vector<1x32xf32>
      %186 = arith.subf %143, %185 : vector<1x32xf32>
      %187 = arith.mulf %149, %149 : vector<1x32xf32>
      %188 = vector.broadcast %146 : vector<1x1xf32> to vector<1x32xf32>
      %189 = arith.mulf %187, %188 : vector<1x32xf32>
      %190 = arith.addf %186, %189 : vector<1x32xf32>
      %191 = arith.mulf %190, %175 : vector<1x32xf32>
      %cst_111 = arith.constant dense<0.000000e+00> : vector<1xf32>
      %192 = vector.multi_reduction <add>, %191, %cst_111 [1] : vector<1x32xf32> to vector<1xf32>
      %193 = vector.shape_cast %192 : vector<1xf32> to vector<1x1xf32>
      %cst_112 = arith.constant 1.280000e+02 : f32
      %194 = vector.broadcast %cst_112 : f32 to vector<1x1xf32>
      %195 = arith.mulf %194, %193 : vector<1x1xf32>
      %196 = arith.addf %182, %195 : vector<1x1xf32>
      %cst_113 = arith.constant 4.096000e+03 : f32
      %197 = vector.broadcast %cst_113 : f32 to vector<1x1xf32>
      %198 = arith.divf %196, %197 : vector<1x1xf32>
      %cst_114 = arith.constant 7.812500e-03 : f32
      %199 = vector.broadcast %cst_114 : f32 to vector<1x1xf32>
      %200 = arith.mulf %147, %199 : vector<1x1xf32>
      %c0_i32_115 = arith.constant 0 : i32
      %201 = vector.broadcast %c0_i32_115 : i32 to vector<1x128xi32>
      %202 = arith.cmpi eq, %0, %201 : vector<1x128xi32>
      %cst_116 = arith.constant 0.000000e+00 : f32
      %203 = vector.shape_cast %198 : vector<1x1xf32> to vector<1x1xf32>
      %204 = vector.broadcast %203 : vector<1x1xf32> to vector<1x128xf32>
      %205 = vector.broadcast %cst_116 : f32 to vector<1x128xf32>
      %206 = arith.select %202, %204, %205 : vector<1x128xi1>, vector<1x128xf32>
      %c1_i32_117 = arith.constant 1 : i32
      %207 = vector.broadcast %c1_i32_117 : i32 to vector<1x128xi32>
      %208 = arith.cmpi eq, %0, %207 : vector<1x128xi32>
      %cst_118 = arith.constant 0.000000e+00 : f32
      %209 = vector.shape_cast %200 : vector<1x1xf32> to vector<1x1xf32>
      %210 = vector.broadcast %209 : vector<1x1xf32> to vector<1x128xf32>
      %211 = vector.broadcast %cst_118 : f32 to vector<1x128xf32>
      %212 = arith.select %208, %210, %211 : vector<1x128xi1>, vector<1x128xf32>
      %213 = arith.addf %206, %212 : vector<1x128xf32>
      %c0_119 = arith.constant 0 : index
      %c0_120 = arith.constant 0 : index
      %214 = vector.load %arg12[%c0_119, %c0_120] : memref<1x128xf32, #tpu.memory_space<vmem>>, vector<1x128xf32>
      tpu.vector_store %arg12[%c0_119, %c0_120], %213 {strides = array<i32>} : memref<1x128xf32, #tpu.memory_space<vmem>>, vector<1x128xf32>,
    } else {
    }
    return
  }
  func.func @transform_0(%arg0: i32) -> (i32, i32) {
    %c0_i32 = arith.constant 0 : i32
    %c0_i32_0 = arith.constant 0 : i32
    return %arg0, %c0_i32 : i32, i32
  }
  func.func @transform_1(%arg0: i32) -> (i32, i32) {
    %c0_i32 = arith.constant 0 : i32
    %c0_i32_0 = arith.constant 0 : i32
    return %arg0, %c0_i32 : i32, i32
  }
  func.func @transform_2(%arg0: i32) -> (i32, i32) {
    %c0_i32 = arith.constant 0 : i32
    %c0_i32_0 = arith.constant 0 : i32
    return %arg0, %c0_i32 : i32, i32
  }
  func.func @transform_3(%arg0: i32) -> (i32, i32) {
    %c0_i32 = arith.constant 0 : i32
    %c0_i32_0 = arith.constant 0 : i32
    %c0_i32_1 = arith.constant 0 : i32
    return %c0_i32, %c0_i32_0 : i32, i32
  }
  func.func @transform_4(%arg0: i32) -> (i32, i32) {
    %c0_i32 = arith.constant 0 : i32
    %c0_i32_0 = arith.constant 0 : i32
    %c0_i32_1 = arith.constant 0 : i32
    return %c0_i32, %c0_i32_0 : i32, i32
  }
  func.func @transform_5(%arg0: i32) -> (i32, i32) {
    %c0_i32 = arith.constant 0 : i32
    %c0_i32_0 = arith.constant 0 : i32
    %c0_i32_1 = arith.constant 0 : i32
    return %c0_i32, %c0_i32_0 : i32, i32
  }
  func.func @transform_6(%arg0: i32) -> (i32, i32) {
    %c0_i32 = arith.constant 0 : i32
    %c0_i32_0 = arith.constant 0 : i32
    %c0_i32_1 = arith.constant 0 : i32
    return %c0_i32, %c0_i32_0 : i32, i32
  }
  func.func @transform_7(%arg0: i32) -> (i32, i32) {
    %c0_i32 = arith.constant 0 : i32
    %c0_i32_0 = arith.constant 0 : i32
    return %arg0, %c0_i32 : i32, i32
  }
  func.func @transform_8(%arg0: i32) -> (i32, i32) {
    %c0_i32 = arith.constant 0 : i32
    %c0_i32_0 = arith.constant 0 : i32
    %c0_i32_1 = arith.constant 0 : i32
    return %c0_i32, %c0_i32_0 : i32, i32
  }
  func.func @transform_9(%arg0: i32) -> (i32, i32) {
    %c0_i32 = arith.constant 0 : i32
    %c0_i32_0 = arith.constant 0 : i32
    %c0_i32_1 = arith.constant 0 : i32
    return %c0_i32, %c0_i32_0 : i32, i32
  }
  func.func @transform_10(%arg0: i32) -> (i32, i32) {
    %c0_i32 = arith.constant 0 : i32
    %c0_i32_0 = arith.constant 0 : i32
    %c0_i32_1 = arith.constant 0 : i32
    return %c0_i32, %c0_i32_0 : i32, i32
  }
  func.func @transform_11(%arg0: i32) -> (i32, i32) {
    %c0_i32 = arith.constant 0 : i32
    %c0_i32_0 = arith.constant 0 : i32
    %c0_i32_1 = arith.constant 0 : i32
    return %c0_i32, %c0_i32_0 : i32, i32
  }
}

</mosaic_0001>

<bundles_post_ra>
// kernel: tpu_custom_call.1
= control target key start
LH: loop header
LB: loop body
LE: loop exit
PB: predicated region body
PF: predicated region fallthrough
CT: control target
= control target key end

     0   :  { %17 = vsyncpa [#allocation5], 0  ;;  %s4261_s0 = inlined_call_operand.vmem [shape: f32[128,32], index: 0, kind: input, shape index: {}]   ;;  %s4262_s1 = inlined_call_operand.vmem [shape: f32[128,2], index: 1, kind: input, shape index: {}]   ;;  %s4263_s2 = inlined_call_operand.vmem [shape: f32[128,32], index: 2, kind: input, shape index: {}]   ;;  %s4264_s3 = inlined_call_operand.vmem [shape: f32[32,16], index: 3, kind: input, shape index: {}]   ;;  %s4265_s4 = inlined_call_operand.vmem [shape: f32[1,16], index: 4, kind: input, shape index: {}]   ;;  %s4266_s5 = inlined_call_operand.vmem [shape: f32[16,2], index: 5, kind: input, shape index: {}]   ;;  %s4267_s6 = inlined_call_operand.vmem [shape: f32[1,2], index: 6, kind: input, shape index: {}]   ;;  %s4268_s7 = inlined_call_operand.vmem [shape: f32[128,4], index: 7, kind: output, shape index: {0}]   ;;  %s4269_s8 = inlined_call_operand.hbm [shape: f32[1,32], index: 8, kind: output, shape index: {1}]   ;;  %s4270_s9 = inlined_call_operand.hbm [shape: f32[1,32], index: 9, kind: output, shape index: {2}]   ;;  %s4271_s10 = inlined_call_operand.hbm [shape: f32[1,32], index: 10, kind: output, shape index: {3}]   ;;  %s4272_s11 = inlined_call_operand.hbm [shape: f32[1,128], index: 11, kind: output, shape index: {4}]  }
   0x1   :  { %18 = vsyncpa [#allocation7], 0  ;;  %v75_v0 = vld [vmem:[%s4264_s3] sm:$0xff]  ;;  %v76_v1 = vld [vmem:[%s4264_s3 + $0x8] sm:$0xff]  ;;  %vm40_vm0 = vcmask 261120   ;;  %v4280_v7 = vmov 0.0  }
   0x2   :  { %v77_v2 = vld [vmem:[%s4264_s3 + $0x10] sm:$0xff]  ;;  %v2255_v3 = vpack.c.bf16 %v76_v1, %v75_v0  ;;  %v78_v4 = vld [vmem:[%s4264_s3 + $0x18] sm:$0xff]  ;;  %v43_v5 = vld [vmem:[%s4261_s0] sm:$0xff]  ;;  %41 = vst.msk [vmem:[#allocation2] sm:$0xff] %vm40_vm0, %v4280_v7 }
   0x3   :  { %v44_v6 = vld [vmem:[%s4261_s0 + $0x8] sm:$0xff]  ;;  %42 = vst [vmem:[#allocation3] sm:$0x1] %v4280_v7  ;;  %v2259_v8 = vpack.c.bf16 %v78_v4, %v77_v2  ;;  %2203 = vmatprep.mubr.msk.f32.mxu0 %vm40_vm0, %v43_v5  ;;  %v1207_v9 = vmul.f32 %v43_v5, %v43_v5  ;;  %v1336_v10 = vsel %vm40_vm0, %v43_v5, 0.0  ;;  %v45_v12 = vld [vmem:[%s4261_s0 + $0x10] sm:$0xff]  ;;  %v46_v13 = vld [vmem:[%s4261_s0 + $0x18] sm:$0xff] }
   0x4   :  { %v1208_v11 = vmul.f32 %v44_v6, %v44_v6  ;;  %2256 = vmatprep.subr.bf16.mxu0 %v2255_v3  ;;  %v1337_v14 = vsel %vm40_vm0, %v44_v6, 0.0  ;;  %v1209_v15 = vmul.f32 %v45_v12, %v45_v12  ;;  %v1339_v16 = vsel %vm40_vm0, %v45_v12, 0.0  ;;  %v47_v21 = vld [vmem:[%s4261_s0 + $0x20] sm:$0xff]  ;;  %v48_v26 = vld [vmem:[%s4261_s0 + $0x28] sm:$0xff] }
   0x5   :  { %v1210_v17 = vmul.f32 %v46_v13, %v46_v13  ;;  %2258 = vmatpush3.bf16.msra.mxu0 %v2255_v3  ;;  %v1377_v18 = vsel %vm40_vm0, %v1207_v9, 0.0  ;;  %v1338_v19 = vadd.f32 %v1337_v14, %v1336_v10  ;;  %v1341_v24 = vsel %vm40_vm0, %v46_v13, 0.0 }
   0x6   :  { %v1378_v20 = vsel %vm40_vm0, %v1208_v11, 0.0  ;;  %2260 = vmatprep.subr.bf16.mxu0 %v2259_v8  ;;  %v1380_v23 = vsel %vm40_vm0, %v1209_v15, 0.0  ;;  %v1211_v25 = vmul.f32 %v47_v21, %v47_v21  ;;  %v1212_v29 = vmul.f32 %v48_v26, %v48_v26 }
   0x7   :  { %v1379_v22 = vadd.f32 %v1378_v20, %v1377_v18  ;;  %v1340_v27 = vadd.f32 %v1339_v16, %v1338_v19  ;;  %v1382_v28 = vsel %vm40_vm0, %v1210_v17, 0.0 }
   0x8   :  { %19 = vsyncpa [#allocation10], 0  ;;  %v1343_v31 = vsel %vm40_vm0, %v47_v21, 0.0  ;;  %v49_v32 = vld [vmem:[%s4261_s0 + $0x30] sm:$0xff]  ;;  %v1384_v34 = vsel %vm40_vm0, %v1211_v25, 0.0  ;;  %v1345_v37 = vsel %vm40_vm0, %v48_v26, 0.0 }
   0x9   :  { %v1381_v30 = vadd.f32 %v1380_v23, %v1379_v22  ;;  %2262 = vmatpush3.bf16.msra.mxu0 %v2259_v8  ;;  %v1342_v33 = vadd.f32 %v1341_v24, %v1340_v27  ;;  %v1213_v35 = vmul.f32 %v49_v32, %v49_v32  ;;  %v50_v38 = vld [vmem:[%s4261_s0 + $0x38] sm:$0xff]  ;;  %v1386_v40 = vsel %vm40_vm0, %v1212_v29, 0.0  ;;  %v51_v44 = vld [vmem:[%s4261_s0 + $0x40] sm:$0xff]  ;;  %v52_v50 = vld [vmem:[%s4261_s0 + $0x48] sm:$0xff]  ;;  %s2538_s25 = smov 127   ;;  %s2541_s30 = smov 2  }
   0xa   :  { %v1214_v41 = vmul.f32 %v50_v38, %v50_v38  ;;  %v1347_v43 = vsel %vm40_vm0, %v49_v32, 0.0  ;;  %v1215_v47 = vmul.f32 %v51_v44, %v51_v44  ;;  %v1349_v49 = vsel %vm40_vm0, %v50_v38, 0.0  ;;  %v53_v56 = vld [vmem:[%s4261_s0 + $0x50] sm:$0xff]  ;;  %v54_v62 = vld [vmem:[%s4261_s0 + $0x58] sm:$0xff]  ;;  %v55_v4 = vld [vmem:[%s4261_s0 + $0x60] sm:$0xff]  ;;  %s2543_s18 = smov 3  }
   0xb   :  { %v1383_v36 = vadd.f32 %v1382_v28, %v1381_v30  ;;  %v1344_v39 = vadd.f32 %v1343_v31, %v1342_v33  ;;  %v1388_v46 = vsel %vm40_vm0, %v1213_v35, 0.0  ;;  %v1216_v53 = vmul.f32 %v52_v50, %v52_v50  ;;  %v56_v11 = vld [vmem:[%s4261_s0 + $0x68] sm:$0xff]  ;;  %v57_v17 = vld [vmem:[%s4261_s0 + $0x70] sm:$0xff]  ;;  %v58_v23 = vld [vmem:[%s4261_s0 + $0x78] sm:$0xff]  ;;  %s2546_s23 = smov [#allocation4]  }
   0xc   :  { %2204 = vmatmul.mubr.msk.f32.vlgmr.msra.gmra.mrb[0].mxu0 %vm40_vm0, %v44_v6  ;;  %v1390_v52 = vsel %vm40_vm0, %v1214_v41, 0.0  ;;  %v1351_v55 = vsel %vm40_vm0, %v51_v44, 0.0  ;;  %v1392_v58 = vsel %vm40_vm0, %v1215_v47, 0.0  ;;  %v1217_v59 = vmul.f32 %v53_v56, %v53_v56  ;;  %v1335_v47 = vld [vmem:[#allocation2] sm:$0x1]  ;;  %s2056_s24 = sshll.u32 %s2546_s23, 4  ;;  %s2057_s24 = int_to_ptr.vmem [resolvable:$true] %s2056_s24 }
   0xd   :  { %v1385_v42 = vadd.f32 %v1384_v34, %v1383_v36  ;;  %2206 = vmatprep.mubr.msk.f32.mxu0 %vm40_vm0, %v45_v12  ;;  %v1346_v45 = vadd.f32 %v1345_v37, %v1344_v39  ;;  %v1353_v61 = vsel %vm40_vm0, %v52_v50, 0.0  ;;  %v1394_v0 = vsel %vm40_vm0, %v1216_v53, 0.0  ;;  %s2447_s26 = scalar_lea.vmem %s2057_s24, 32  ;;  %p2448_p1 = scmp.lt.s32.totalorder %s2057_s24, %s2057_s24 }
   0xe   :  { %v1218_v1 = vmul.f32 %v54_v62, %v54_v62  ;;  %v1355_v3 = vsel %vm40_vm0, %v53_v56, 0.0  ;;  %v1396_v6 = vsel %vm40_vm0, %v1217_v59, 0.0  ;;  %v1219_v8 = vmul.f32 %v55_v4, %v55_v4  ;;  %v2746_v59 = vld [vmem:[%s4265_s4] ss:$0 sm:$0xff] }
   0xf   :  { %v1387_v48 = vadd.f32 %v1386_v40, %v1385_v42  ;;  %v1348_v51 = vadd.f32 %v1347_v43, %v1346_v45  ;;  %v1357_v10 = vsel %vm40_vm0, %v54_v62, 0.0  ;;  %v1220_v14 = vmul.f32 %v56_v11, %v56_v11 }
  0x10   :  { %2207 = vmatmul.mubr.msk.f32.gmra.mrb[2].mxu0 %vm40_vm0, %v46_v13  ;;  %v1398_v13 = vsel %vm40_vm0, %v1218_v1, 0.0  ;;  %v1359_v16 = vsel %vm40_vm0, %v55_v4, 0.0  ;;  %v1400_v19 = vsel %vm40_vm0, %v1219_v8, 0.0  ;;  %v1221_v20 = vmul.f32 %v57_v17, %v57_v17 }
  0x11   :  { %v1389_v54 = vadd.f32 %v1388_v46, %v1387_v48  ;;  %2209 = vmatprep.mubr.msk.f32.mxu0 %vm40_vm0, %v47_v21  ;;  %v1350_v57 = vadd.f32 %v1349_v49, %v1348_v51  ;;  %v1361_v22 = vsel %vm40_vm0, %v56_v11, 0.0  ;;  %v1402_v25 = vsel %vm40_vm0, %v1220_v14, 0.0 }
  0x12   :  { %v1363_v28 = vsel %vm40_vm0, %v57_v17, 0.0  ;;  %v1404_v30 = vsel %vm40_vm0, %v1221_v20, 0.0  ;;  %vm1374_vm1 = vcmask 253952   ;;  %vm305_vm2 = vcmask 130048  }
  0x13   :  { %v1391_v60 = vadd.f32 %v1390_v52, %v1389_v54  ;;  %v1352_v63 = vadd.f32 %v1351_v55, %v1350_v57  ;;  %v296_v54 = vld [vmem:[%s4266_s5] sm:$0xff]  ;;  %v297_v55 = vld [vmem:[%s4266_s5 + $0x8] sm:$0xff]  ;;  %vm915_vm4 = vcmask 7168   ;;  %s2443_s5 = scalar_lea.vmem %s2057_s24, 16 }
  0x14   :  { %2210 = vmatmul.mubr.msk.f32.gmra.mrb[4].mxu0 %vm40_vm0, %v48_v26  ;;  %v1222_v26 = vmul.f32 %v58_v23, %v58_v23  ;;  %v2732_v57 = vld [vmem:[%s4262_s1 + $0x8] sm:$0xff]  ;;  %p2444_p0 = scmp.ne.s32.totalorder %s2057_s24, %s2443_s5  ;;  %p2449_p2 = scmp.lt.s32.totalorder %s2447_s26, %s2443_s5 }
  0x15   :  { %v1393_v2 = vadd.f32 %v1392_v58, %v1391_v60  ;;  %2212 = vmatprep.mubr.msk.f32.mxu0 %vm40_vm0, %v49_v32  ;;  %v1354_v5 = vadd.f32 %v1353_v61, %v1352_v63  ;;  %v1365_v32 = vsel %vm40_vm0, %v58_v23, 0.0  ;;  %v2737_v58 = vld [vmem:[%s4262_s1] sm:$0xff]  ;;  %693 = vrot.lane.b32.xlu1 %v2732_v57, %s2538_s25 }
  0x16   :  { %v1406_v34 = vsel %vm40_vm0, %v1222_v26, 0.0  ;;  %691 = vrot.lane.b32.xlu0 %v2737_v58, %s2538_s25  ;;  %p2450_p3 = por %p2449_p2, %p2448_p1 }
  0x17   :  { %v1395_v9 = vadd.f32 %v1394_v0, %v1393_v2  ;;  %v1356_v12 = vadd.f32 %v1355_v3, %v1354_v5 }
  0x18   :  { %2213 = vmatmul.mubr.msk.f32.gmra.mrb[6].mxu0 %vm40_vm0, %v50_v38  ;;  %p2451_p4 = pnand %p2450_p3, %p2444_p0 }
  0x19   :  { %v1397_v15 = vadd.f32 %v1396_v6, %v1395_v9  ;;  %2215 = vmatprep.mubr.msk.f32.mxu0 %vm40_vm0, %v51_v44  ;;  %v1358_v18 = vadd.f32 %v1357_v10, %v1356_v12 }
  0x1b   :  { %v1399_v21 = vadd.f32 %v1398_v13, %v1397_v15  ;;  %v1360_v24 = vadd.f32 %v1359_v16, %v1358_v18 }
  0x1c   :  { %2216 = vmatmul.mubr.msk.f32.gmra.mrb[8].mxu0 %vm40_vm0, %v52_v50  ;;  %v1376_v50 = vld [vmem:[#allocation2 + $0x1] sm:$0x1] }
  0x1d   :  { %v1401_v27 = vadd.f32 %v1400_v19, %v1399_v21  ;;  %2218 = vmatprep.mubr.msk.f32.mxu0 %vm40_vm0, %v53_v56  ;;  %v1362_v29 = vadd.f32 %v1361_v22, %v1360_v24  ;;  %v2263_v56 = vpack.c.bf16 %v297_v55, %v296_v54 }
  0x1f   :  { %v1403_v31 = vadd.f32 %v1402_v25, %v1401_v27  ;;  %v1364_v33 = vadd.f32 %v1363_v28, %v1362_v29  ;;  %2264 = vmatprep.subr.bf16.mxu1 %v2263_v56 }
  0x20   :  { %2219 = vmatmul.mubr.msk.f32.gmra.mrb[10].mxu0 %vm40_vm0, %v54_v62  ;;  %2266 = vmatpush3.bf16.msra.mxu1 %v2263_v56 }
  0x21   :  { %v1405_v35 = vadd.f32 %v1404_v30, %v1403_v31  ;;  %2221 = vmatprep.mubr.msk.f32.mxu0 %vm40_vm0, %v55_v4  ;;  %v1366_v36 = vadd.f32 %v1365_v32, %v1364_v33 }
  0x23   :  { %v1407_v37 = vadd.f32 %v1406_v34, %v1405_v35  ;;  %v1367_v38 = vrot.slane %v1366_v36, 4 }
  0x24   :  { %2222 = vmatmul.mubr.msk.f32.gmra.mrb[12].mxu0 %vm40_vm0, %v56_v11 }
  0x25   :  { %v1408_v39 = vrot.slane %v1407_v37, 4  ;;  %2224 = vmatprep.mubr.msk.f32.mxu0 %vm40_vm0, %v57_v17  ;;  %v1368_v40 = vadd.f32 %v1367_v38, %v1366_v36 }
  0x27   :  { %v1409_v41 = vadd.f32 %v1408_v39, %v1407_v37  ;;  %v1369_v42 = vrot.slane %v1368_v40, 2 }
  0x28   :  { %2225 = vmatmul.mubr.msk.f32.gmra.mrb[14].mxu0 %vm40_vm0, %v58_v23 }
  0x29   :  { %v1410_v43 = vrot.slane %v1409_v41, 2  ;;  %v1370_v44 = vadd.f32 %v1369_v42, %v1368_v40 }
  0x2b   :  { %v1411_v45 = vadd.f32 %v1410_v43, %v1409_v41  ;;  %v1371_v46 = vrot.slane %v1370_v44, 1 }
  0x2d   :  { %v1412_v48 = vrot.slane %v1411_v45, 1  ;;  %v1372_v49 = vadd.f32 %v1371_v46, %v1370_v44  ;;  %v2124_v46 = vld [vmem:[%s4267_s6] ss:$0 sm:$0xff] }
  0x2f   :  { %v1413_v51 = vadd.f32 %v1412_v48, %v1411_v45  ;;  %v1373_v52 = vadd.f32 %v1372_v49, %v1335_v47  ;;  %v2783_v45 = vld [vmem:[%s4262_s1 + $0x10] sm:$0xff] }
  0x30   :  { %695 = vrot.lane.b32.xlu1 %v2783_v45, %s2538_s25 }
  0x31   :  { %v1414_v53 = vadd.f32 %v1413_v51, %v1376_v50  ;;  %1375 = vst.msk [vmem:[#allocation2] sm:$0x1] %vm1374_vm1, %v1373_v52 }
  0x33   :  { %1415 = vst.msk [vmem:[#allocation2 + $0x1] sm:$0x1] %vm1374_vm1, %v1414_v53 }
  0xdf   :  { %v2205_v60 = vpop.f32.mrb[0].mxu0 }
  0xe0   :  { %v207_v61 = vadd.f32 %v2205_v60, %v2746_v59  ;;  %v201_v62 = vpop.f32.mrb[1].mxu0 }
  0xe1   :  { %v202_v63 = vadd.f32 %v2746_v59, %v201_v62 }
  0xe3   :  { %2327 = vtanh.f32 %v202_v63  ;;  %v2208_v0 = vpop.f32.mrb[2].mxu0 }
  0xe4   :  { %2329 = vtanh.f32 %v207_v61  ;;  %v217_v1 = vadd.f32 %v2208_v0, %v2746_v59  ;;  %v211_v2 = vpop.f32.mrb[3].mxu0 }
  0xe5   :  { %v212_v3 = vadd.f32 %v2746_v59, %v211_v2 }
  0xe7   :  { %2331 = vtanh.f32 %v212_v3  ;;  %v2211_v4 = vpop.f32.mrb[4].mxu0 }
  0xe8   :  { %2333 = vtanh.f32 %v217_v1  ;;  %v227_v5 = vadd.f32 %v2211_v4, %v2746_v59  ;;  %v221_v6 = vpop.f32.mrb[5].mxu0 }
  0xe9   :  { %v222_v8 = vadd.f32 %v2746_v59, %v221_v6 }
  0xeb   :  { %2335 = vtanh.f32 %v222_v8  ;;  %v2214_v9 = vpop.f32.mrb[6].mxu0 }
  0xec   :  { %2337 = vtanh.f32 %v227_v5  ;;  %v237_v10 = vadd.f32 %v2214_v9, %v2746_v59  ;;  %v231_v11 = vpop.f32.mrb[7].mxu0 }
  0xed   :  { %v2328_v12 = vpop.eup %2327  ;;  %v232_v13 = vadd.f32 %v2746_v59, %v231_v11 }
  0xee   :  { %v2330_v14 = vpop.eup %2329  ;;  %2231 = vmatprep.mubr.msk.f32.mxu1 %vm305_vm2, %v2328_v12 }
  0xef   :  { %2339 = vtanh.f32 %v232_v13  ;;  %v2217_v15 = vpop.f32.mrb[8].mxu0  ;;  %2232 = vmatmul.mubr.msk.f32.vlgmr.msra.gmra.mrb[0].mxu1 %vm305_vm2, %v2330_v14  ;;  %v2845_v14 = vld [vmem:[%s4262_s1 + $0x18] sm:$0xff] }
  0xf0   :  { %2341 = vtanh.f32 %v237_v10  ;;  %v247_v16 = vadd.f32 %v2217_v15, %v2746_v59  ;;  %v241_v17 = vpop.f32.mrb[9].mxu0 }
  0xf1   :  { %v2332_v18 = vpop.eup %2331  ;;  %v242_v19 = vadd.f32 %v2746_v59, %v241_v17  ;;  %v2856_v17 = vld [vmem:[%s4262_s1 + $0x20] sm:$0xff] }
  0xf2   :  { %v2334_v20 = vpop.eup %2333  ;;  %2234 = vmatprep.mubr.msk.f32.mxu1 %vm305_vm2, %v2332_v18 }
  0xf3   :  { %2343 = vtanh.f32 %v242_v19  ;;  %v2220_v21 = vpop.f32.mrb[10].mxu0  ;;  %2235 = vmatmul.mubr.msk.f32.gmra.mrb[2].mxu1 %vm305_vm2, %v2334_v20  ;;  %v2867_v19 = vld [vmem:[%s4262_s1 + $0x28] sm:$0xff] }
  0xf4   :  { %2345 = vtanh.f32 %v247_v16  ;;  %v257_v22 = vadd.f32 %v2220_v21, %v2746_v59  ;;  %v251_v23 = vpop.f32.mrb[11].mxu0  ;;  %v2878_v21 = vld [vmem:[%s4262_s1 + $0x38] sm:$0xff] }
  0xf5   :  { %v2336_v24 = vpop.eup %2335  ;;  %v252_v25 = vadd.f32 %v2746_v59, %v251_v23  ;;  %v2892_v23 = vld [vmem:[%s4262_s1 + $0x48] sm:$0xff] }
  0xf6   :  { %v2338_v26 = vpop.eup %2337  ;;  %2237 = vmatprep.mubr.msk.f32.mxu1 %vm305_vm2, %v2336_v24  ;;  %v2897_v24 = vld [vmem:[%s4262_s1 + $0x40] sm:$0xff] }
  0xf7   :  { %2347 = vtanh.f32 %v252_v25  ;;  %v2223_v27 = vpop.f32.mrb[12].mxu0  ;;  %2238 = vmatmul.mubr.msk.f32.gmra.mrb[4].mxu1 %vm305_vm2, %v2338_v26  ;;  %v2906_v25 = vld [vmem:[%s4262_s1 + $0x58] sm:$0xff]  ;;  %v2911_v26 = vld [vmem:[%s4262_s1 + $0x50] sm:$0xff] }
  0xf8   :  { %2349 = vtanh.f32 %v257_v22  ;;  %v267_v28 = vadd.f32 %v2223_v27, %v2746_v59  ;;  %v261_v29 = vpop.f32.mrb[13].mxu0  ;;  %v2883_v22 = vld [vmem:[%s4262_s1 + $0x30] sm:$0xff]  ;;  %v2920_v27 = vld [vmem:[%s4262_s1 + $0x68] sm:$0xff] }
  0xf9   :  { %v2340_v30 = vpop.eup %2339  ;;  %v262_v31 = vadd.f32 %v2746_v59, %v261_v29  ;;  %v2934_v29 = vld [vmem:[%s4262_s1 + $0x78] sm:$0xff] }
  0xfa   :  { %v2342_v32 = vpop.eup %2341  ;;  %2351 = vtanh.f32 %v267_v28  ;;  %2240 = vmatprep.mubr.msk.f32.mxu1 %vm305_vm2, %v2340_v30  ;;  %v2925_v28 = vld [vmem:[%s4262_s1 + $0x60] sm:$0xff]  ;;  %v2939_v30 = vld [vmem:[%s4262_s1 + $0x70] sm:$0xff]  ;;  %s2540_s1 = smov 1  }
  0xfb   :  { %2353 = vtanh.f32 %v262_v31  ;;  %2241 = vmatmul.mubr.msk.f32.gmra.mrb[6].mxu1 %vm305_vm2, %v2342_v32  ;;  %v2226_v33 = vpop.f32.mrb[14].mxu0  ;;  %v4273_v31 = vmov 0   ;;  %v2947_v32 = vpop.permute.xlu1 %693 }
  0xfc   :  { %v277_v34 = vadd.f32 %v2226_v33, %v2746_v59  ;;  %v271_v35 = vpop.f32.mrb[15].mxu0  ;;  %2305 = vset.pattern.permute.xlu1 %v4273_v31  ;;  %2306 = vset.pattern.permute.xlu0 %v4273_v31  ;;  %v2949_v33 = vpop.permute.xlu0 %691 }
  0xfd   :  { %v2344_v36 = vpop.eup %2343  ;;  %v272_v37 = vadd.f32 %v2746_v59, %v271_v35 }
  0xfe   :  { %v2346_v38 = vpop.eup %2345  ;;  %2355 = vtanh.f32 %v277_v34  ;;  %2243 = vmatprep.mubr.msk.f32.mxu1 %vm305_vm2, %v2344_v36 }
  0xff   :  { %2357 = vtanh.f32 %v272_v37  ;;  %2244 = vmatmul.mubr.msk.f32.gmra.mrb[8].mxu1 %vm305_vm2, %v2346_v38  ;;  %v2951_v34 = vpop.permute.xlu1 %695 }
 0x101   :  { %v2348_v39 = vpop.eup %2347 }
 0x102   :  { %v2350_v40 = vpop.eup %2349  ;;  %2246 = vmatprep.mubr.msk.f32.mxu1 %vm305_vm2, %v2348_v39 }
 0x103   :  { %2247 = vmatmul.mubr.msk.f32.gmra.mrb[10].mxu1 %vm305_vm2, %v2350_v40 }
 0x104   :  { %v2352_v41 = vpop.eup %2351 }
 0x105   :  { %v2354_v42 = vpop.eup %2353 }
 0x106   :  { %2249 = vmatprep.mubr.msk.f32.mxu1 %vm305_vm2, %v2354_v42 }
 0x107   :  { %2250 = vmatmul.mubr.msk.f32.gmra.mrb[12].mxu1 %vm305_vm2, %v2352_v41 }
 0x108   :  { %v2356_v43 = vpop.eup %2355 }
 0x109   :  { %v2358_v44 = vpop.eup %2357 }
 0x10a   :  { %2252 = vmatprep.mubr.msk.f32.mxu1 %vm305_vm2, %v2358_v44 }
 0x10b   :  { %2253 = vmatmul.mubr.msk.f32.gmra.mrb[14].mxu1 %vm305_vm2, %v2356_v43 }
 0x1c2   :  { %v2233_v47 = vpop.f32.mrb[0].mxu1 }
 0x1c3   :  { %v2790_v48 = vadd.f32 %v2233_v47, %v2124_v46  ;;  %v420_v49 = vpop.f32.mrb[1].mxu1 }
 0x1c4   :  { %v2794_v51 = vadd.f32 %v2124_v46, %v420_v49 }
 0x1c5   :  { %517 = vrot.lane.b32.xlu0 %v2790_v48, %s2538_s25 }
 0x1c6   :  { %v2236_v50 = vpop.f32.mrb[2].mxu1 }
 0x1c7   :  { %v2796_v52 = vadd.f32 %v2236_v50, %v2124_v46  ;;  %v430_v53 = vpop.f32.mrb[3].mxu1 }
 0x1c8   :  { %v2802_v55 = vadd.f32 %v2124_v46, %v430_v53 }
 0x1c9   :  { %521 = vrot.lane.b32.xlu1 %v2796_v52, %s2538_s25  ;;  %515 = vrot.lane.b32.xlu0 %v2794_v51, %s2538_s25 }
 0x1ca   :  { %v2239_v54 = vpop.f32.mrb[4].mxu1 }
 0x1cb   :  { %v440_v56 = vpop.f32.mrb[5].mxu1  ;;  %v2810_v61 = vadd.f32 %v2239_v54, %v2124_v46 }
 0x1cc   :  { %v2804_v59 = vadd.f32 %v2124_v46, %v440_v56 }
 0x1cd   :  { %519 = vrot.lane.b32.xlu1 %v2802_v55, %s2538_s25 }
 0x1ce   :  { %v2242_v60 = vpop.f32.mrb[6].mxu1  ;;  %523 = vrot.lane.b32.xlu0 %v2804_v59, %s2538_s25 }
 0x1cf   :  { %v450_v62 = vpop.f32.mrb[7].mxu1  ;;  %v2818_v1 = vadd.f32 %v2242_v60, %v2124_v46 }
 0x1d0   :  { %v2812_v63 = vadd.f32 %v2124_v46, %v450_v62 }
 0x1d1   :  { %525 = vrot.lane.b32.xlu1 %v2810_v61, %s2538_s25 }
 0x1d2   :  { %v2245_v0 = vpop.f32.mrb[8].mxu1  ;;  %527 = vrot.lane.b32.xlu0 %v2812_v63, %s2538_s25 }
 0x1d3   :  { %v460_v2 = vpop.f32.mrb[9].mxu1  ;;  %v2826_v5 = vadd.f32 %v2245_v0, %v2124_v46 }
 0x1d4   :  { %v2820_v3 = vadd.f32 %v2124_v46, %v460_v2 }
 0x1d5   :  { %529 = vrot.lane.b32.xlu1 %v2818_v1, %s2538_s25 }
 0x1d6   :  { %v2248_v4 = vpop.f32.mrb[10].mxu1  ;;  %531 = vrot.lane.b32.xlu0 %v2820_v3, %s2538_s25 }
 0x1d7   :  { %v470_v6 = vpop.f32.mrb[11].mxu1  ;;  %v2834_v10 = vadd.f32 %v2248_v4, %v2124_v46 }
 0x1d8   :  { %v2828_v8 = vadd.f32 %v2124_v46, %v470_v6 }
 0x1d9   :  { %533 = vrot.lane.b32.xlu1 %v2826_v5, %s2538_s25 }
 0x1da   :  { %v2251_v9 = vpop.f32.mrb[12].mxu1  ;;  %535 = vrot.lane.b32.xlu0 %v2828_v8, %s2538_s25 }
 0x1db   :  { %v2836_v11 = vadd.f32 %v2251_v9, %v2124_v46  ;;  %v480_v12 = vpop.f32.mrb[13].mxu1 }
 0x1dc   :  { %v2847_v16 = vadd.f32 %v2124_v46, %v480_v12 }
 0x1dd   :  { %537 = vrot.lane.b32.xlu1 %v2834_v10, %s2538_s25 }
 0x1de   :  { %541 = vrot.lane.b32.xlu0 %v2836_v11, %s2538_s25  ;;  %v2254_v13 = vpop.f32.mrb[14].mxu1 }
 0x1df   :  { %v490_v15 = vpop.f32.mrb[15].mxu1  ;;  %v2869_v20 = vadd.f32 %v2254_v13, %v2124_v46 }
 0x1e0   :  { %v2858_v18 = vadd.f32 %v2124_v46, %v490_v15 }
 0x1e1   :  { %697 = vrot.lane.b32.xlu1 %v2845_v14, %s2538_s25 }
 0x1e2   :  { %539 = vrot.lane.b32.xlu0 %v2847_v16, %s2538_s25 }
 0x1e5   :  { %699 = vrot.lane.b32.xlu1 %v2856_v17, %s2538_s25 }
 0x1e6   :  { %543 = vrot.lane.b32.xlu0 %v2858_v18, %s2538_s25 }
 0x1e9   :  { %701 = vrot.lane.b32.xlu1 %v2867_v19, %s2538_s25 }
 0x1ea   :  { %545 = vrot.lane.b32.xlu0 %v2869_v20, %s2538_s25 }
 0x1ed   :  { %705 = vrot.lane.b32.xlu1 %v2878_v21, %s2538_s25 }
 0x1ee   :  { %703 = vrot.lane.b32.xlu0 %v2883_v22, %s2538_s25 }
 0x1f1   :  { %709 = vrot.lane.b32.xlu1 %v2892_v23, %s2538_s25 }
 0x1f2   :  { %707 = vrot.lane.b32.xlu0 %v2897_v24, %s2538_s25 }
 0x1f5   :  { %713 = vrot.lane.b32.xlu1 %v2906_v25, %s2538_s25 }
 0x1f6   :  { %711 = vrot.lane.b32.xlu0 %v2911_v26, %s2538_s25 }
 0x1f9   :  { %717 = vrot.lane.b32.xlu1 %v2920_v27, %s2538_s25 }
 0x1fa   :  { %715 = vrot.lane.b32.xlu0 %v2925_v28, %s2538_s25 }
 0x1fd   :  { %721 = vrot.lane.b32.xlu1 %v2934_v29, %s2538_s25 }
 0x1fe   :  { %719 = vrot.lane.b32.xlu0 %v2939_v30, %s2538_s25 }
 0x237   :  { %v518_v35 = vpop.permute.xlu0 %517 }
 0x238   :  { %v564_v36 = vsub.f32 %v2790_v48, %v518_v35 }
 0x23a   :  { %v580_v37 = vmul.f32 0.5, %v564_v36 }
 0x23b   :  { %v522_v38 = vpop.permute.xlu1 %521  ;;  %v516_v39 = vpop.permute.xlu0 %515 }
 0x23c   :  { %2359 = vtanh.f32 %v580_v37  ;;  %v566_v40 = vsub.f32 %v2796_v52, %v522_v38  ;;  %v563_v41 = vsub.f32 %v2794_v51, %v516_v39 }
 0x23e   :  { %v582_v42 = vmul.f32 0.5, %v566_v40  ;;  %v579_v43 = vmul.f32 0.5, %v563_v41 }
 0x23f   :  { %v520_v44 = vpop.permute.xlu1 %519 }
 0x240   :  { %2361 = vtanh.f32 %v582_v42  ;;  %v565_v46 = vsub.f32 %v2802_v55, %v520_v44  ;;  %v524_v47 = vpop.permute.xlu0 %523 }
 0x241   :  { %2363 = vtanh.f32 %v579_v43  ;;  %v567_v49 = vsub.f32 %v2804_v59, %v524_v47 }
 0x242   :  { %v581_v50 = vmul.f32 0.5, %v565_v46 }
 0x243   :  { %v583_v48 = vmul.f32 0.5, %v567_v49  ;;  %v526_v53 = vpop.permute.xlu1 %525 }
 0x244   :  { %2365 = vtanh.f32 %v581_v50  ;;  %v568_v54 = vsub.f32 %v2810_v61, %v526_v53  ;;  %v528_v56 = vpop.permute.xlu0 %527 }
 0x245   :  { %2367 = vtanh.f32 %v583_v48  ;;  %v569_v51 = vsub.f32 %v2812_v63, %v528_v56 }
 0x246   :  { %v2360_v52 = vpop.eup %2359  ;;  %v584_v60 = vmul.f32 0.5, %v568_v54 }
 0x247   :  { %v612_v62 = vmul.f32 0.5, %v2360_v52  ;;  %v585_v0 = vmul.f32 0.5, %v569_v51  ;;  %v530_v2 = vpop.permute.xlu1 %529 }
 0x248   :  { %2369 = vtanh.f32 %v584_v60  ;;  %v570_v55 = vsub.f32 %v2818_v1, %v530_v2  ;;  %v532_v4 = vpop.permute.xlu0 %531 }
 0x249   :  { %v2961_v59 = vadd.f32 0.5, %v612_v62  ;;  %2371 = vtanh.f32 %v585_v0  ;;  %v571_v6 = vsub.f32 %v2820_v3, %v532_v4 }
 0x24a   :  { %v2362_v9 = vpop.eup %2361  ;;  %v586_v61 = vmul.f32 0.5, %v570_v55 }
 0x24b   :  { %4335 = vst [vmem:[#allocation14_spill] sm:$0xff] %v2961_v59  ;;  %v2364_v12 = vpop.eup %2363  ;;  %vm1832_vm3 = vcmp.gt.f32.partialorder %v2961_v59, 0.5  ;;  %v614_v63 = vmul.f32 0.5, %v2362_v9  ;;  %v587_v13 = vmul.f32 0.5, %v571_v6  ;;  %v534_v15 = vpop.permute.xlu1 %533 }
 0x24c   :  { %v611_v35 = vmul.f32 0.5, %v2364_v12  ;;  %2373 = vtanh.f32 %v586_v61  ;;  %v572_v36 = vsub.f32 %v2826_v5, %v534_v15  ;;  %v536_v1 = vpop.permute.xlu0 %535  ;;  %v2142_v37 = vsel %vm1832_vm3, 1.0, %v4280_v7 }
 0x24d   :  { %v2967_v38 = vadd.f32 0.5, %v614_v63  ;;  %2375 = vtanh.f32 %v587_v13  ;;  %v573_v3 = vsub.f32 %v2828_v8, %v536_v1  ;;  %v1880_v5 = vsel %vm915_vm4, %v2142_v37, 0.0 }
 0x24e   :  { %v2366_v39 = vpop.eup %2365  ;;  %v2970_v40 = vadd.f32 0.5, %v611_v35  ;;  %v588_v41 = vmul.f32 0.5, %v572_v36 }
 0x24f   :  { %v2368_v42 = vpop.eup %2367  ;;  %vm1834_vm5 = vcmp.gt.f32.partialorder %v2967_v38, 0.5  ;;  %v613_v43 = vmul.f32 0.5, %v2366_v39  ;;  %v589_v44 = vmul.f32 0.5, %v573_v3  ;;  %v538_v46 = vpop.permute.xlu1 %537  ;;  %v2979_v48 = vsub.f32 1.0, %v2967_v38 }
 0x250   :  { %4336 = vst [vmem:[#allocation15_spill] sm:$0xff] %v2970_v40  ;;  %vm1831_vm6 = vcmp.gt.f32.partialorder %v2970_v40, 0.5  ;;  %v615_v47 = vmul.f32 0.5, %v2368_v42  ;;  %2377 = vtanh.f32 %v588_v41  ;;  %v542_v8 = vpop.permute.xlu0 %541  ;;  %v2144_v54 = vsel %vm1834_vm5, 1.0, %v4280_v7 }
 0x251   :  { %v2141_v49 = vsel %vm1831_vm6, 1.0, %v4280_v7  ;;  %v2976_v50 = vadd.f32 0.5, %v613_v43  ;;  %2379 = vtanh.f32 %v589_v44  ;;  %4337 = vst [vmem:[#allocation16_spill] sm:$0xff] %v2979_v48  ;;  %v574_v52 = vsub.f32 %v2834_v10, %v538_v46 }
 0x252   :  { %v2370_v53 = vpop.eup %2369  ;;  %v1879_v56 = vsel %vm915_vm4, %v2141_v49, 0.0  ;;  %v2983_v51 = vadd.f32 0.5, %v615_v47  ;;  %v1884_v9 = vsel %vm915_vm4, %v2144_v54, 0.0  ;;  %v758_v35 = vsub.f32 %v2967_v38, %v2979_v48 }
 0x253   :  { %v2372_v60 = vpop.eup %2371  ;;  %v1881_v62 = vadd.f32 %v1880_v5, %v1879_v56  ;;  %vm1833_vm7 = vcmp.gt.f32.partialorder %v2976_v50, 0.5  ;;  %v616_v0 = vmul.f32 0.5, %v2370_v53  ;;  %v590_v4 = vmul.f32 0.5, %v574_v52  ;;  %v698_v6 = vpop.permute.xlu1 %697 }
 0x254   :  { %v2143_v2 = vsel %vm1833_vm7, 1.0, %v4280_v7  ;;  %vm1835_vm8 = vcmp.gt.f32.partialorder %v2983_v51, 0.5  ;;  %v617_v55 = vmul.f32 0.5, %v2372_v60  ;;  %v742_v37 = vsub.f32 %v2845_v14, %v698_v6  ;;  %v540_v3 = vpop.permute.xlu0 %539 }
 0x255   :  { %v1882_v61 = vsel %vm915_vm4, %v2143_v2, 0.0  ;;  %v2991_v12 = vadd.f32 0.5, %v616_v0  ;;  %v2145_v13 = vsel %vm1835_vm8, 1.0, %v4280_v7  ;;  %2381 = vtanh.f32 %v590_v4 }
 0x256   :  { %v2374_v63 = vpop.eup %2373  ;;  %v1883_v10 = vadd.f32 %v1882_v61, %v1881_v62  ;;  %v2994_v15 = vadd.f32 0.5, %v617_v55  ;;  %v576_v42 = vsub.f32 %v2836_v11, %v542_v8  ;;  %v3002_v43 = vsub.f32 1.0, %v2961_v59 }
 0x257   :  { %v2376_v36 = vpop.eup %2375  ;;  %vm1836_vm9 = vcmp.gt.f32.partialorder %v2991_v12, 0.5  ;;  %v618_v1 = vmul.f32 0.5, %v2374_v63  ;;  %v1886_v44 = vsel %vm915_vm4, %v2145_v13, 0.0  ;;  %v774_v47 = vadd.f32 %v758_v35, %v742_v37  ;;  %v700_v0 = vpop.permute.xlu1 %699 }
 0x258   :  { %v1885_v39 = vadd.f32 %v1884_v9, %v1883_v10  ;;  %v619_v41 = vmul.f32 0.5, %v2376_v36  ;;  %4338 = vst [vmem:[#allocation17_spill] sm:$0xff] %v3002_v43  ;;  %v2146_v46 = vsel %vm1836_vm9, 1.0, %v4280_v7  ;;  %vm1837_vm10 = vcmp.gt.f32.partialorder %v2994_v15, 0.5  ;;  %v544_v36 = vpop.permute.xlu0 %543 }
 0x259   :  { %v3006_v5 = vadd.f32 0.5, %v618_v1  ;;  %v575_v54 = vsub.f32 %v2847_v16, %v540_v3  ;;  %v790_v8 = vmul.f32 0.5, %v774_v47  ;;  %v3014_v52 = vsub.f32 1.0, %v2983_v51 }
 0x25a   :  { %v2378_v49 = vpop.eup %2377  ;;  %v1887_v53 = vadd.f32 %v1886_v44, %v1885_v39  ;;  %v3009_v14 = vadd.f32 0.5, %v619_v41  ;;  %v1888_v60 = vsel %vm915_vm4, %v2146_v46, 0.0  ;;  %v2147_v55 = vsel %vm1837_vm10, 1.0, %v4280_v7 }
 0x25b   :  { %v2380_v56 = vpop.eup %2379  ;;  %vm1838_vm11 = vcmp.gt.f32.partialorder %v3006_v5, 0.5  ;;  %v620_v11 = vmul.f32 0.5, %v2378_v49  ;;  %4339 = vst [vmem:[#allocation18_spill] sm:$0xff] %v3014_v52  ;;  %v592_v4 = vmul.f32 0.5, %v576_v42  ;;  %2383 = vtanh.f32 %v790_v8 }
 0x25c   :  { %vm1839_vm12 = vcmp.gt.f32.partialorder %v3009_v14, 0.5  ;;  %v621_v62 = vmul.f32 0.5, %v2380_v56  ;;  %v1889_v2 = vadd.f32 %v1888_v60, %v1887_v53  ;;  %v2148_v16 = vsel %vm1838_vm11, 1.0, %v4280_v7  ;;  %v546_v8 = vpop.permute.xlu0 %545 }
 0x25d   :  { %v2149_v6 = vsel %vm1839_vm12, 1.0, %v4280_v7  ;;  %v3021_v9 = vadd.f32 0.5, %v620_v11  ;;  %v756_v61 = vsub.f32 %v2961_v59, %v3002_v43  ;;  %v591_v63 = vmul.f32 0.5, %v575_v54 }
 0x25e   :  { %v743_v10 = vsub.f32 %v2856_v17, %v700_v0  ;;  %v759_v13 = vsub.f32 %v2983_v51, %v3014_v52  ;;  %v3029_v35 = vsub.f32 1.0, %v2970_v40  ;;  %v740_v1 = vsub.f32 %v2732_v57, %v2947_v32  ;;  %v702_v32 = vpop.permute.xlu1 %701 }
 0x25f   :  { %v739_v37 = vsub.f32 %v2737_v58, %v2949_v33  ;;  %v1890_v3 = vsel %vm915_vm4, %v2147_v55, 0.0  ;;  %v3036_v39 = vadd.f32 0.5, %v621_v62  ;;  %v2382_v41 = vpop.eup %2381  ;;  %v741_v17 = vsub.f32 %v2783_v45, %v2951_v34 }
 0x260   :  { %4340 = vst [vmem:[#allocation19_spill] sm:$0xff] %v3029_v35  ;;  %v1891_v42 = vadd.f32 %v1890_v3, %v1889_v2  ;;  %2385 = vtanh.f32 %v592_v4  ;;  %v775_v44 = vadd.f32 %v759_v13, %v743_v10  ;;  %v1892_v46 = vsel %vm915_vm4, %v2148_v16, 0.0 }
 0x261   :  { %v1894_v47 = vsel %vm915_vm4, %v2149_v6, 0.0  ;;  %vm1840_vm13 = vcmp.gt.f32.partialorder %v3021_v9, 0.5  ;;  %v772_v57 = vadd.f32 %v756_v61, %v740_v1  ;;  %2387 = vtanh.f32 %v591_v63 }
 0x262   :  { %v791_v58 = vmul.f32 0.5, %v775_v44  ;;  %v3045_v33 = vpack.c.bf16 %v3002_v43, %v3029_v35  ;;  %v755_v45 = vsub.f32 %v2970_v40, %v3029_v35  ;;  %vm1841_vm14 = vcmp.gt.f32.partialorder %v3036_v39, 0.5  ;;  %v706_v13 = vpop.permute.xlu1 %705 }
 0x263   :  { %v622_v34 = vmul.f32 0.5, %v2382_v41  ;;  %v788_v49 = vmul.f32 0.5, %v772_v57  ;;  %v577_v53 = vsub.f32 %v2858_v18, %v544_v36  ;;  %v1893_v54 = vadd.f32 %v1892_v46, %v1891_v42 }
 0x264   :  { %4341 = vst [vmem:[#allocation20_spill] sm:$0xff] %v3045_v33  ;;  %2389 = vtanh.f32 %v791_v58  ;;  %v4279_v56 = vunpack.c.l.bf16 %v3045_v33  ;;  %v4276_v11 = vunpack.c.h.bf16 %v3045_v33  ;;  %v2150_v60 = vsel %vm1840_vm13, 1.0, %v4280_v7 }
 0x265   :  { %2391 = vtanh.f32 %v788_v49  ;;  %v771_v62 = vadd.f32 %v755_v45, %v739_v37  ;;  %v593_v0 = vmul.f32 0.5, %v577_v53  ;;  %v2384_v2 = vpop.eup %2383  ;;  %v2151_v55 = vsel %vm1841_vm14, 1.0, %v4280_v7 }
 0x266   :  { %v2280_v18 = vpack.i.bf16 %v4276_v11, %v4279_v56  ;;  %v3062_v4 = vsub.f32 1.0, %v2976_v50  ;;  %v3065_v16 = vsub.f32 1.0, %v2991_v12  ;;  %v3067_v6 = vadd.f32 0.5, %v622_v34 }
 0x267   :  { %v787_v61 = vmul.f32 0.5, %v771_v62  ;;  %v744_v63 = vsub.f32 %v2867_v19, %v702_v32  ;;  %v578_v10 = vsub.f32 %v2869_v20, %v546_v8  ;;  %2393 = vtanh.f32 %v593_v0 }
 0x268   :  { %4342 = vst [vmem:[#allocation21_spill] sm:$0xff] %v3062_v4  ;;  %4343 = vst [vmem:[#allocation22_spill] sm:$0xff] %v3065_v16  ;;  %2281 = vrot.lane.b32.xlu0 %v2280_v18, %s2540_s1  ;;  %v3074_v36 = vpack.c.bf16 %v2979_v48, %v3062_v4  ;;  %v757_v1 = vsub.f32 %v2976_v50, %v3062_v4  ;;  %v3079_v37 = vsub.f32 1.0, %v3006_v5  ;;  %v822_v3 = vmul.f32 0.5, %v2384_v2  ;;  %v704_v2 = vpop.permute.xlu0 %703 }
 0x269   :  { %2395 = vtanh.f32 %v787_v61  ;;  %v760_v19 = vsub.f32 %v2991_v12, %v3065_v16  ;;  %v594_v20 = vmul.f32 0.5, %v578_v10  ;;  %v746_v57 = vsub.f32 %v2878_v21, %v706_v13 }
 0x26a   :  { %4344 = vst [vmem:[#allocation23_spill] sm:$0xff] %v3074_v36  ;;  %4345 = vst [vmem:[#allocation24_spill] sm:$0xff] %v3079_v37  ;;  %v2386_v41 = vpop.eup %2385  ;;  %v4278_v42 = vunpack.c.l.bf16 %v3074_v36  ;;  %v4275_v44 = vunpack.c.h.bf16 %v3074_v36  ;;  %v773_v46 = vadd.f32 %v757_v1, %v741_v17  ;;  %v1895_v32 = vadd.f32 %v1894_v47, %v1893_v54 }
 0x26b   :  { %v1896_v58 = vsel %vm915_vm4, %v2150_v60, 0.0  ;;  %v776_v45 = vadd.f32 %v760_v19, %v744_v63  ;;  %v2388_v34 = vpop.eup %2387  ;;  %v3088_v49 = vsel %vm915_vm4, %v2151_v55, 0.0  ;;  %v762_v62 = vsub.f32 %v3006_v5, %v3079_v37 }
 0x26c   :  { %v2285_v53 = vpack.i.bf16 %v4275_v44, %v4278_v42  ;;  %v789_v8 = vmul.f32 0.5, %v773_v46  ;;  %v624_v17 = vmul.f32 0.5, %v2386_v41  ;;  %v3096_v0 = vadd.f32 0.5, %v822_v3 }
 0x26d   :  { %v792_v21 = vmul.f32 0.5, %v776_v45  ;;  %2397 = vtanh.f32 %v594_v20  ;;  %vm1842_vm15 = vcmp.gt.f32.partialorder %v3067_v6, 0.5  ;;  %v778_v54 = vadd.f32 %v762_v62, %v746_v57 }
 0x26e   :  { %v2390_v47 = vpop.eup %2389  ;;  %2286 = vrot.lane.b32.xlu1 %v2285_v53, %s2540_s1  ;;  %2399 = vtanh.f32 %v789_v8  ;;  %v3102_v60 = vpack.c.bf16 %v3065_v16, %v3014_v52  ;;  %v623_v18 = vmul.f32 0.5, %v2388_v34  ;;  %v3105_v63 = vsub.f32 1.0, %v2994_v15 }
 0x26f   :  { %v2392_v55 = vpop.eup %2391  ;;  %v823_v61 = vmul.f32 0.5, %v2390_v47  ;;  %2401 = vtanh.f32 %v792_v21  ;;  %v794_v13 = vmul.f32 0.5, %v778_v54  ;;  %v3110_v19 = vsub.f32 1.0, %v3096_v0 }
 0x270   :  { %4346 = vst [vmem:[#allocation25_spill] sm:$0xff] %v3102_v60  ;;  %4347 = vst [vmem:[#allocation26_spill] sm:$0xff] %v3105_v63  ;;  %v820_v10 = vmul.f32 0.5, %v2392_v55  ;;  %v4277_v1 = vunpack.c.l.bf16 %v3102_v60  ;;  %v4274_v3 = vunpack.c.h.bf16 %v3102_v60  ;;  %v761_v41 = vsub.f32 %v2994_v15, %v3105_v63 }
 0x271   :  { %4348 = vst [vmem:[#allocation27_spill] sm:$0xff] %v3110_v19  ;;  %v3112_v20 = vadd.f32 0.5, %v823_v61  ;;  %v745_v46 = vsub.f32 %v2883_v22, %v704_v2  ;;  %v2394_v57 = vpop.eup %2393  ;;  %v1781_v45 = vmul.f32 %v3096_v0, %v3096_v0  ;;  %2403 = vtanh.f32 %v794_v13 }
 0x272   :  { %v3119_v34 = vadd.f32 0.5, %v820_v10  ;;  %v2290_v53 = vpack.i.bf16 %v4274_v3, %v4277_v1  ;;  %v3125_v62 = vadd.f32 %v1896_v58, %v1895_v32  ;;  %v3127_v21 = vadd.f32 0.5, %v624_v17  ;;  %v710_v32 = vpop.permute.xlu1 %709 }
 0x273   :  { %v2396_v8 = vpop.eup %2395  ;;  %v777_v47 = vadd.f32 %v761_v41, %v745_v46  ;;  %v3130_v22 = vsub.f32 1.0, %v3021_v9  ;;  %v3135_v54 = vsel %vm1842_vm15, 1.0, %v4280_v7  ;;  %v3137_v2 = vadd.f32 0.5, %v623_v18 }
 0x274   :  { %v3140_v55 = vsub.f32 1.0, %v3112_v20  ;;  %v819_v61 = vmul.f32 0.5, %v2396_v8  ;;  %2291 = vrot.lane.b32.xlu0 %v2290_v53, %s2540_s1  ;;  %v1693_v58 = vsel %vm915_vm4, %v3110_v19, 0.0  ;;  %v1728_v17 = vmul.f32 %v3110_v19, %v3110_v19 }
 0x275   :  { %4349 = vst [vmem:[#allocation28_spill] sm:$0xff] %v3130_v22  ;;  %v3148_v10 = vsub.f32 1.0, %v3119_v34  ;;  %v793_v13 = vmul.f32 0.5, %v777_v47  ;;  %v1799_v18 = vsel %vm915_vm4, %v1781_v45, 0.0  ;;  %v625_v46 = vmul.f32 0.5, %v2394_v57 }
 0x276   :  { %4350 = vst [vmem:[#allocation29_spill] sm:$0xff] %v3140_v55  ;;  %v3151_v41 = vadd.f32 0.5, %v819_v61  ;;  %v1779_v8 = vmul.f32 %v3119_v34, %v3119_v34  ;;  %v1782_v31 = vmul.f32 %v3112_v20, %v3112_v20  ;;  %v764_v3 = vsub.f32 %v3021_v9, %v3130_v22 }
 0x277   :  { %4351 = vst [vmem:[#allocation30_spill] sm:$0xff] %v3148_v10  ;;  %v2398_v53 = vpop.eup %2397  ;;  %2405 = vtanh.f32 %v793_v13  ;;  %v748_v44 = vsub.f32 %v2892_v23, %v710_v32  ;;  %v1729_v45 = vmul.f32 %v3140_v55, %v3140_v55  ;;  %v3169_v61 = vpack.c.bf16 %v3079_v37, %v3105_v63 }
 0x278   :  { %v2400_v11 = vpop.eup %2399  ;;  %v3163_v47 = vsub.f32 1.0, %v3151_v41  ;;  %v1778_v57 = vmul.f32 %v3151_v41, %v3151_v41  ;;  %v1689_v42 = vsel %vm915_vm4, %v3148_v10, 0.0  ;;  %v1726_v23 = vmul.f32 %v3148_v10, %v3148_v10 }
 0x279   :  { %4353 = vst [vmem:[#allocation32_spill] sm:$0xff] %v3169_v61  ;;  %v2402_v13 = vpop.eup %2401  ;;  %v821_v1 = vmul.f32 0.5, %v2400_v11  ;;  %v780_v32 = vadd.f32 %v764_v3, %v748_v44  ;;  %v1795_v56 = vsel %vm915_vm4, %v1779_v8, 0.0  ;;  %v626_v16 = vmul.f32 0.5, %v2398_v53 }
 0x27a   :  { %4352 = vst [vmem:[#allocation31_spill] sm:$0xff] %v3163_v47  ;;  %v824_v7 = vmul.f32 0.5, %v2402_v13  ;;  %v1725_v19 = vmul.f32 %v3163_v47, %v3163_v47  ;;  %v1688_v37 = vsel %vm915_vm4, %v3163_v47, 0.0  ;;  %v1794_v11 = vsel %vm915_vm4, %v1778_v57, 0.0  ;;  %v708_v13 = vpop.permute.xlu0 %707 }
 0x27b   :  { %v3178_v48 = vadd.f32 0.5, %v821_v1  ;;  %v796_v43 = vmul.f32 0.5, %v780_v32  ;;  %v2404_v63 = vpop.eup %2403  ;;  %v4297_v3 = vunpack.c.l.bf16 %v3169_v61  ;;  %v4296_v8 = vunpack.c.h.bf16 %v3169_v61 }
 0x27c   :  { %v3183_v52 = vadd.f32 0.5, %v824_v7  ;;  %v1741_v44 = vsel %vm915_vm4, %v1725_v19, 0.0  ;;  %v1742_v1 = vsel %vm915_vm4, %v1726_v23, 0.0  ;;  %v826_v57 = vmul.f32 0.5, %v2404_v63 }
 0x27d   :  { %v3189_v53 = vsub.f32 1.0, %v3178_v48  ;;  %v1780_v10 = vmul.f32 %v3178_v48, %v3178_v48  ;;  %v1690_v32 = vadd.f32 %v1689_v42, %v1688_v37  ;;  %v1796_v47 = vadd.f32 %v1795_v56, %v1794_v11 }
 0x27e   :  { %2407 = vtanh.f32 %v796_v43  ;;  %v2295_v7 = vpack.i.bf16 %v4296_v8, %v4297_v3  ;;  %v1743_v4 = vadd.f32 %v1742_v1, %v1741_v44  ;;  %v3204_v36 = vsub.f32 1.0, %v3183_v52 }
 0x27f   :  { %4354 = vst [vmem:[#allocation33_spill] sm:$0xff] %v3189_v53  ;;  %v1691_v19 = vsel %vm915_vm4, %v3189_v53, 0.0  ;;  %v1727_v60 = vmul.f32 %v3189_v53, %v3189_v53  ;;  %v1797_v23 = vsel %vm915_vm4, %v1780_v10, 0.0  ;;  %v3206_v43 = vadd.f32 0.5, %v826_v57  ;;  %v712_v57 = vpop.permute.xlu0 %711 }
 0x280   :  { %4355 = vst [vmem:[#allocation34_spill] sm:$0xff] %v3204_v36  ;;  %v1692_v37 = vadd.f32 %v1691_v19, %v1690_v32  ;;  %v1798_v56 = vadd.f32 %v1797_v23, %v1796_v47  ;;  %2296 = vrot.lane.b32.xlu1 %v2295_v7, %s2540_s1  ;;  %v1746_v63 = vsel %vm915_vm4, %v1728_v17, 0.0  ;;  %v3210_v11 = vadd.f32 0.5, %v625_v46  ;;  %v714_v19 = vpop.permute.xlu1 %713 }
 0x281   :  { %4356 = vst [vmem:[#allocation35_spill] sm:$0xff] %v3206_v43  ;;  %v2406_v42 = vpop.eup %2405  ;;  %v1744_v8 = vsel %vm915_vm4, %v1727_v60, 0.0  ;;  %v3214_v3 = vsub.f32 1.0, %v3009_v14  ;;  %v1695_v10 = vsel %vm915_vm4, %v3140_v55, 0.0  ;;  %v1783_v47 = vmul.f32 %v3183_v52, %v3183_v52 }
 0x282   :  { %v1694_v44 = vadd.f32 %v1693_v58, %v1692_v37  ;;  %v1745_v1 = vadd.f32 %v1744_v8, %v1743_v4  ;;  %v1748_v32 = vsel %vm915_vm4, %v1729_v45, 0.0  ;;  %v1801_v17 = vsel %vm915_vm4, %v1782_v31, 0.0 }
 0x283   :  { %v1800_v46 = vadd.f32 %v1799_v18, %v1798_v56  ;;  %v825_v7 = vmul.f32 0.5, %v2406_v42  ;;  %v1730_v60 = vmul.f32 %v3204_v36, %v3204_v36  ;;  %v3224_v53 = vadd.f32 0.5, %v626_v16 }
 0x284   :  { %v1747_v23 = vadd.f32 %v1746_v63, %v1745_v1  ;;  %v3227_v58 = vsub.f32 1.0, %v3206_v43  ;;  %v763_v8 = vsub.f32 %v3009_v14, %v3214_v3  ;;  %v747_v45 = vsub.f32 %v2897_v24, %v708_v13 }
 0x285   :  { %v3229_v4 = vadd.f32 0.5, %v825_v7  ;;  %v3235_v31 = vsub.f32 1.0, %v3067_v6  ;;  %v1696_v18 = vadd.f32 %v1695_v10, %v1694_v44  ;;  %v1697_v37 = vsel %vm915_vm4, %v3204_v36, 0.0 }
 0x286   :  { %4357 = vst [vmem:[#allocation36_spill] sm:$0xff] %v3227_v58  ;;  %v1803_v16 = vsel %vm915_vm4, %v1783_v47, 0.0  ;;  %v750_v56 = vsub.f32 %v2906_v25, %v714_v19  ;;  %v1802_v42 = vadd.f32 %v1801_v17, %v1800_v46  ;;  %v1785_v63 = vmul.f32 %v3206_v43, %v3206_v43  ;;  %v716_v47 = vpop.permute.xlu0 %715 }
 0x287   :  { %v3244_v1 = vsub.f32 1.0, %v3229_v4  ;;  %v779_v7 = vadd.f32 %v763_v8, %v747_v45  ;;  %v1750_v13 = vsel %vm915_vm4, %v1730_v60, 0.0  ;;  %v1784_v10 = vmul.f32 %v3229_v4, %v3229_v4 }
 0x288   :  { %v2408_v24 = vpop.eup %2407  ;;  %v766_v44 = vsub.f32 %v3067_v6, %v3235_v31  ;;  %v3253_v25 = vpack.c.bf16 %v3130_v22, %v3214_v3  ;;  %v1749_v17 = vadd.f32 %v1748_v32, %v1747_v23  ;;  %v1701_v46 = vsel %vm915_vm4, %v3227_v58, 0.0  ;;  %v718_v23 = vpop.permute.xlu1 %717 }
 0x289   :  { %4358 = vst [vmem:[#allocation37_spill] sm:$0xff] %v3244_v1  ;;  %v1731_v19 = vmul.f32 %v3244_v1, %v3244_v1  ;;  %v828_v8 = vmul.f32 0.5, %v2408_v24  ;;  %v1698_v60 = vadd.f32 %v1697_v37, %v1696_v18  ;;  %v795_v45 = vmul.f32 0.5, %v779_v7 }
 0x28a   :  { %v782_v36 = vadd.f32 %v766_v44, %v750_v56  ;;  %v3260_v55 = vsub.f32 1.0, %v3036_v39  ;;  %v1804_v61 = vadd.f32 %v1803_v16, %v1802_v42  ;;  %v4308_v35 = vunpack.c.l.bf16 %v3253_v25 }
 0x28b   :  { %v4307_v22 = vunpack.c.h.bf16 %v3253_v25  ;;  %v749_v32 = vsub.f32 %v2911_v26, %v712_v57  ;;  %vm1843_vm2 = vcmp.gt.f32.partialorder %v3137_v2, 0.5  ;;  %v1699_v33 = vsel %vm915_vm4, %v3244_v1, 0.0 }
 0x28c   :  { %v1752_v18 = vsel %vm915_vm4, %v1731_v19, 0.0  ;;  %v1805_v37 = vsel %vm915_vm4, %v1784_v10, 0.0  ;;  %2409 = vtanh.f32 %v795_v45  ;;  %v1751_v56 = vadd.f32 %v1750_v13, %v1749_v17  ;;  %v720_v13 = vpop.permute.xlu0 %719  ;;  %v722_v19 = vpop.permute.xlu1 %721 }
 0x28d   :  { %v3270_v7 = vadd.f32 0.5, %v828_v8  ;;  %v798_v16 = vmul.f32 0.5, %v782_v36  ;;  %v2300_v26 = vpack.i.bf16 %v4307_v22, %v4308_v35  ;;  %v1732_v57 = vmul.f32 %v3227_v58, %v3227_v58 }
 0x28e   :  { %v765_v42 = vsub.f32 %v3036_v39, %v3260_v55  ;;  %v3281_v24 = vsub.f32 1.0, %v3127_v21  ;;  %v752_v10 = vsub.f32 %v2920_v27, %v718_v23  ;;  %v1700_v44 = vadd.f32 %v1699_v33, %v1698_v60 }
 0x28f   :  { %v1753_v17 = vadd.f32 %v1752_v18, %v1751_v56  ;;  %v1806_v36 = vadd.f32 %v1805_v37, %v1804_v61  ;;  %2411 = vtanh.f32 %v798_v16  ;;  %2301 = vrot.lane.b32.xlu0 %v2300_v26, %s2540_s1  ;;  %v3288_v22 = vsub.f32 1.0, %v3137_v2 }
 0x290   :  { %v781_v8 = vadd.f32 %v765_v42, %v749_v32  ;;  %v768_v45 = vsub.f32 %v3127_v21, %v3281_v24  ;;  %v751_v35 = vsub.f32 %v2925_v28, %v716_v47  ;;  %v3292_v58 = vsub.f32 1.0, %v3270_v7 }
 0x291   :  { %v3295_v27 = vsub.f32 1.0, %v3210_v11  ;;  %v753_v33 = vsub.f32 %v2939_v30, %v720_v13  ;;  %v3299_v61 = vsub.f32 1.0, %v3224_v53  ;;  %v767_v23 = vsub.f32 %v3137_v2, %v3288_v22 }
 0x292   :  { %4359 = vst [vmem:[#allocation38_spill] sm:$0xff] %v3292_v58  ;;  %v797_v60 = vmul.f32 0.5, %v781_v8  ;;  %v784_v32 = vadd.f32 %v768_v45, %v752_v10  ;;  %v754_v18 = vsub.f32 %v2934_v29, %v722_v19  ;;  %v1754_v28 = vsel %vm915_vm4, %v1732_v57, 0.0 }
 0x293   :  { %v1807_v47 = vsel %vm915_vm4, %v1785_v63, 0.0  ;;  %v769_v37 = vsub.f32 %v3210_v11, %v3295_v27  ;;  %v770_v30 = vsub.f32 %v3224_v53, %v3299_v61  ;;  %v1702_v56 = vadd.f32 %v1701_v46, %v1700_v44 }
 0x294   :  { %2413 = vtanh.f32 %v797_v60  ;;  %v800_v16 = vmul.f32 0.5, %v784_v32  ;;  %v783_v26 = vadd.f32 %v767_v23, %v751_v35  ;;  %v1787_v42 = vmul.f32 %v3270_v7, %v3270_v7 }
 0x295   :  { %v1808_v10 = vadd.f32 %v1807_v47, %v1806_v36  ;;  %v785_v13 = vadd.f32 %v769_v37, %v753_v33  ;;  %v786_v29 = vadd.f32 %v770_v30, %v754_v18  ;;  %v1705_v63 = vsel %vm915_vm4, %v3292_v58, 0.0 }
 0x296   :  { %v2410_v19 = vpop.eup %2409  ;;  %v1755_v57 = vadd.f32 %v1754_v28, %v1753_v17  ;;  %2415 = vtanh.f32 %v800_v16  ;;  %v799_v8 = vmul.f32 0.5, %v783_v26  ;;  %v4360_v46 = vmov 0.0  }
 0x297   :  { %v827_v45 = vmul.f32 0.5, %v2410_v19  ;;  %v801_v1 = vmul.f32 0.5, %v785_v13  ;;  %v802_v43 = vmul.f32 0.5, %v786_v29  ;;  %v2153_v35 = vsel %vm1843_vm2, 1.0, %v4360_v46 }
 0x298   :  { %v1734_v44 = vmul.f32 %v3292_v58, %v3292_v58  ;;  %2417 = vtanh.f32 %v799_v8  ;;  %vm1844_vm3 = vcmp.gt.f32.partialorder %v3127_v21, 0.5  ;;  %vm1845_vm5 = vcmp.gt.f32.partialorder %v3210_v11, 0.5 }
 0x299   :  { %v2412_v36 = vpop.eup %2411  ;;  %v3321_v33 = vadd.f32 0.5, %v827_v45  ;;  %2419 = vtanh.f32 %v801_v1  ;;  %vm1846_vm6 = vcmp.gt.f32.partialorder %v3224_v53, 0.5  ;;  %v1899_v17 = vadd.f32 %v3088_v49, %v3125_v62 }
 0x29a   :  { %v830_v60 = vmul.f32 0.5, %v2412_v36  ;;  %2421 = vtanh.f32 %v802_v43  ;;  %v1900_v32 = vsel %vm915_vm4, %v3135_v54, 0.0  ;;  %v1902_v23 = vsel %vm915_vm4, %v2153_v35, 0.0 }
 0x29b   :  { %v1811_v18 = vsel %vm915_vm4, %v1787_v42, 0.0  ;;  %v3331_v28 = vsub.f32 1.0, %v3321_v33  ;;  %v1786_v1 = vmul.f32 %v3321_v33, %v3321_v33  ;;  %v1901_v47 = vadd.f32 %v1900_v32, %v1899_v17 }
 0x29c   :  { %v3335_v37 = vadd.f32 0.5, %v830_v60  ;;  %v2154_v49 = vsel %vm1844_vm3, 1.0, %v4360_v46  ;;  %v2155_v62 = vsel %vm1845_vm5, 1.0, %v4360_v46  ;;  %v2156_v54 = vsel %vm1846_vm6, 1.0, %v4360_v46 }
 0x29d   :  { %4361 = vst [vmem:[#allocation39_spill] sm:$0xff] %v3331_v28  ;;  %v1703_v43 = vsel %vm915_vm4, %v3331_v28, 0.0  ;;  %v1733_v30 = vmul.f32 %v3331_v28, %v3331_v28  ;;  %v1809_v16 = vsel %vm915_vm4, %v1786_v1, 0.0  ;;  %v1903_v26 = vadd.f32 %v1902_v23, %v1901_v47 }
 0x29e   :  { %v2414_v42 = vpop.eup %2413  ;;  %v1704_v13 = vadd.f32 %v1703_v43, %v1702_v56  ;;  %v1810_v29 = vadd.f32 %v1809_v16, %v1808_v10  ;;  %v3350_v19 = vsub.f32 1.0, %v3335_v37  ;;  %v1789_v8 = vmul.f32 %v3335_v37, %v3335_v37 }
 0x29f   :  { %v1758_v45 = vsel %vm915_vm4, %v1734_v44, 0.0  ;;  %v1756_v46 = vsel %vm915_vm4, %v1733_v30, 0.0  ;;  %v829_v35 = vmul.f32 0.5, %v2414_v42  ;;  %v1904_v36 = vsel %vm915_vm4, %v2154_v49, 0.0 }
 0x2a0   :  { %4362 = vst [vmem:[#allocation40_spill] sm:$0xff] %v3350_v19  ;;  %v2416_v17 = vpop.eup %2415  ;;  %v1757_v60 = vadd.f32 %v1756_v46, %v1755_v57  ;;  %v1905_v32 = vadd.f32 %v1904_v36, %v1903_v26  ;;  %v1906_v23 = vsel %vm915_vm4, %v2155_v62, 0.0  ;;  %v3360_v56 = vpack.c.bf16 %v2961_v59, %v2970_v40 }
 0x2a1   :  { %v1709_v10 = vsel %vm915_vm4, %v3350_v19, 0.0  ;;  %v3364_v1 = vadd.f32 0.5, %v829_v35  ;;  %v832_v44 = vmul.f32 0.5, %v2416_v17  ;;  %v1908_v47 = vsel %vm915_vm4, %v2156_v54, 0.0 }
 0x2a2   :  { %v2418_v43 = vpop.eup %2417  ;;  %v1736_v49 = vmul.f32 %v3350_v19, %v3350_v19  ;;  %v1815_v57 = vsel %vm915_vm4, %v1789_v8, 0.0  ;;  %v1706_v30 = vadd.f32 %v1705_v63, %v1704_v13  ;;  %v1812_v62 = vadd.f32 %v1811_v18, %v1810_v29 }
 0x2a3   :  { %v2420_v16 = vpop.eup %2419  ;;  %v3371_v26 = vsub.f32 1.0, %v3364_v1  ;;  %v1788_v42 = vmul.f32 %v3364_v1, %v3364_v1  ;;  %v3375_v46 = vadd.f32 0.5, %v832_v44  ;;  %v831_v35 = vmul.f32 0.5, %v2418_v43 }
 0x2a4   :  { %v2422_v36 = vpop.eup %2421  ;;  %v1759_v54 = vadd.f32 %v1758_v45, %v1757_v60  ;;  %v833_v17 = vmul.f32 0.5, %v2420_v16  ;;  %v1907_v58 = vadd.f32 %v1906_v23, %v1905_v32  ;;  %v4314_v19 = vunpack.c.h.bf16 %v3360_v56 }
 0x2a5   :  { %4363 = vst [vmem:[#allocation41_spill] sm:$0xff] %v3371_v26  ;;  %v1707_v63 = vsel %vm915_vm4, %v3371_v26, 0.0  ;;  %v1735_v18 = vmul.f32 %v3371_v26, %v3371_v26  ;;  %v1813_v13 = vsel %vm915_vm4, %v1788_v42, 0.0  ;;  %v3384_v29 = vsub.f32 1.0, %v3375_v46 }
 0x2a6   :  { %v1708_v8 = vadd.f32 %v1707_v63, %v1706_v30  ;;  %v1814_v44 = vadd.f32 %v1813_v13, %v1812_v62  ;;  %v1791_v45 = vmul.f32 %v3375_v46, %v3375_v46  ;;  %v3388_v60 = vadd.f32 0.5, %v831_v35  ;;  %917 = vst.msk [vmem:[%s4268_s7 + $0x8] sm:$0xff] %vm915_vm4, %v4314_v19 }
 0x2a7   :  { %4364 = vst [vmem:[#allocation42_spill] sm:$0xff] %v3384_v29  ;;  %v1762_v32 = vsel %vm915_vm4, %v1736_v49, 0.0  ;;  %v1760_v23 = vsel %vm915_vm4, %v1735_v18, 0.0  ;;  %v3398_v43 = vadd.f32 0.5, %v833_v17  ;;  %v834_v30 = vmul.f32 0.5, %v2422_v36 }
 0x2a8   :  { %v1761_v62 = vadd.f32 %v1760_v23, %v1759_v54  ;;  %v1816_v16 = vadd.f32 %v1815_v57, %v1814_v44  ;;  %v3401_v42 = vsub.f32 1.0, %v3388_v60  ;;  %v1909_v35 = vadd.f32 %v1908_v47, %v1907_v58 }
 0x2a9   :  { %v1738_v63 = vmul.f32 %v3384_v29, %v3384_v29  ;;  %v1790_v13 = vmul.f32 %v3388_v60, %v3388_v60  ;;  %v3408_v19 = vsub.f32 1.0, %v3398_v43  ;;  %v3410_v49 = vadd.f32 0.5, %v834_v30 }
 0x2aa   :  { %4365 = vst [vmem:[#allocation43_spill] sm:$0xff] %v3401_v42  ;;  %v1819_v17 = vsel %vm915_vm4, %v1791_v45, 0.0  ;;  %v1711_v57 = vsel %vm915_vm4, %v3401_v42, 0.0  ;;  %v1737_v36 = vmul.f32 %v3401_v42, %v3401_v42  ;;  %v1710_v58 = vadd.f32 %v1709_v10, %v1708_v8 }
 0x2ab   :  { %4366 = vst [vmem:[#allocation44_spill] sm:$0xff] %v3408_v19  ;;  %4367 = vst [vmem:[#allocation45_spill] sm:$0xff] %v3410_v49  ;;  %v1817_v47 = vsel %vm915_vm4, %v1790_v13, 0.0  ;;  %v1792_v54 = vmul.f32 %v3398_v43, %v3398_v43  ;;  %v3421_v18 = vsub.f32 1.0, %v3410_v49  ;;  %v1793_v44 = vmul.f32 %v3410_v49, %v3410_v49 }
 0x2ac   :  { %v1818_v23 = vadd.f32 %v1817_v47, %v1816_v16  ;;  %v1712_v45 = vadd.f32 %v1711_v57, %v1710_v58  ;;  %v1739_v30 = vmul.f32 %v3408_v19, %v3408_v19  ;;  %v1763_v26 = vadd.f32 %v1762_v32, %v1761_v62 }
 0x2ad   :  { %4368 = vst [vmem:[#allocation46_spill] sm:$0xff] %v3421_v18  ;;  %v1713_v10 = vsel %vm915_vm4, %v3384_v29, 0.0  ;;  %v1715_v8 = vsel %vm915_vm4, %v3408_v19, 0.0  ;;  %v1740_v13 = vmul.f32 %v3421_v18, %v3421_v18  ;;  %v1764_v42 = vsel %vm915_vm4, %v1737_v36, 0.0 }
 0x2ae   :  { %v1714_v28 = vadd.f32 %v1713_v10, %v1712_v45  ;;  %v1717_v16 = vsel %vm915_vm4, %v3421_v18, 0.0  ;;  %v1765_v57 = vadd.f32 %v1764_v42, %v1763_v26  ;;  %v1820_v58 = vadd.f32 %v1819_v17, %v1818_v23 }
 0x2af   :  { %v1766_v47 = vsel %vm915_vm4, %v1738_v63, 0.0  ;;  %v1768_v32 = vsel %vm915_vm4, %v1739_v30, 0.0  ;;  %v1821_v62 = vsel %vm915_vm4, %v1792_v54, 0.0  ;;  %v1823_v29 = vsel %vm915_vm4, %v1793_v44, 0.0 }
 0x2b0   :  { %v1716_v19 = vadd.f32 %v1715_v8, %v1714_v28  ;;  %v1767_v40 = vadd.f32 %v1766_v47, %v1765_v57  ;;  %v1770_v49 = vsel %vm915_vm4, %v1740_v13, 0.0  ;;  %v1822_v59 = vadd.f32 %v1821_v62, %v1820_v58 }
 0x2b1   :  { %v1910_v36 = vrot.slane %v1909_v35, 4  ;;  %v3443_v45 = vpack.c.bf16 %v2967_v38, %v2976_v50  ;;  %v3447_v26 = vpack.c.bf16 %v3299_v61, %v3295_v27  ;;  %v3451_v42 = vpack.c.bf16 %v2991_v12, %v2983_v51 }
 0x2b2   :  { %v1718_v63 = vadd.f32 %v1717_v16, %v1716_v19  ;;  %v1769_v17 = vadd.f32 %v1768_v32, %v1767_v40  ;;  %v1824_v28 = vadd.f32 %v1823_v29, %v1822_v59  ;;  %v4328_v54 = vunpack.c.l.bf16 %v3360_v56 }
 0x2b3   :  { %v4330_v44 = vunpack.c.h.bf16 %v3443_v45  ;;  %v4329_v8 = vunpack.c.h.bf16 %v3451_v42  ;;  %v1911_v13 = vadd.f32 %v1910_v36, %v1909_v35  ;;  %v3476_v29 = vpack.c.bf16 %v3235_v31, %v3260_v55 }
 0x2b4   :  { %v1719_v23 = vrot.slane %v1718_v63, 4  ;;  %v1771_v30 = vadd.f32 %v1770_v49, %v1769_v17  ;;  %v1825_v10 = vrot.slane %v1824_v28, 4  ;;  %916 = vst.msk [vmem:[%s4268_s7] sm:$0xff] %vm915_vm4, %v4328_v54  ;;  %v3480_v35 = vpack.c.bf16 %v3006_v5, %v2994_v15 }
 0x2b5   :  { %919 = vst.msk [vmem:[%s4268_s7 + $0x18] sm:$0xff] %vm915_vm4, %v4330_v44  ;;  %921 = vst.msk [vmem:[%s4268_s7 + $0x28] sm:$0xff] %vm915_vm4, %v4329_v8  ;;  %v4324_v49 = vunpack.c.l.bf16 %v3443_v45  ;;  %v3485_v16 = vpack.c.bf16 %v3021_v9, %v3009_v14  ;;  %v4323_v32 = vunpack.c.l.bf16 %v3451_v42  ;;  %v1912_v62 = vrot.slane %v1911_v13, 2 }
 0x2b6   :  { %v1720_v59 = vadd.f32 %v1719_v23, %v1718_v63  ;;  %v1772_v40 = vrot.slane %v1771_v30, 4  ;;  %v1826_v19 = vadd.f32 %v1825_v10, %v1824_v28  ;;  %v3490_v36 = vpack.c.bf16 %v3281_v24, %v3288_v22 }
 0x2b7   :  { %v4326_v63 = vunpack.c.h.bf16 %v3480_v35  ;;  %918 = vst.msk [vmem:[%s4268_s7 + $0x10] sm:$0xff] %vm915_vm4, %v4324_v49  ;;  %v4325_v17 = vunpack.c.h.bf16 %v3485_v16  ;;  %920 = vst.msk [vmem:[%s4268_s7 + $0x20] sm:$0xff] %vm915_vm4, %v4323_v32  ;;  %v4327_v10 = vunpack.c.l.bf16 %v3480_v35  ;;  %v1913_v32 = vadd.f32 %v1912_v62, %v1911_v13 }
 0x2b8   :  { %v1721_v57 = vrot.slane %v1720_v59, 2  ;;  %v1773_v58 = vadd.f32 %v1772_v40, %v1771_v30  ;;  %v1827_v47 = vrot.slane %v1826_v19, 2  ;;  %v911_v49 = vunpack.c.l.bf16 %v3490_v36 }
 0x2b9   :  { %923 = vst.msk [vmem:[%s4268_s7 + $0x38] sm:$0xff] %vm915_vm4, %v4326_v63  ;;  %925 = vst.msk [vmem:[%s4268_s7 + $0x48] sm:$0xff] %vm915_vm4, %v4325_v17  ;;  %v874_v13 = vpack.c.bf16 %v3224_v53, %v3210_v11  ;;  %v910_v44 = vunpack.c.h.bf16 %v3476_v29  ;;  %vm1093_vm13 = vcmask 23568   ;;  %vm1190_vm14 = vcmask 31768  }
 0x2ba   :  { %v1722_v28 = vadd.f32 %v1721_v57, %v1720_v59  ;;  %v1774_v23 = vrot.slane %v1773_v58, 2  ;;  %v1828_v30 = vadd.f32 %v1827_v47, %v1826_v19  ;;  %v4331_v59 = vunpack.c.l.bf16 %v3485_v16  ;;  %922 = vst.msk [vmem:[%s4268_s7 + $0x30] sm:$0xff] %vm915_vm4, %v4327_v10 }
 0x2bb   :  { %v909_v57 = vunpack.c.l.bf16 %v3476_v29  ;;  %v3523_v47 = vpack.c.bf16 %v3067_v6, %v3036_v39  ;;  %v889_v54 = vunpack.c.l.bf16 %v874_v13  ;;  %v4369_v29 = vunpack.c.l.bf16 %v3253_v25 }
 0x2bc   :  { %v1723_v40 = vrot.slane %v1722_v28, 1  ;;  %v1775_v19 = vadd.f32 %v1774_v23, %v1773_v58  ;;  %924 = vst.msk [vmem:[%s4268_s7 + $0x40] sm:$0xff] %vm915_vm4, %v4331_v59  ;;  %v3540_v58 = vpack.c.bf16 %v3127_v21, %v3137_v2  ;;  %v1829_v17 = vrot.slane %v1828_v30, 1 }
 0x2bd   :  { %v4333_v63 = vunpack.c.l.bf16 %v3523_v47  ;;  %v912_v59 = vunpack.c.h.bf16 %v3490_v36  ;;  %930 = vst.msk [vmem:[%s4268_s7 + $0x70] sm:$0xff] %vm915_vm4, %v889_v54  ;;  %v3570_v36 = vsub.f32 %v3214_v3, %v4369_v29  ;;  %v890_v18 = vunpack.c.h.bf16 %v874_v13 }
 0x2be   :  { %v1724_v62 = vadd.f32 %v1723_v40, %v1722_v28  ;;  %v1776_v23 = vrot.slane %v1775_v19, 1  ;;  %v4332_v10 = vunpack.c.l.bf16 %v3540_v58  ;;  %v1914_v28 = vrot.slane %v1913_v32, 1 }
 0x2bf   :  { %926 = vst.msk [vmem:[%s4268_s7 + $0x50] sm:$0xff] %vm915_vm4, %v4333_v63  ;;  %v3561_v40 = vsub.f32 %v3210_v11, %v889_v54  ;;  %v886_v11 = vunpack.c.h.bf16 %v3523_v47  ;;  %v913_v63 = vunpack.c.l.bf16 %v3447_v26  ;;  %v914_v54 = vunpack.c.h.bf16 %v3447_v26  ;;  %931 = vst.msk [vmem:[%s4268_s7 + $0x78] sm:$0xff] %vm915_vm4, %v890_v18 }
 0x2c0   :  { %1920 = vperm.xlu1 %2305, %v1724_v62   ;;  %v1777_v8 = vadd.f32 %v1776_v23, %v1775_v19  ;;  %928 = vst.msk [vmem:[%s4268_s7 + $0x60] sm:$0xff] %vm915_vm4, %v4332_v10  ;;  %v3573_v19 = vsub.f32 %v3260_v55, %v909_v57  ;;  %v1830_v62 = vadd.f32 %v1829_v17, %v1828_v30  ;;  %v888_v10 = vunpack.c.h.bf16 %v3540_v58 }
 0x2c1   :  { %v3576_v23 = vsub.f32 %v3288_v22, %v911_v49  ;;  %v2307_v3 = vpack.i.bf16 %v910_v44, %v909_v57  ;;  %927 = vst.msk [vmem:[%s4268_s7 + $0x58] sm:$0xff] %vm915_vm4, %v886_v11  ;;  %v3596_v55 = vsub.f32 %v3224_v53, %v890_v18  ;;  %v3603_v26 = vsub.f32 %v3235_v31, %v910_v44  ;;  %v1953_v31 = vld [vmem:[#allocation2] sm:$0x1] }
 0x2c2   :  { %1927 = vperm.xlu0 %2306, %v1777_v8   ;;  %v3589_v22 = vsub.f32 %v3127_v21, %v888_v10  ;;  %929 = vst.msk [vmem:[%s4268_s7 + $0x68] sm:$0xff] %vm915_vm4, %v888_v10  ;;  %v1915_v21 = vadd.f32 %v1914_v28, %v1913_v32  ;;  %v3607_v8 = vsub.f32 %v3281_v24, %v912_v59  ;;  %v3623_v24 = vmul.f32 0.0078125, %v1953_v31 }
 0x2c3   :  { %v3610_v17 = vsub.f32 %v3295_v27, %v913_v63  ;;  %v3613_v53 = vsub.f32 %v3299_v61, %v914_v54  ;;  %v2312_v30 = vpack.i.bf16 %v912_v59, %v911_v49  ;;  %vm996_vm4 = vcmask 15368   ;;  %v4370_v27 = vld [vmem:[#allocation35_spill] sm:$0xff] }
 0x2c4   :  { %1935 = vperm.xlu1 %2305, %v1830_v62   ;;  %1974 = vst.msk [vmem:[#allocation4] sm:$0x1] %vm1374_vm1, %v3623_v24  ;;  %v2317_v44 = vpack.i.bf16 %v914_v54, %v913_v63  ;;  %v4375_v49 = vunpack.c.h.bf16 %v3451_v42  ;;  %v4376_v10 = vunpack.c.l.bf16 %v3360_v56  ;;  %v4377_v59 = vld [vmem:[#allocation15_spill] sm:$0xff]  ;;  %v4381_v54 = vunpack.c.l.bf16 %v3451_v42 }
 0x2c5   :  { %v4385_v42 = vunpack.c.l.bf16 %v3540_v58  ;;  %v4389_v58 = vld [vmem:[#allocation23_spill] sm:$0xff] }
 0x2c6   :  { %2308 = vrot.lane.b32.xlu0 %v2307_v3, %s2540_s1  ;;  %v1018_v32 = vsub.f32 %v2991_v12, %v4375_v49  ;;  %v1013_v57 = vsub.f32 %v4377_v59, %v4376_v10  ;;  %v4379_v12 = vunpack.c.l.bf16 %v3443_v45  ;;  %v1017_v3 = vsub.f32 %v2983_v51, %v4381_v54 }
 0x2c7   :  { %v4384_v51 = vunpack.c.l.bf16 %v3523_v47 }
 0x2c8   :  { %1943 = vperm.xlu1 %2305, %v1915_v21   ;;  %v4382_v21 = vunpack.c.l.bf16 %v3480_v35 }
 0x2ca   :  { %1225 = vperm.xlu0 %2306, %v3151_v41  }
 0x2cc   :  { %2313 = vrot.lane.b32.xlu1 %v2312_v30, %s2540_s1 }
 0x2ce   :  { %1235 = vperm.xlu0 %2306, %v3178_v48  }
 0x2d0   :  { %1230 = vperm.xlu1 %2305, %v3119_v34  }
 0x2d2   :  { %1245 = vperm.xlu0 %2306, %v3112_v20  }
 0x2d4   :  { %1240 = vperm.xlu1 %2305, %v3096_v0  }
 0x2d6   :  { %1255 = vperm.xlu0 %2306, %v3229_v4  }
 0x2d8   :  { %1250 = vperm.xlu1 %2305, %v3183_v52  }
 0x2da   :  { %1265 = vperm.xlu0 %2306, %v3321_v33   ;;  %v2282_v41 = vpop.permute.xlu0 %2281  ;;  %v4371_v33 = vunpack.c.h.bf16 %v3360_v56  ;;  %v1015_v56 = vsub.f32 %v2976_v50, %v4379_v12 }
 0x2db   :  { %v2284_v48 = vunpack.i.h.bf16 %v2282_v41  ;;  %v2283_v34 = vunpack.i.l.bf16 %v2282_v41  ;;  %v4383_v41 = vunpack.c.l.bf16 %v3485_v16 }
 0x2dc   :  { %1260 = vperm.xlu1 %2305, %v4370_v27   ;;  %v4386_v27 = vld [vmem:[#allocation20_spill] sm:$0xff] }
 0x2dd   :  { %998 = vst.msk [vmem:[%s4268_s7 + $0x8] sm:$0xff] %vm996_vm4, %v2284_v48  ;;  %997 = vst.msk [vmem:[%s4268_s7] sm:$0xff] %vm996_vm4, %v2283_v34  ;;  %v1954_v48 = vld [vmem:[#allocation2 + $0x1] sm:$0x1] }
 0x2de   :  { %1275 = vperm.xlu0 %2306, %v3364_v1   ;;  %v4372_v1 = vld [vmem:[#allocation14_spill] sm:$0xff] }
 0x2e0   :  { %1270 = vperm.xlu1 %2305, %v3270_v7   ;;  %v2287_v52 = vpop.permute.xlu1 %2286 }
 0x2e1   :  { %v2289_v0 = vunpack.i.h.bf16 %v2287_v52  ;;  %v2288_v20 = vunpack.i.l.bf16 %v2287_v52  ;;  %v4387_v52 = vunpack.c.l.bf16 %v4386_v27 }
 0x2e2   :  { %1285 = vperm.xlu0 %2306, %v3388_v60   ;;  %v1014_v60 = vsub.f32 %v4372_v1, %v4371_v33  ;;  %v4392_v33 = vld [vmem:[#allocation25_spill] sm:$0xff] }
 0x2e3   :  { %999 = vst.msk [vmem:[%s4268_s7 + $0x10] sm:$0xff] %vm996_vm4, %v2288_v20  ;;  %1000 = vst.msk [vmem:[%s4268_s7 + $0x18] sm:$0xff] %vm996_vm4, %v2289_v0  ;;  %v4393_v1 = vunpack.c.l.bf16 %v4392_v33 }
 0x2e4   :  { %1280 = vperm.xlu1 %2305, %v3335_v37   ;;  %v2542_v37 = vmov 2  }
 0x2e6   :  { %1295 = vperm.xlu0 %2306, %v3398_v43   ;;  %v2292_v4 = vpop.permute.xlu0 %2291  ;;  %v4374_v43 = vunpack.c.h.bf16 %v3443_v45  ;;  %v1019_v45 = vsub.f32 %v2994_v15, %v4382_v21  ;;  %v1023_v15 = vsub.f32 %v3036_v39, %v4384_v51  ;;  %v4388_v39 = vld [vmem:[#allocation19_spill] sm:$0xff] }
 0x2e7   :  { %v2294_v7 = vunpack.i.h.bf16 %v2292_v4  ;;  %v2293_v61 = vunpack.i.l.bf16 %v2292_v4  ;;  %v1110_v0 = vsub.f32 %v4388_v39, %v4387_v52  ;;  %v4390_v4 = vunpack.c.l.bf16 %v4389_v58 }
 0x2e8   :  { %1290 = vperm.xlu1 %2305, %v3375_v46   ;;  %v4373_v46 = vld [vmem:[#allocation45_spill] sm:$0xff]  ;;  %v1016_v18 = vsub.f32 %v2967_v38, %v4374_v43  ;;  %v4378_v38 = vunpack.c.h.bf16 %v3480_v35  ;;  %v1025_v35 = vsub.f32 %v3137_v2, %v4385_v42  ;;  %v4397_v43 = vld [vmem:[#allocation26_spill] sm:$0xff] }
 0x2e9   :  { %1001 = vst.msk [vmem:[%s4268_s7 + $0x20] sm:$0xff] %vm996_vm4, %v2293_v61  ;;  %1002 = vst.msk [vmem:[%s4268_s7 + $0x28] sm:$0xff] %vm996_vm4, %v2294_v7  ;;  %v4391_v2 = vld [vmem:[#allocation21_spill] sm:$0xff] }
 0x2ea   :  { %1047 = vrot.lane.b32.xlu0 %v1014_v60, %s2541_s30  ;;  %v1020_v63 = vsub.f32 %v3006_v5, %v4378_v38  ;;  %v4380_v5 = vunpack.c.h.bf16 %v3485_v16  ;;  %v1112_v7 = vsub.f32 %v4391_v2, %v4390_v4  ;;  %v4394_v60 = vld [vmem:[#allocation18_spill] sm:$0xff] }
 0x2eb   :  { %2322 = vset.pattern.permute.xlu0 %v2542_v37  ;;  %v4395_v37 = vld [vmem:[#allocation32_spill] sm:$0xff] }
 0x2ec   :  { %1300 = vperm.xlu1 %2305, %v4373_v46   ;;  %v1022_v62 = vsub.f32 %v3021_v9, %v4380_v5  ;;  %v1021_v9 = vsub.f32 %v3009_v14, %v4383_v41  ;;  %v1961_v14 = vmul.f32 128.0, %v3623_v24  ;;  %v4396_v46 = vunpack.c.l.bf16 %v4395_v37 }
 0x2ee   :  { %1051 = vrot.lane.b32.xlu0 %v1016_v18, %s2541_s30  ;;  %v1962_v16 = vmul.f32 %v1961_v14, %v3623_v24  ;;  %v1116_v18 = vsub.f32 %v4397_v43, %v4396_v46  ;;  %v4400_v43 = vunpack.c.h.bf16 %v4389_v58 }
 0x2f0   :  { %2318 = vrot.lane.b32.xlu1 %v2317_v44, %s2540_s1  ;;  %v1963_v34 = vsub.f32 %v1954_v48, %v1962_v16 }
 0x2f2   :  { %1055 = vrot.lane.b32.xlu0 %v1018_v32, %s2541_s30  ;;  %v2297_v13 = vpop.permute.xlu1 %2296  ;;  %v1965_v20 = vmul.f32 0.007874016, %v1963_v34 }
 0x2f3   :  { %v2299_v28 = vunpack.i.h.bf16 %v2297_v13  ;;  %v2298_v29 = vunpack.i.l.bf16 %v2297_v13  ;;  %v34_v13 = vlaneseq }
 0x2f4   :  { %1045 = vrot.lane.b32.xlu1 %v1013_v57, %s2541_s30  ;;  %v1966_v61 = vmax.f32 %v1965_v20, 0.0 }
 0x2f5   :  { %1003 = vst.msk [vmem:[%s4268_s7 + $0x30] sm:$0xff] %vm996_vm4, %v2298_v29  ;;  %1004 = vst.msk [vmem:[%s4268_s7 + $0x38] sm:$0xff] %vm996_vm4, %v2299_v28 }
 0x2f6   :  { %1059 = vrot.lane.b32.xlu0 %v1020_v63, %s2541_s30  ;;  %2423 = vrsqrt.f32 %v1966_v61  ;;  %vm1969_vm7 = vcmp.eq.f32.partialorder %v1966_v61, inf  ;;  %v1972_v32 = vand.u32 2147483648, %v1966_v61  ;;  %vm1971_vm8 = vcmp.eq.f32.partialorder %v1966_v61, 0.0 }
 0x2f8   :  { %1049 = vrot.lane.b32.xlu1 %v1015_v56, %s2541_s30 }
 0x2fa   :  { %1063 = vrot.lane.b32.xlu0 %v1022_v62, %s2541_s30 }
 0x2fc   :  { %1053 = vrot.lane.b32.xlu1 %v1017_v3, %s2541_s30 }
 0x300   :  { %1057 = vrot.lane.b32.xlu1 %v1019_v45, %s2541_s30  ;;  %v2424_v44 = vpop.eup %2423 }
 0x301   :  { %v2302_v50 = vpop.permute.xlu0 %2301  ;;  %v1968_v49 = vmul.f32 %v2424_v44, %v1966_v61 }
 0x302   :  { %v2304_v30 = vunpack.i.h.bf16 %v2302_v50  ;;  %v2303_v31 = vunpack.i.l.bf16 %v2302_v50 }
 0x303   :  { %v1970_v10 = vsel %vm1969_vm7, %v1966_v61, %v1968_v49  ;;  %v2429_v61 = vld [vmem:[%s4261_s0 + $0x8] sm:$0xff] }
 0x304   :  { %1061 = vrot.lane.b32.xlu1 %v1021_v9, %s2541_s30  ;;  %1005 = vst.msk [vmem:[%s4268_s7 + $0x40] sm:$0xff] %vm996_vm4, %v2303_v31  ;;  %1006 = vst.msk [vmem:[%s4268_s7 + $0x48] sm:$0xff] %vm996_vm4, %v2304_v30  ;;  %v3751_v59 = vsel %vm1971_vm8, %v1972_v32, %v1970_v10  ;;  %v1916_v30 = vld [vmem:[#allocation3] sm:$0x1]  ;;  %v1024_v10 = vsub.f32 %v3067_v6, %v886_v11 }
 0x305   :  { %v1992_v57 = vadd.f32 1e-07, %v3751_v59  ;;  %v1997_v62 = vmul.f32 %v3751_v59, %v3751_v59 }
 0x307   :  { %v1993_v28 = vmul.f32 %v1992_v57, %v1992_v57  ;;  %v4402_v57 = vunpack.c.h.bf16 %v4392_v33  ;;  %v2430_v33 = vld [vmem:[%s4261_s0 + $0x20] sm:$0xff] }
 0x308   :  { %1065 = vrot.lane.b32.xlu1 %v1023_v15, %s2541_s30  ;;  %v2427_v15 = vld [vmem:[%s4261_s0] sm:$0xff] }
 0x309   :  { %2425 = vrcp.f32 %v1993_v28  ;;  %v4403_v28 = vld [vmem:[#allocation22_spill] sm:$0xff] }
 0x30c   :  { %1069 = vrot.lane.b32.xlu1 %v1025_v35, %s2541_s30 }
 0x310   :  { %1073 = vrot.lane.b32.xlu1 %v3561_v40, %s2541_s30  ;;  %v1114_v40 = vsub.f32 %v4394_v60, %v4393_v1  ;;  %v4398_v60 = vunpack.c.h.bf16 %v4386_v27  ;;  %v4404_v27 = vunpack.c.h.bf16 %v4395_v37 }
 0x313   :  { %v3767_v54 = vpop.eup %2425 }
 0x314   :  { %1142 = vrot.lane.b32.xlu1 %v1110_v0, %s2543_s18  ;;  %v1998_v51 = vmul.f32 %v3767_v54, %v1997_v62  ;;  %v2428_v0 = vld [vmem:[%s4261_s0 + $0x10] sm:$0xff] }
 0x316   :  { %v1999_v39 = vsel %vm1374_vm1, %v1998_v51, 0.0 }
 0x318   :  { %1146 = vrot.lane.b32.xlu1 %v1112_v7, %s2543_s18 }
 0x31c   :  { %1150 = vrot.lane.b32.xlu1 %v1114_v40, %s2543_s18  ;;  %v4399_v40 = vld [vmem:[#allocation17_spill] sm:$0xff] }
 0x31d   :  { %v3799_v46 = vsub.f32 %v4399_v40, %v4398_v60  ;;  %v2433_v40 = vld [vmem:[%s4261_s0 + $0x28] sm:$0xff] }
 0x320   :  { %1154 = vrot.lane.b32.xlu1 %v1116_v18, %s2543_s18  ;;  %v4401_v18 = vld [vmem:[#allocation16_spill] sm:$0xff] }
 0x321   :  { %v3804_v44 = vsub.f32 %v4401_v18, %v4400_v43 }
 0x324   :  { %1158 = vrot.lane.b32.xlu1 %v3570_v36, %s2543_s18  ;;  %v3755_v36 = vand.u32 127, %v34_v13 }
 0x326   :  { %vm1917_vm9 = vcmp.eq.s32.totalorder %v3755_v36, 0  ;;  %vm1924_vm10 = vcmp.eq.s32.totalorder %v3755_v36, 1  ;;  %vm1932_vm11 = vcmp.eq.s32.totalorder %v3755_v36, 2  ;;  %vm1940_vm12 = vcmp.eq.s32.totalorder %v3755_v36, 3 }
 0x328   :  { %1162 = vrot.lane.b32.xlu1 %v3573_v19, %s2543_s18 }
 0x32c   :  { %1166 = vrot.lane.b32.xlu1 %v3576_v23, %s2543_s18 }
 0x33f   :  { %v1921_v29 = vpop.permute.xlu1 %1920 }
 0x340   :  { %v1923_v23 = vsel %vm1917_vm9, %v1921_v29, 0.0  ;;  %v3813_v29 = vsub.f32 %v4403_v28, %v4402_v57 }
 0x341   :  { %v1928_v19 = vpop.permute.xlu0 %1927 }
 0x342   :  { %v1930_v38 = vsel %vm1924_vm10, %v1928_v19, 0.0  ;;  %v4405_v19 = vld [vmem:[#allocation24_spill] sm:$0xff] }
 0x343   :  { %v1931_v63 = vadd.f32 %v1930_v38, %v1923_v23  ;;  %v1936_v12 = vpop.permute.xlu1 %1935  ;;  %v3818_v23 = vsub.f32 %v4405_v19, %v4404_v27  ;;  %v4406_v27 = vmov 0  }
 0x344   :  { %v1938_v56 = vsel %vm1932_vm11, %v1936_v12, 0.0 }
 0x345   :  { %v2309_v5 = vpop.permute.xlu0 %2308  ;;  %v1939_v45 = vadd.f32 %v1938_v56, %v1931_v63 }
 0x346   :  { %v2311_v3 = vunpack.i.h.bf16 %v2309_v5  ;;  %v2310_v21 = vunpack.i.l.bf16 %v2309_v5 }
 0x347   :  { %v1944_v50 = vpop.permute.xlu1 %1943 }
 0x348   :  { %v1946_v31 = vsel %vm1940_vm12, %v1944_v50, 0.0  ;;  %1007 = vst.msk [vmem:[%s4268_s7 + $0x50] sm:$0xff] %vm996_vm4, %v2310_v21  ;;  %1008 = vst.msk [vmem:[%s4268_s7 + $0x58] sm:$0xff] %vm996_vm4, %v2311_v3  ;;  %v2431_v21 = vld [vmem:[%s4261_s0 + $0x18] sm:$0xff] }
 0x349   :  { %v1947_v41 = vadd.f32 %v1946_v31, %v1939_v45  ;;  %v1226_v9 = vpop.permute.xlu0 %1225 }
 0x34a   :  { %v1303_v14 = vmul.f32 %v2427_v15, %v1226_v9 }
 0x34b   :  { %v1948_v42 = vadd.f32 %v1947_v41, %v1916_v30  ;;  %v2314_v35 = vpop.permute.xlu1 %2313 }
 0x34c   :  { %v1319_v16 = vmul.f32 %v1303_v14, %v1226_v9  ;;  %v2316_v48 = vunpack.i.h.bf16 %v2314_v35  ;;  %v2315_v34 = vunpack.i.l.bf16 %v2314_v35  ;;  %v1417_v49 = vsel %vm40_vm0, %v1303_v14, 0.0  ;;  %v2432_v35 = vld [vmem:[%s4261_s0 + $0x30] sm:$0xff] }
 0x34d   :  { %1949 = vst [vmem:[#allocation3] sm:$0x1] %v1948_v42  ;;  %v1236_v52 = vpop.permute.xlu0 %1235 }
 0x34e   :  { %v1305_v20 = vmul.f32 %v2428_v0, %v1236_v52  ;;  %1009 = vst.msk [vmem:[%s4268_s7 + $0x60] sm:$0xff] %vm996_vm4, %v2315_v34  ;;  %1010 = vst.msk [vmem:[%s4268_s7 + $0x68] sm:$0xff] %vm996_vm4, %v2316_v48  ;;  %v1633_v4 = vmul.f32 %v2427_v15, %v1319_v16  ;;  %v1593_v58 = vsel %vm40_vm0, %v1319_v16, 0.0 }
 0x34f   :  { %v1231_v2 = vpop.permute.xlu1 %1230 }
 0x350   :  { %v1321_v7 = vmul.f32 %v1305_v20, %v1236_v52  ;;  %v1304_v1 = vmul.f32 %v2429_v61, %v1231_v2  ;;  %2000 = vadd.xlane.f32.xlu1 %v1999_v39  ;;  %v1649_v47 = vsel %vm40_vm0, %v1633_v4, 0.0  ;;  %v1420_v6 = vsel %vm40_vm0, %v1305_v20, 0.0 }
 0x351   :  { %v1246_v32 = vpop.permute.xlu0 %1245 }
 0x352   :  { %v1635_v38 = vmul.f32 %v2428_v0, %v1321_v7  ;;  %v1320_v63 = vmul.f32 %v1304_v1, %v1231_v2  ;;  %v1418_v12 = vsel %vm40_vm0, %v1304_v1, 0.0  ;;  %v1307_v56 = vmul.f32 %v2430_v33, %v1246_v32 }
 0x353   :  { %v1419_v11 = vadd.f32 %v1418_v12, %v1417_v49  ;;  %v1241_v37 = vpop.permute.xlu1 %1240  ;;  %v1596_v5 = vsel %vm40_vm0, %v1321_v7, 0.0 }
 0x354   :  { %v1594_v62 = vsel %vm40_vm0, %v1320_v63, 0.0  ;;  %v1634_v3 = vmul.f32 %v2429_v61, %v1320_v63  ;;  %v1306_v45 = vmul.f32 %v2431_v21, %v1241_v37  ;;  %v3832_v50 = vld [vmem:[#allocation3] sm:$0x1]  ;;  %v1652_v30 = vsel %vm40_vm0, %v1635_v38, 0.0 }
 0x355   :  { %v1595_v31 = vadd.f32 %v1594_v62, %v1593_v58  ;;  %v1323_v41 = vmul.f32 %v1307_v56, %v1246_v32  ;;  %v1421_v9 = vadd.f32 %v1420_v6, %v1419_v11  ;;  %v1256_v51 = vpop.permute.xlu0 %1255  ;;  %2008 = vperm.xlu0 %2322, %v3832_v50   ;;  %v1424_v34 = vsel %vm40_vm0, %v1307_v56, 0.0 }
 0x356   :  { %v1650_v15 = vsel %vm40_vm0, %v1634_v3, 0.0  ;;  %v1322_v14 = vmul.f32 %v1306_v45, %v1241_v37  ;;  %v1422_v42 = vsel %vm40_vm0, %v1306_v45, 0.0  ;;  %v1309_v16 = vmul.f32 %v2432_v35, %v1256_v51 }
 0x357   :  { %v1651_v48 = vadd.f32 %v1650_v15, %v1649_v47  ;;  %v1637_v52 = vmul.f32 %v2430_v33, %v1323_v41  ;;  %v1423_v39 = vadd.f32 %v1422_v42, %v1421_v9  ;;  %v1251_v0 = vpop.permute.xlu1 %1250  ;;  %v1597_v20 = vadd.f32 %v1596_v5, %v1595_v31  ;;  %v2435_v33 = vld [vmem:[%s4261_s0 + $0x38] sm:$0xff] }
 0x358   :  { %v1598_v4 = vsel %vm40_vm0, %v1322_v14, 0.0  ;;  %v1636_v2 = vmul.f32 %v2431_v21, %v1322_v14  ;;  %v1325_v7 = vmul.f32 %v1309_v16, %v1256_v51  ;;  %v1600_v61 = vsel %vm40_vm0, %v1323_v41, 0.0  ;;  %v2436_v14 = vld [vmem:[%s4261_s0 + $0x50] sm:$0xff] }
 0x359   :  { %v1656_v1 = vsel %vm40_vm0, %v1637_v52, 0.0  ;;  %v1653_v60 = vadd.f32 %v1652_v30, %v1651_v48  ;;  %v1308_v43 = vmul.f32 %v2433_v40, %v1251_v0  ;;  %v1266_v18 = vpop.permute.xlu0 %1265  ;;  %1067 = vrot.lane.b32.xlu0 %v1024_v10, %s2541_s30  ;;  %v1599_v49 = vadd.f32 %v1598_v4, %v1597_v20  ;;  %v2434_v10 = vld [vmem:[%s4261_s0 + $0x40] sm:$0xff] }
 0x35a   :  { %v1654_v32 = vsel %vm40_vm0, %v1636_v2, 0.0  ;;  %v1428_v57 = vsel %vm40_vm0, %v1309_v16, 0.0  ;;  %v1639_v28 = vmul.f32 %v2432_v35, %v1325_v7  ;;  %2323 = vset.pattern.permute.xlu0 %v4406_v27  ;;  %v1425_v38 = vadd.f32 %v1424_v34, %v1423_v39  ;;  %v4407_v2 = vld [vmem:[#allocation31_spill] sm:$0xff] }
 0x35b   :  { %v1655_v19 = vadd.f32 %v1654_v32, %v1653_v60  ;;  %v1324_v58 = vmul.f32 %v1308_v43, %v1251_v0  ;;  %v1426_v63 = vsel %vm40_vm0, %v1308_v43, 0.0  ;;  %v1261_v12 = vpop.permute.xlu1 %1260  ;;  %v1604_v47 = vsel %vm40_vm0, %v1325_v7, 0.0 }
 0x35c   :  { %v1601_v6 = vadd.f32 %v1600_v61, %v1599_v49  ;;  %v1311_v11 = vmul.f32 %v2434_v10, %v1266_v18  ;;  %v1310_v56 = vmul.f32 %v2435_v33, %v1261_v12  ;;  %v1427_v37 = vadd.f32 %v1426_v63, %v1425_v38  ;;  %v2437_v49 = vld [vmem:[%s4261_s0 + $0x48] sm:$0xff] }
 0x35d   :  { %v1602_v5 = vsel %vm40_vm0, %v1324_v58, 0.0  ;;  %v1638_v62 = vmul.f32 %v2433_v40, %v1324_v58  ;;  %v1657_v3 = vadd.f32 %v1656_v1, %v1655_v19  ;;  %v1276_v21 = vpop.permute.xlu0 %1275  ;;  %1071 = vrot.lane.b32.xlu0 %v3589_v22, %s2541_s30  ;;  %v1660_v45 = vsel %vm40_vm0, %v1639_v28, 0.0  ;;  %v2438_v19 = vld [vmem:[%s4261_s0 + $0x60] sm:$0xff] }
 0x35e   :  { %v1603_v30 = vadd.f32 %v1602_v5, %v1601_v6  ;;  %v1327_v31 = vmul.f32 %v1311_v11, %v1266_v18  ;;  %v1326_v41 = vmul.f32 %v1310_v56, %v1261_v12  ;;  %v1429_v51 = vadd.f32 %v1428_v57, %v1427_v37 }
 0x35f   :  { %v1658_v9 = vsel %vm40_vm0, %v1638_v62, 0.0  ;;  %v1430_v15 = vsel %vm40_vm0, %v1310_v56, 0.0  ;;  %v1313_v42 = vmul.f32 %v2436_v14, %v1276_v21  ;;  %v1271_v35 = vpop.permute.xlu1 %1270  ;;  %v1432_v22 = vsel %vm40_vm0, %v1311_v11, 0.0  ;;  %v4408_v11 = vld [vmem:[#allocation30_spill] sm:$0xff] }
 0x360   :  { %v1659_v16 = vadd.f32 %v1658_v9, %v1657_v3  ;;  %v1641_v48 = vmul.f32 %v2434_v10, %v1327_v31  ;;  %v1605_v34 = vadd.f32 %v1604_v47, %v1603_v30  ;;  %v1431_v52 = vadd.f32 %v1430_v15, %v1429_v51  ;;  %v2439_v47 = vld [vmem:[%s4261_s0 + $0x58] sm:$0xff] }
 0x361   :  { %v1606_v39 = vsel %vm40_vm0, %v1326_v41, 0.0  ;;  %v1640_v0 = vmul.f32 %v2435_v33, %v1326_v41  ;;  %v1329_v20 = vmul.f32 %v1313_v42, %v1276_v21  ;;  %v1286_v4 = vpop.permute.xlu0 %1285  ;;  %1459 = vperm.xlu1 %2305, %v4407_v2   ;;  %1075 = vrot.lane.b32.xlu0 %v3596_v55, %s2541_s30  ;;  %v1608_v7 = vsel %vm40_vm0, %v1327_v31, 0.0  ;;  %v2441_v2 = vld [vmem:[%s4261_s0 + $0x68] sm:$0xff] }
 0x362   :  { %v1664_v61 = vsel %vm40_vm0, %v1641_v48, 0.0  ;;  %v1607_v1 = vadd.f32 %v1606_v39, %v1605_v34  ;;  %v1661_v60 = vadd.f32 %v1660_v45, %v1659_v16  ;;  %v1436_v43 = vsel %vm40_vm0, %v1313_v42, 0.0  ;;  %v2440_v42 = vld [vmem:[%s4261_s0 + $0x70] sm:$0xff] }
 0x363   :  { %v1662_v40 = vsel %vm40_vm0, %v1640_v0, 0.0  ;;  %v1643_v18 = vmul.f32 %v2436_v14, %v1329_v20  ;;  %v1312_v32 = vmul.f32 %v2437_v49, %v1271_v35  ;;  %v1281_v57 = vpop.permute.xlu1 %1280  ;;  %v1433_v27 = vadd.f32 %v1432_v22, %v1431_v52  ;;  %v4409_v22 = vld [vmem:[#allocation27_spill] sm:$0xff] }
 0x364   :  { %v1663_v28 = vadd.f32 %v1662_v40, %v1661_v60  ;;  %v1609_v55 = vadd.f32 %v1608_v7, %v1607_v1  ;;  %v1315_v58 = vmul.f32 %v2438_v19, %v1286_v4  ;;  %v1612_v38 = vsel %vm40_vm0, %v1329_v20, 0.0  ;;  %v2442_v40 = vld [vmem:[%s4261_s0 + $0x78] sm:$0xff] }
 0x365   :  { %v1328_v63 = vmul.f32 %v1312_v32, %v1271_v35  ;;  %v1434_v12 = vsel %vm40_vm0, %v1312_v32, 0.0  ;;  %v1314_v6 = vmul.f32 %v2439_v47, %v1281_v57  ;;  %v1296_v10 = vpop.permute.xlu0 %1295  ;;  %1464 = vperm.xlu1 %2305, %v4408_v11   ;;  %1144 = vrot.lane.b32.xlu0 %v3799_v46, %s2543_s18  ;;  %v1668_v33 = vsel %vm40_vm0, %v1643_v18, 0.0 }
 0x366   :  { %v1435_v56 = vadd.f32 %v1434_v12, %v1433_v27  ;;  %v1665_v37 = vadd.f32 %v1664_v61, %v1663_v28  ;;  %v1331_v5 = vmul.f32 %v1315_v58, %v1286_v4  ;;  %v1440_v41 = vsel %vm40_vm0, %v1315_v58, 0.0  ;;  %v4410_v27 = vld [vmem:[#allocation29_spill] sm:$0xff] }
 0x367   :  { %v1610_v62 = vsel %vm40_vm0, %v1328_v63, 0.0  ;;  %v1642_v3 = vmul.f32 %v2437_v49, %v1328_v63  ;;  %v1330_v21 = vmul.f32 %v1314_v6, %v1281_v57  ;;  %v1438_v45 = vsel %vm40_vm0, %v1314_v6, 0.0  ;;  %v1291_v30 = vpop.permute.xlu1 %1290 }
 0x368   :  { %v1611_v31 = vadd.f32 %v1610_v62, %v1609_v55  ;;  %v1645_v9 = vmul.f32 %v2438_v19, %v1331_v5  ;;  %v1437_v51 = vadd.f32 %v1436_v43, %v1435_v56  ;;  %v1317_v35 = vmul.f32 %v2440_v42, %v1296_v10 }
 0x369   :  { %v1666_v15 = vsel %vm40_vm0, %v1642_v3, 0.0  ;;  %v1614_v46 = vsel %vm40_vm0, %v1330_v21, 0.0  ;;  %v1644_v14 = vmul.f32 %v2439_v47, %v1330_v21  ;;  %v1048_v16 = vpop.permute.xlu0 %1047  ;;  %1474 = vperm.xlu1 %2305, %v4409_v22   ;;  %1148 = vrot.lane.b32.xlu0 %v3804_v44, %s2543_s18  ;;  %v1616_v34 = vsel %vm40_vm0, %v1331_v5, 0.0 }
 0x36a   :  { %v1667_v48 = vadd.f32 %v1666_v15, %v1665_v37  ;;  %v1439_v52 = vadd.f32 %v1438_v45, %v1437_v51  ;;  %v1613_v39 = vadd.f32 %v1612_v38, %v1611_v31  ;;  %1095 = vst.msk [vmem:[%s4268_s7 + $0x8] sm:$0xff] %vm1093_vm13, %v1048_v16  ;;  %v1672_v0 = vsel %vm40_vm0, %v1645_v9, 0.0  ;;  %v4411_v45 = vld [vmem:[#allocation37_spill] sm:$0xff] }
 0x36b   :  { %v1670_v20 = vsel %vm40_vm0, %v1644_v14, 0.0  ;;  %v1333_v4 = vmul.f32 %v1317_v35, %v1296_v10  ;;  %v1316_v44 = vmul.f32 %v2441_v2, %v1291_v30  ;;  %v1301_v7 = vpop.permute.xlu1 %1300  ;;  %v1444_v18 = vsel %vm40_vm0, %v1317_v35, 0.0 }
 0x36c   :  { %v1615_v61 = vadd.f32 %v1614_v46, %v1613_v39  ;;  %v1669_v1 = vadd.f32 %v1668_v33, %v1667_v48  ;;  %v1441_v60 = vadd.f32 %v1440_v41, %v1439_v52  ;;  %v1318_v43 = vmul.f32 %v2442_v40, %v1301_v7  ;;  %v4413_v46 = vld [vmem:[#allocation28_spill] sm:$0xff]  ;;  %v4414_v48 = vld [vmem:[#allocation39_spill] sm:$0xff] }
 0x36d   :  { %v1620_v49 = vsel %vm40_vm0, %v1333_v4, 0.0  ;;  %v1332_v32 = vmul.f32 %v1316_v44, %v1291_v30  ;;  %v1442_v57 = vsel %vm40_vm0, %v1316_v44, 0.0  ;;  %v1052_v28 = vpop.permute.xlu0 %1051  ;;  %1479 = vperm.xlu1 %2305, %v4410_v27   ;;  %1152 = vrot.lane.b32.xlu0 %v3813_v29, %s2543_s18  ;;  %v1647_v63 = vmul.f32 %v2440_v42, %v1333_v4  ;;  %v4415_v44 = vld [vmem:[#allocation41_spill] sm:$0xff]  ;;  %v1592_v27 = vld [vmem:[#allocation2 + $0x4] sm:$0x1] }
 0x36e   :  { %v1671_v55 = vadd.f32 %v1670_v20, %v1669_v1  ;;  %v1443_v19 = vadd.f32 %v1442_v57, %v1441_v60  ;;  %v1617_v58 = vadd.f32 %v1616_v34, %v1615_v61  ;;  %v1334_v38 = vmul.f32 %v1318_v43, %v1301_v7  ;;  %1097 = vst.msk [vmem:[%s4268_s7 + $0x18] sm:$0xff] %vm1093_vm13, %v1052_v28 }
 0x36f   :  { %v1618_v12 = vsel %vm40_vm0, %v1332_v32, 0.0  ;;  %v1646_v47 = vmul.f32 %v2441_v2, %v1332_v32  ;;  %v1446_v6 = vsel %vm40_vm0, %v1318_v43, 0.0  ;;  %v2319_v10 = vpop.permute.xlu1 %2318  ;;  %v1676_v9 = vsel %vm40_vm0, %v1647_v63, 0.0  ;;  %v4416_v32 = vld [vmem:[#allocation43_spill] sm:$0xff]  ;;  %v1632_v63 = vld [vmem:[#allocation2 + $0x5] sm:$0x1] }
 0x370   :  { %v1619_v11 = vadd.f32 %v1618_v12, %v1617_v58  ;;  %v1673_v33 = vadd.f32 %v1672_v0, %v1671_v55  ;;  %v1445_v56 = vadd.f32 %v1444_v18, %v1443_v19  ;;  %v1622_v29 = vsel %vm40_vm0, %v1334_v38, 0.0  ;;  %v4417_v12 = vld [vmem:[#allocation44_spill] sm:$0xff] }
 0x371   :  { %v1674_v37 = vsel %vm40_vm0, %v1646_v47, 0.0  ;;  %v1648_v5 = vmul.f32 %v2442_v40, %v1334_v38  ;;  %v2321_v62 = vunpack.i.h.bf16 %v2319_v10  ;;  %v2320_v3 = vunpack.i.l.bf16 %v2319_v10  ;;  %v1056_v21 = vpop.permute.xlu0 %1055  ;;  %1489 = vperm.xlu1 %2305, %v4411_v45   ;;  %1156 = vrot.lane.b32.xlu0 %v3818_v23, %s2543_s18 }
 0x372   :  { %v1675_v30 = vadd.f32 %v1674_v37, %v1673_v33  ;;  %v1447_v31 = vadd.f32 %v1446_v6, %v1445_v56  ;;  %v1621_v41 = vadd.f32 %v1620_v49, %v1619_v11  ;;  %1099 = vst.msk [vmem:[%s4268_s7 + $0x28] sm:$0xff] %vm1093_vm13, %v1056_v21  ;;  %v4412_v15 = vunpack.c.h.bf16 %v3253_v25  ;;  %v1416_v49 = vld [vmem:[#allocation2 + $0x2] sm:$0x1]  ;;  %v4418_v11 = vld [vmem:[#allocation33_spill] sm:$0xff] }
 0x373   :  { %v1678_v51 = vsel %vm40_vm0, %v1648_v5, 0.0  ;;  %1011 = vst.msk [vmem:[%s4268_s7 + $0x70] sm:$0xff] %vm996_vm4, %v2320_v3  ;;  %1012 = vst.msk [vmem:[%s4268_s7 + $0x78] sm:$0xff] %vm996_vm4, %v2321_v62  ;;  %v1046_v23 = vpop.permute.xlu1 %1045  ;;  %v2025_v33 = vmul.f32 0.0078125, %v3832_v50  ;;  %v2544_v56 = vmov 3  }
 0x374   :  { %v1119_v14 = vsub.f32 %v4413_v46, %v4412_v15  ;;  %v1448_v42 = vrot.slane %v1447_v31, 4  ;;  %v1623_v35 = vadd.f32 %v1622_v29, %v1621_v41  ;;  %v1677_v16 = vadd.f32 %v1676_v9, %v1675_v30  ;;  %1094 = vst.msk [vmem:[%s4268_s7] sm:$0xff] %vm1093_vm13, %v1046_v23 }
 0x375   :  { %v1060_v22 = vpop.permute.xlu0 %1059  ;;  %1499 = vperm.xlu1 %2305, %v4414_v48   ;;  %v1983_v9 = vshrl.u32 %v34_v13, 7  ;;  %v2006_v46 = vmul.f32 %v3623_v24, %v3623_v24 }
 0x376   :  { %1160 = vrot.lane.b32.xlu0 %v1119_v14, %s2543_s18  ;;  %v1449_v34 = vadd.f32 %v1448_v42, %v1447_v31  ;;  %v1624_v52 = vrot.slane %v1623_v35, 4  ;;  %v1679_v39 = vadd.f32 %v1678_v51, %v1677_v16  ;;  %1101 = vst.msk [vmem:[%s4268_s7 + $0x38] sm:$0xff] %vm1093_vm13, %v1060_v22  ;;  %v2003_v51 = vmul.f32 2.0, %v3623_v24 }
 0x377   :  { %v1050_v25 = vpop.permute.xlu1 %1049  ;;  %v4045_v15 = vsub.s32 0, %v1983_v9  ;;  %v4424_v9 = vld [vmem:[#allocation46_spill] sm:$0xff] }
 0x378   :  { %v1450_v0 = vrot.slane %v1449_v34, 2  ;;  %v1625_v20 = vadd.f32 %v1624_v52, %v1623_v35  ;;  %v1680_v4 = vrot.slane %v1679_v39, 4  ;;  %1096 = vst.msk [vmem:[%s4268_s7 + $0x10] sm:$0xff] %vm1093_vm13, %v1050_v25  ;;  %v1996_v25 = vmul.f32 0.5, %v3832_v50 }
 0x379   :  { %v1064_v2 = vpop.permute.xlu0 %1063  ;;  %1509 = vperm.xlu1 %2305, %v4415_v44   ;;  %v60_v44 = vld [vmem:[%s4263_s2 + $0x8] sm:$0xff] }
 0x37a   :  { %1164 = vrot.lane.b32.xlu0 %v3603_v26, %s2543_s18  ;;  %v1451_v7 = vadd.f32 %v1450_v0, %v1449_v34  ;;  %v1626_v61 = vrot.slane %v1625_v20, 2  ;;  %v1681_v1 = vadd.f32 %v1680_v4, %v1679_v39  ;;  %1103 = vst.msk [vmem:[%s4268_s7 + $0x48] sm:$0xff] %vm1093_vm13, %v1064_v2 }
 0x37b   :  { %v1054_v60 = vpop.permute.xlu1 %1053 }
 0x37c   :  { %v1452_v40 = vrot.slane %v1451_v7, 1  ;;  %v1627_v43 = vadd.f32 %v1626_v61, %v1625_v20  ;;  %v1682_v18 = vrot.slane %v1681_v1, 2  ;;  %1098 = vst.msk [vmem:[%s4268_s7 + $0x20] sm:$0xff] %vm1093_vm13, %v1054_v60 }
 0x37d   :  { %1519 = vperm.xlu1 %2305, %v4416_v32  }
 0x37e   :  { %1168 = vrot.lane.b32.xlu0 %v3607_v8, %s2543_s18  ;;  %v1453_v26 = vadd.f32 %v1452_v40, %v1451_v7  ;;  %v1628_v57 = vrot.slane %v1627_v43, 1  ;;  %v1683_v28 = vadd.f32 %v1682_v18, %v1681_v1 }
 0x37f   :  { %v1058_v55 = vpop.permute.xlu1 %1057 }
 0x380   :  { %v1454_v19 = vadd.f32 %v1453_v26, %v1416_v49  ;;  %v1629_v58 = vadd.f32 %v1628_v57, %v1627_v43  ;;  %v1684_v38 = vrot.slane %v1683_v28, 1  ;;  %1100 = vst.msk [vmem:[%s4268_s7 + $0x30] sm:$0xff] %vm1093_vm13, %v1058_v55  ;;  %v4419_v55 = vld [vmem:[#allocation34_spill] sm:$0xff] }
 0x381   :  { %1529 = vperm.xlu1 %2305, %v4417_v12  }
 0x382   :  { %1170 = vrot.lane.b32.xlu0 %v3610_v17, %s2543_s18  ;;  %1455 = vst.msk [vmem:[#allocation2 + $0x2] sm:$0x1] %vm1374_vm1, %v1454_v19  ;;  %v1630_v8 = vadd.f32 %v1629_v58, %v1592_v27  ;;  %v1685_v47 = vadd.f32 %v1684_v38, %v1683_v28  ;;  %v4420_v38 = vld [vmem:[#allocation36_spill] sm:$0xff] }
 0x383   :  { %v1062_v6 = vpop.permute.xlu1 %1061 }
 0x384   :  { %1631 = vst.msk [vmem:[#allocation2 + $0x4] sm:$0x1] %vm1374_vm1, %v1630_v8  ;;  %v1686_v10 = vadd.f32 %v1685_v47, %v1632_v63  ;;  %v4421_v8 = vld [vmem:[#allocation38_spill] sm:$0xff] }
 0x385   :  { %1102 = vst.msk [vmem:[%s4268_s7 + $0x40] sm:$0xff] %vm1093_vm13, %v1062_v6  ;;  %1979 = vperm.xlu1 %2305, %v3832_v50  }
 0x386   :  { %1469 = vperm.xlu0 %2323, %v4418_v11   ;;  %1687 = vst.msk [vmem:[#allocation2 + $0x5] sm:$0x1] %vm1374_vm1, %v1686_v10  ;;  %v4422_v10 = vld [vmem:[#allocation40_spill] sm:$0xff] }
 0x387   :  { %v1066_v17 = vpop.permute.xlu1 %1065 }
 0x388   :  { %1104 = vst.msk [vmem:[%s4268_s7 + $0x50] sm:$0xff] %vm1093_vm13, %v1066_v17 }
 0x389   :  { %2325 = vset.pattern.permute.xlu1 %v2544_v56  ;;  %v4001_v29 = vld [vmem:[#allocation2 + $0x2] sm:$0x1] }
 0x38a   :  { %2038 = vperm.xlu1 %2325, %v2025_v33   ;;  %v1975_v37 = vmul.f32 0.0078125, %v4001_v29  ;;  %v62_v33 = vld [vmem:[%s4263_s2 + $0x18] sm:$0xff] }
 0x38b   :  { %v1070_v5 = vpop.permute.xlu1 %1069  ;;  %v1957_v23 = vld [vmem:[#allocation2 + $0x4] sm:$0x1] }
 0x38c   :  { %1106 = vst.msk [vmem:[%s4268_s7 + $0x60] sm:$0xff] %vm1093_vm13, %v1070_v5  ;;  %v2004_v14 = vmul.f32 %v2003_v51, %v1957_v23  ;;  %v63_v5 = vld [vmem:[%s4263_s2 + $0x20] sm:$0xff] }
 0x38d   :  { %1976 = vst.msk [vmem:[#allocation8] sm:$0x1] %vm1374_vm1, %v1975_v37  ;;  %v1958_v35 = vld [vmem:[#allocation2 + $0x5] sm:$0x1]  ;;  %v61_v37 = vld [vmem:[%s4263_s2 + $0x10] sm:$0xff] }
 0x38e   :  { %1172 = vrot.lane.b32.xlu1 %v3613_v53, %s2543_s18  ;;  %v2005_v48 = vsub.f32 %v1958_v35, %v2004_v14 }
 0x38f   :  { %v1074_v62 = vpop.permute.xlu1 %1073 }
 0x390   :  { %1108 = vst.msk [vmem:[%s4268_s7 + $0x70] sm:$0xff] %vm1093_vm13, %v1074_v62  ;;  %v4423_v62 = vld [vmem:[#allocation42_spill] sm:$0xff] }
 0x393   :  { %v1143_v3 = vpop.permute.xlu1 %1142 }
 0x394   :  { %1191 = vst.msk [vmem:[%s4268_s7] sm:$0xff] %vm1190_vm14, %v1143_v3 }
 0x397   :  { %v1147_v21 = vpop.permute.xlu1 %1146 }
 0x398   :  { %1193 = vst.msk [vmem:[%s4268_s7 + $0x10] sm:$0xff] %vm1190_vm14, %v1147_v21 }
 0x39b   :  { %v1151_v53 = vpop.permute.xlu1 %1150 }
 0x39c   :  { %1195 = vst.msk [vmem:[%s4268_s7 + $0x20] sm:$0xff] %vm1190_vm14, %v1151_v53 }
 0x39f   :  { %v1155_v45 = vpop.permute.xlu1 %1154 }
 0x3a0   :  { %1197 = vst.msk [vmem:[%s4268_s7 + $0x30] sm:$0xff] %vm1190_vm14, %v1155_v45 }
 0x3a3   :  { %v1159_v30 = vpop.permute.xlu1 %1158 }
 0x3a4   :  { %1199 = vst.msk [vmem:[%s4268_s7 + $0x40] sm:$0xff] %vm1190_vm14, %v1159_v30 }
 0x3a7   :  { %v1163_v31 = vpop.permute.xlu1 %1162 }
 0x3a8   :  { %1201 = vst.msk [vmem:[%s4268_s7 + $0x50] sm:$0xff] %vm1190_vm14, %v1163_v31 }
 0x3ab   :  { %v1167_v41 = vpop.permute.xlu1 %1166 }
 0x3ac   :  { %1203 = vst.msk [vmem:[%s4268_s7 + $0x60] sm:$0xff] %vm1190_vm14, %v1167_v41 }
 0x3d4   :  { %v2009_v42 = vpop.permute.xlu0 %2008 }
 0x3d5   :  { %v2014_v16 = vrot.slane %v2009_v42, %v4045_v15  ;;  %v2545_v42 = vmov 1  }
 0x3d7   :  { %v2015_v22 = vmul.f32 %v2014_v16, %v2006_v46 }
 0x3d8   :  { %v1068_v34 = vpop.permute.xlu0 %1067 }
 0x3d9   :  { %1105 = vst.msk [vmem:[%s4268_s7 + $0x58] sm:$0xff] %vm1093_vm13, %v1068_v34  ;;  %v2016_v13 = vadd.f32 %v2015_v22, %v2005_v48 }
 0x3db   :  { %v2017_v52 = vmul.f32 %v3767_v54, %v2016_v13  ;;  %v59_v54 = vld [vmem:[%s4263_s2] sm:$0xff] }
 0x3dc   :  { %v1072_v39 = vpop.permute.xlu0 %1071 }
 0x3dd   :  { %1107 = vst.msk [vmem:[%s4268_s7 + $0x68] sm:$0xff] %vm1093_vm13, %v1072_v39  ;;  %v2001_v0 = vpop.xlane.xlu1 %2000  ;;  %v2018_v20 = vsel %vm1374_vm1, %v2017_v52, 0.0  ;;  %v65_v52 = vld [vmem:[%s4263_s2 + $0x30] sm:$0xff]  ;;  %v64_v39 = vld [vmem:[%s4263_s2 + $0x28] sm:$0xff] }
 0x3de   :  { %v4061_v4 = vmul.f32 %v2001_v0, %v1996_v25  ;;  %2019 = vadd.xlane.f32.xlu0 %v2018_v20 }
 0x3e0   :  { %v1076_v2 = vpop.permute.xlu0 %1075 }
 0x3e1   :  { %1109 = vst.msk [vmem:[%s4268_s7 + $0x78] sm:$0xff] %vm1093_vm13, %v1076_v2  ;;  %v1460_v50 = vpop.permute.xlu1 %1459  ;;  %v67_v2 = vld [vmem:[%s4263_s2 + $0x40] sm:$0xff] }
 0x3e2   :  { %v1537_v7 = vmul.f32 %v1460_v50, %v59_v54 }
 0x3e4   :  { %v1145_v61 = vpop.permute.xlu0 %1144  ;;  %v1553_v40 = vsel %vm40_vm0, %v1537_v7, 0.0 }
 0x3e5   :  { %1192 = vst.msk [vmem:[%s4268_s7 + $0x8] sm:$0xff] %vm1190_vm14, %v1145_v61  ;;  %v1465_v1 = vpop.permute.xlu1 %1464 }
 0x3e6   :  { %v1538_v60 = vmul.f32 %v1465_v1, %v60_v44 }
 0x3e8   :  { %v1554_v43 = vsel %vm40_vm0, %v1538_v60, 0.0  ;;  %v1149_v18 = vpop.permute.xlu0 %1148 }
 0x3e9   :  { %v1555_v49 = vadd.f32 %v1554_v43, %v1553_v40  ;;  %1194 = vst.msk [vmem:[%s4268_s7 + $0x18] sm:$0xff] %vm1190_vm14, %v1149_v18  ;;  %v1475_v32 = vpop.permute.xlu1 %1474 }
 0x3ea   :  { %v1540_v21 = vmul.f32 %v1475_v32, %v62_v33 }
 0x3ec   :  { %v1153_v26 = vpop.permute.xlu0 %1152  ;;  %v1558_v51 = vsel %vm40_vm0, %v1540_v21, 0.0 }
 0x3ed   :  { %1196 = vst.msk [vmem:[%s4268_s7 + $0x28] sm:$0xff] %vm1190_vm14, %v1153_v26  ;;  %v1480_v57 = vpop.permute.xlu1 %1479 }
 0x3ee   :  { %v1541_v30 = vmul.f32 %v1480_v57, %v63_v5 }
 0x3f0   :  { %v1157_v28 = vpop.permute.xlu0 %1156  ;;  %v1560_v14 = vsel %vm40_vm0, %v1541_v30, 0.0 }
 0x3f1   :  { %1198 = vst.msk [vmem:[%s4268_s7 + $0x38] sm:$0xff] %vm1190_vm14, %v1157_v28  ;;  %v1490_v27 = vpop.permute.xlu1 %1489 }
 0x3f2   :  { %v1543_v0 = vmul.f32 %v1490_v27, %v65_v52 }
 0x3f4   :  { %1484 = vperm.xlu0 %2323, %v4419_v55   ;;  %v1161_v19 = vpop.permute.xlu0 %1160 }
 0x3f5   :  { %1200 = vst.msk [vmem:[%s4268_s7 + $0x48] sm:$0xff] %vm1190_vm14, %v1161_v19  ;;  %v4096_v58 = vpop.permute.xlu1 %1499 }
 0x3f8   :  { %1494 = vperm.xlu0 %2323, %v4420_v38   ;;  %v1165_v63 = vpop.permute.xlu0 %1164 }
 0x3f9   :  { %1202 = vst.msk [vmem:[%s4268_s7 + $0x58] sm:$0xff] %vm1190_vm14, %v1165_v63  ;;  %v4103_v12 = vpop.permute.xlu1 %1509 }
 0x3fc   :  { %1504 = vperm.xlu0 %2323, %v4421_v8   ;;  %v1169_v47 = vpop.permute.xlu0 %1168 }
 0x3fd   :  { %1204 = vst.msk [vmem:[%s4268_s7 + $0x68] sm:$0xff] %vm1190_vm14, %v1169_v47  ;;  %v4110_v6 = vpop.permute.xlu1 %1519 }
 0x400   :  { %1514 = vperm.xlu0 %2323, %v4422_v10   ;;  %v1171_v11 = vpop.permute.xlu0 %1170 }
 0x401   :  { %1205 = vst.msk [vmem:[%s4268_s7 + $0x70] sm:$0xff] %vm1190_vm14, %v1171_v11  ;;  %v4117_v17 = vpop.permute.xlu1 %1529 }
 0x404   :  { %1524 = vperm.xlu0 %2323, %v4423_v62  }
 0x405   :  { %v1470_v3 = vpop.permute.xlu0 %1469  ;;  %v4129_v45 = vpop.permute.xlu1 %1979 }
 0x406   :  { %v1539_v53 = vmul.f32 %v1470_v3, %v61_v37 }
 0x408   :  { %v1556_v31 = vsel %vm40_vm0, %v1539_v53, 0.0  ;;  %1534 = vperm.xlu0 %2323, %v4424_v9  }
 0x409   :  { %v1557_v41 = vadd.f32 %v1556_v31, %v1555_v49  ;;  %v4134_v23 = vpop.permute.xlu1 %2038 }
 0x40b   :  { %v1559_v46 = vadd.f32 %v1558_v51, %v1557_v41 }
 0x40c   :  { %2324 = vset.pattern.permute.xlu0 %v2545_v42 }
 0x40d   :  { %v1561_v35 = vadd.f32 %v1560_v14, %v1559_v46  ;;  %v1173_v16 = vpop.permute.xlu1 %1172 }
 0x40e   :  { %1206 = vst.msk [vmem:[%s4268_s7 + $0x78] sm:$0xff] %vm1190_vm14, %v1173_v16 }
 0x46b   :  { %v2020_v22 = vpop.xlane.xlu0 %2019 }
 0x46c   :  { %v2021_v48 = vmul.f32 128.0, %v2020_v22 }
 0x46e   :  { %v2022_v34 = vadd.f32 %v2021_v48, %v4061_v4  ;;  %v66_v4 = vld [vmem:[%s4263_s2 + $0x38] sm:$0xff] }
 0x470   :  { %v2024_v13 = vmul.f32 0.00024414063, %v2022_v34 }
 0x472   :  { %2028 = vperm.xlu0 %2324, %v2024_v13  }
 0x473   :  { %v1485_v25 = vpop.permute.xlu0 %1484 }
 0x474   :  { %v1542_v20 = vmul.f32 %v1485_v25, %v64_v39 }
 0x476   :  { %v1562_v54 = vsel %vm40_vm0, %v1542_v20, 0.0  ;;  %2326 = vset.pattern.permute.xlu0 %v2544_v56 }
 0x477   :  { %v1563_v50 = vadd.f32 %v1562_v54, %v1561_v35  ;;  %v1495_v44 = vpop.permute.xlu0 %1494 }
 0x478   :  { %2454 = shalt.err (!%p2451_p4)
}
 0x479   :  { %s2455_s27 = scalar_lea.hbm %s4269_s8, 16 }
 0x47a   :  { %p2456_p5 = scmp.ne.s32.totalorder %s4269_s8, %s2455_s27  ;;  %p2459_p6 = scmp.lt.u32.totalorder %s2455_s27, %s4269_s8 }
 0x47c   :  { %p2461_p7 = pnand %p2459_p6, %p2456_p5 }
 0x47e   :  { %2464 = shalt.err (!%p2461_p7)
}
 0x47f   :  { %2059 = dma.vmem_to_hbm [thread:$0]  %s2057_s24, 16, %s4269_s8, [#allocation5]   ;;  %v1564_v56 = vsel %vm40_vm0, %v1543_v0, 0.0  ;;  %v1545_v7 = vmul.f32 %v4096_v58, %v67_v2  ;;  %v1544_v61 = vmul.f32 %v1495_v44, %v66_v4  ;;  %v69_v1 = vld [vmem:[%s4263_s2 + $0x50] sm:$0xff]  ;;  %v68_v40 = vld [vmem:[%s4263_s2 + $0x48] sm:$0xff]  ;;  %v1505_v49 = vpop.permute.xlu0 %1504  ;;  %v71_v28 = vld [vmem:[%s4263_s2 + $0x60] sm:$0xff]  ;;  %v1985_v39 = vrot.slane %v4129_v45, %v4045_v15 }
 0x480   :  { %v1565_v60 = vadd.f32 %v1564_v56, %v1563_v50  ;;  %v1547_v26 = vmul.f32 %v4103_v12, %v69_v1  ;;  %v1546_v57 = vmul.f32 %v1505_v49, %v68_v40  ;;  %v70_v55 = vld [vmem:[%s4263_s2 + $0x58] sm:$0xff]  ;;  %v1549_v8 = vmul.f32 %v4110_v6, %v71_v28  ;;  %v73_v12 = vld [vmem:[%s4263_s2 + $0x70] sm:$0xff]  ;;  %v72_v11 = vld [vmem:[%s4263_s2 + $0x68] sm:$0xff]  ;;  %s2548_s24 = smov [#allocation8]  }
 0x481   :  { %v1566_v43 = vsel %vm40_vm0, %v1544_v61, 0.0  ;;  %v1568_v32 = vsel %vm40_vm0, %v1545_v7, 0.0  ;;  %v1551_v3 = vmul.f32 %v4117_v17, %v73_v12  ;;  %v74_v53 = vld [vmem:[%s4263_s2 + $0x78] sm:$0xff]  ;;  %v1456_v34 = vld [vmem:[#allocation2 + $0x3] sm:$0x1]  ;;  %v1986_v25 = vmul.f32 %v1985_v39, %v3623_v24  ;;  %s2547_s2 = smov [#allocation6]  }
 0x482   :  { %v1567_v18 = vadd.f32 %v1566_v43, %v1565_v60  ;;  %v1570_v19 = vsel %vm40_vm0, %v1546_v57, 0.0  ;;  %v1572_v63 = vsel %vm40_vm0, %v1547_v26, 0.0  ;;  %v1576_v62 = vsel %vm40_vm0, %v1549_v8, 0.0  ;;  %s2066_s23 = sshll.u32 %s2547_s2, 4  ;;  %s2076_s5 = sshll.u32 %s2548_s24, 4  ;;  %s2067_s23 = int_to_ptr.vmem [resolvable:$true] %s2066_s23  ;;  %s4209_s5 = int_to_ptr.vmem [resolvable:$true] %s2076_s5 }
 0x483   :  { %v1515_v38 = vpop.permute.xlu0 %1514  ;;  %v1580_v9 = vsel %vm40_vm0, %v1551_v3, 0.0  ;;  %v1987_v20 = vadd.f32 %v1986_v25, %v4001_v29  ;;  %s2465_s26 = scalar_lea.vmem %s2067_s23, 16  ;;  %s2469_s30 = scalar_lea.vmem %s2067_s23, 32 }
 0x484   :  { %v1569_v27 = vadd.f32 %v1568_v32, %v1567_v18  ;;  %v1548_v47 = vmul.f32 %v1515_v38, %v70_v55  ;;  %p2466_p8 = scmp.ne.s32.totalorder %s2067_s23, %s2465_s26  ;;  %p2470_p9 = scmp.lt.s32.totalorder %s2067_s23, %s2067_s23 }
 0x485   :  { %p2471_p10 = scmp.lt.s32.totalorder %s2469_s30, %s2465_s26 }
 0x486   :  { %v1571_v58 = vadd.f32 %v1570_v19, %v1569_v27  ;;  %v1574_v33 = vsel %vm40_vm0, %v1548_v47, 0.0 }
 0x487   :  { %v1525_v5 = vpop.permute.xlu0 %1524  ;;  %p2472_p11 = por %p2471_p10, %p2470_p9 }
 0x488   :  { %v1573_v10 = vadd.f32 %v1572_v63, %v1571_v58  ;;  %v1550_v21 = vmul.f32 %v1525_v5, %v72_v11 }
 0x489   :  { %p2473_p12 = pnand %p2472_p11, %p2466_p8 }
 0x48a   :  { %v1575_v37 = vadd.f32 %v1574_v33, %v1573_v10  ;;  %v1578_v30 = vsel %vm40_vm0, %v1550_v21, 0.0 }
 0x48b   :  { %v1535_v41 = vpop.permute.xlu0 %1534 }
 0x48c   :  { %v1577_v6 = vadd.f32 %v1576_v62, %v1575_v37  ;;  %v1552_v51 = vmul.f32 %v1535_v41, %v74_v53 }
 0x48e   :  { %v1579_v31 = vadd.f32 %v1578_v30, %v1577_v6  ;;  %v1582_v14 = vsel %vm40_vm0, %v1552_v51, 0.0 }
 0x490   :  { %v1581_v46 = vadd.f32 %v1580_v9, %v1579_v31 }
 0x492   :  { %v1583_v42 = vadd.f32 %v1582_v14, %v1581_v46 }
 0x494   :  { %v1584_v35 = vrot.slane %v1583_v42, 4 }
 0x496   :  { %v1585_v16 = vadd.f32 %v1584_v35, %v1583_v42 }
 0x498   :  { %v1586_v17 = vrot.slane %v1585_v16, 2 }
 0x49a   :  { %v1587_v22 = vadd.f32 %v1586_v17, %v1585_v16 }
 0x49c   :  { %v1588_v48 = vrot.slane %v1587_v22, 1 }
 0x49e   :  { %v1589_v13 = vadd.f32 %v1588_v48, %v1587_v22 }
 0x4a0   :  { %v1590_v52 = vadd.f32 %v1589_v13, %v1456_v34 }
 0x4a2   :  { %1591 = vst.msk [vmem:[#allocation2 + $0x3] sm:$0x1] %vm1374_vm1, %v1590_v52 }
 0x4a9   :  { %v1956_v0 = vld [vmem:[#allocation2 + $0x3] sm:$0x1] }
 0x4aa   :  { %v1988_v2 = vmul.f32 %v3751_v59, %v1956_v0 }
 0x4ac   :  { %v1989_v4 = vadd.f32 %v1988_v2, %v1987_v20 }
 0x4ae   :  { %v1990_v54 = vmul.f32 0.0078125, %v1989_v4 }
 0x4b0   :  { %1991 = vst.msk [vmem:[#allocation6] sm:$0x1] %vm1374_vm1, %v1990_v54 }
 0x4b1   :  { %2476 = shalt.err (!%p2473_p12)
}
 0x4b2   :  { %s2477_s28 = scalar_lea.hbm %s4270_s9, 16 }
 0x4b3   :  { %p2478_p13 = scmp.ne.s32.totalorder %s4270_s9, %s2477_s28  ;;  %p2481_p0 = scmp.lt.u32.totalorder %s2477_s28, %s4270_s9 }
 0x4b5   :  { %p2483_p1 = pnand %p2481_p0, %p2478_p13 }
 0x4b7   :  { %2486 = shalt.err (!%p2483_p1)
}
 0x4b8   :  { %2069 = dma.vmem_to_hbm [thread:$0]  %s2067_s23, 16, %s4270_s9, [#allocation7]  }
 0x4b9   :  { %s2487_s13 = scalar_lea.vmem %s4209_s5, 16  ;;  %s2491_s14 = scalar_lea.vmem %s4209_s5, 32 }
 0x4ba   :  { %p2488_p2 = scmp.ne.s32.totalorder %s4209_s5, %s2487_s13  ;;  %p2492_p3 = scmp.lt.s32.totalorder %s4209_s5, %s4209_s5 }
 0x4bb   :  { %p2493_p4 = scmp.lt.s32.totalorder %s2491_s14, %s2487_s13 }
 0x4bd   :  { %p2494_p5 = por %p2493_p4, %p2492_p3 }
 0x4bf   :  { %p2495_p6 = pnand %p2494_p5, %p2488_p2 }
 0x4c1   :  { %2498 = shalt.err (!%p2495_p6)
}
 0x4c2   :  { %s2499_s15 = scalar_lea.hbm %s4271_s10, 16 }
 0x4c3   :  { %p2500_p7 = scmp.ne.s32.totalorder %s4271_s10, %s2499_s15  ;;  %p2503_p8 = scmp.lt.u32.totalorder %s2499_s15, %s4271_s10 }
 0x4c5   :  { %p2505_p9 = pnand %p2503_p8, %p2500_p7 }
 0x4c7   :  { %2508 = shalt.err (!%p2505_p9)
}
 0x4c8   :  { %2079 = dma.vmem_to_hbm [thread:$0]  %s4209_s5, 16, %s4271_s10, [#allocation7]   ;;  %v2044_v24 = vrot.slane %v4134_v23, %v4045_v15 }
 0x4c9   :  { %s2549_s22 = smov [#allocation9]  }
 0x4ca   :  { %s2086_s7 = sshll.u32 %s2549_s22, 4  ;;  %v2045_v45 = vsel %vm1924_vm10, %v2044_v24, 0.0  ;;  %s2087_s7 = int_to_ptr.vmem [resolvable:$true] %s2086_s7 }
 0x4cb   :  { %s2509_s18 = scalar_lea.vmem %s2087_s7, 16  ;;  %s2513_s10 = scalar_lea.vmem %s2087_s7, 32 }
 0x4cc   :  { %p2510_p10 = scmp.ne.s32.totalorder %s2087_s7, %s2509_s18  ;;  %p2514_p11 = scmp.lt.s32.totalorder %s2087_s7, %s2087_s7 }
 0x4cd   :  { %p2515_p12 = scmp.lt.s32.totalorder %s2513_s10, %s2509_s18 }
 0x4cf   :  { %p2516_p13 = por %p2515_p12, %p2514_p11 }
 0x4d1   :  { %p2517_p0 = pnand %p2516_p13, %p2510_p10 }
 0x4f1   :  { %v2029_v59 = vpop.permute.xlu0 %2028 }
 0x4f2   :  { %v2034_v29 = vrot.slane %v2029_v59, %v4045_v15 }
 0x4f4   :  { %v2035_v50 = vsel %vm1917_vm9, %v2034_v29, 0.0 }
 0x4f5   :  { %v2046_v44 = vadd.f32 %v2045_v45, %v2035_v50 }
 0x4f7   :  { %2047 = vst [vmem:[#allocation9] sm:$0x1] %v2046_v44 }
 0x4f8   :  { %2520 = shalt.err (!%p2517_p0)
}
 0x4f9   :  { %s2521_s24 = scalar_lea.hbm %s4272_s11, 16 }
 0x4fa   :  { %p2522_p1 = scmp.ne.s32.totalorder %s4272_s11, %s2521_s24  ;;  %p2525_p2 = scmp.lt.u32.totalorder %s2521_s24, %s4272_s11 }
 0x4fc   :  { %p2527_p3 = pnand %p2525_p2, %p2522_p1 }
 0x4fe   :  { %2530 = shalt.err (!%p2527_p3)
}
 0x4ff   :  { %2089 = dma.vmem_to_hbm [thread:$0]  %s2087_s7, 16, %s4272_s11, [#allocation10]  }
 0x500   :  { %2531 = dma.done.wait [#allocation5], 16  }
 0x501   :  { %2532 = vsyncadd [#allocation5], 4294967280 }
 0x502   :  { %2533 = dma.done.wait [#allocation7], 32  }
 0x503   :  { %2534 = vsyncadd [#allocation7], 4294967264 }
 0x504   :  { %2535 = dma.done.wait [#allocation10], 16  }
 0x505   :  { %2536 = vsyncadd [#allocation10], 4294967280 }
 0x506   :  { %2104 = vsyncpa [#allocation5], 1 }
 0x507   :  { %2105 = vsyncpa [#allocation7], 1 }
 0x508   :  { %2106 = vsyncpa [#allocation10], 1 }

</bundles_post_ra>
